<compile_context>
chip_gen: v5e
topology: v5e:2x2
jax: 0.10.0
libtpu: 0.0.40
codegen_flags: <defaults>
</compile_context>

<pallas_src>
import functools

import jax
import jax.numpy as jnp
from jax import lax
from jax.experimental import pallas as pl
from jax.experimental.pallas import tpu as pltpu


def _round_up(n, m):
    return ((n + m - 1) // m) * m


def _lstm_recurrence_kernel(gx_ref, h0_ref, c0_ref, wh_ref,
                            hseq_ref, hfin_ref, cfin_ref,
                            h_sc, c_sc, *,
                            tc, hidden_pad, seq_len,
                            compute_dtype, act_dtype,
                            full_unroll, fori_unroll):
    """One grid step == `tc` LSTM timesteps for one batch tile.

    Grid: (batch_tiles [parallel], time_chunks [arbitrary]).

    gx_ref:   (tc, tb, 4Hp)  precomputed x_t @ Wx_packed + b
    h0_ref:   (tb, Hp)       initial hidden state (batch tile)
    c0_ref:   (tb, Hp)       initial cell state
    wh_ref:   (Hp, 4Hp)      packed recurrent weights [i|f|g|o]
    hseq_ref: (tc, tb, Hp)   per-timestep hidden states, TIME-MAJOR (dense stores)
    hfin_ref: (tb, Hp)       final hidden state
    cfin_ref: (tb, Hp)       final cell state
    h_sc/c_sc:(tb, Hp) f32   state carried across time chunks (VMEM scratch)
    seq_len:  None (no tail padding) or the true T for tail masking.
    """
    t_blk = pl.program_id(1)
    Hp = hidden_pad

    # Initialize the carried state at the first time chunk of each batch tile.
    @pl.when(t_blk == 0)
    def _():
        h_sc[...] = h0_ref[...].astype(jnp.float32)
        c_sc[...] = c0_ref[...].astype(jnp.float32)

    wh = wh_ref[...]                   # (Hp, 4Hp), compute_dtype

    def step(s, carry):
        h, c = carry                   # (tb, Hp) f32
        # Single packed matmul on the recurrent critical path, f32 accumulate.
        gates = gx_ref[s].astype(jnp.float32) + jnp.dot(
            h.astype(compute_dtype), wh, preferred_element_type=jnp.float32)
        ga = gates.astype(act_dtype)   # bf16 nonlinearities on v6e/v7x, else f32
        # Hp is a multiple of 128 -> every gate slice is lane-tile aligned.
        i_t = jax.nn.sigmoid(ga[:, 0 * Hp:1 * Hp])
        f_t = jax.nn.sigmoid(ga[:, 1 * Hp:2 * Hp])
        g_t = jnp.tanh(ga[:, 2 * Hp:3 * Hp])
        o_t = jax.nn.sigmoid(ga[:, 3 * Hp:4 * Hp])
        c_new = (f_t * c + i_t * g_t).astype(jnp.float32)   # f32 cell accumulation
        h_new = (o_t * jnp.tanh(c_new)).astype(jnp.float32)
        if seq_len is not None:        # tail-padding mask: freeze state past T
            valid = (t_blk * tc + s) < seq_len
            c_new = jnp.where(valid, c_new, c)
            h_new = jnp.where(valid, h_new, h)
        # Dense, unmasked store of a full (tb, Hp) slab at leading index s.
        hseq_ref[s] = h_new.astype(hseq_ref.dtype)
        return h_new, c_new

    h = h_sc[...]
    c = c_sc[...]
    if full_unroll:
        for s in range(tc):
            h, c = step(s, (h, c))
    else:
        # Bounded live ranges for big chunks / big tb*Hp (spill relief).
        h, c = lax.fori_loop(0, tc, step, (h, c), unroll=fori_unroll)

    h_sc[...] = h
    c_sc[...] = c

    @pl.when(t_blk == pl.num_programs(1) - 1)
    def _():
        hfin_ref[...] = h.astype(hfin_ref.dtype)
        cfin_ref[...] = c.astype(cfin_ref.dtype)


def basic_lstm_forward(x, h0, c0, w_x, w_h, b, *, tc=None, batch_tile=None,
                       compute_dtype=jnp.float32, gx_dtype=None,
                       act_dtype=jnp.float32, hseq_dtype=jnp.float32,
                       vmem_limit_bytes=48 * 1024 * 1024):
    """x: (T, B, D); h0/c0: (B, H); w_x: (4, D, H); w_h: (4, H, H); b: (4, H).

    Gate packing order along axis 0: [i, f, g, o].
    Returns (hidden_seq (B, T, H), (h_T (B, H), c_T (B, H))).

    Tuning knobs:
      compute_dtype: matmul-operand dtype (bf16 is fine on all chips incl. v5e;
                     accumulation/carries/cell update always f32).
      gx_dtype:      storage dtype of the precomputed input projection stream
                     (bf16 halves the dominant HBM read -- biggest win on v5e).
      act_dtype:     dtype of sigmoid/tanh inputs (bf16 on v6e/v7x only).
      batch_tile:    batch tile size (multiple of 8); set Bp//2 on v7x to use
                     both TensorCores via the leading "parallel" grid axis.
      tc:            time-chunk size; derived from a VMEM budget if None.
    """
    T, B, D = x.shape
    H = h0.shape[-1]
    if gx_dtype is None:
        gx_dtype = jnp.float32

    Hp = _round_up(H, 128)            # lane-aligned hidden dim
    Bp = _round_up(B, 8)              # sublane-aligned batch

    # ---- Pack the four gates along the output dim, zero-padding H -> Hp. ----
    def pack_gate_cols(w):            # (4, rows, H) -> (rows, 4*Hp)
        w = jnp.pad(w, ((0, 0), (0, 0), (0, Hp - H)))
        return jnp.concatenate([w[0], w[1], w[2], w[3]], axis=1)

    wx_p = pack_gate_cols(w_x)                                        # (D, 4Hp)
    wh_p = pack_gate_cols(jnp.pad(w_h, ((0, 0), (0, Hp - H), (0, 0))))  # (Hp, 4Hp)
    b_p = jnp.concatenate([jnp.pad(b[i], (0, Hp - H)) for i in range(4)])  # (4Hp,)

    # ---- Pad batch / hidden of the runtime tensors (zeros stay zero). ----
    xb = jnp.pad(x, ((0, 0), (0, Bp - B), (0, 0)))
    h0p = jnp.pad(h0, ((0, Bp - B), (0, Hp - H))).astype(jnp.float32)
    c0p = jnp.pad(c0, ((0, Bp - B), (0, Hp - H))).astype(jnp.float32)

    # ---- Hoisted input projection: one big XLA matmul, f32 accumulation. ----
    gx = jnp.einsum("tbd,dg->tbg",
                    xb.astype(compute_dtype), wx_p.astype(compute_dtype),
                    preferred_element_type=jnp.float32) + b_p         # (T, Bp, 4Hp)
    gx = gx.astype(gx_dtype)

    # ---- Batch tiling (leading "parallel" grid axis). ----
    tb = Bp if batch_tile is None else batch_tile
    assert tb % 8 == 0 and Bp % tb == 0, f"batch_tile={tb} must divide Bp={Bp} (mult of 8)"

    compute_bytes = jnp.dtype(compute_dtype).itemsize
    gx_bytes = jnp.dtype(gx_dtype).itemsize
    out_bytes = jnp.dtype(hseq_dtype).itemsize

    # Single-buffer the (constant index_map) weights once they get large.
    wh_bytes = Hp * 4 * Hp * compute_bytes
    single_buffer_weights = wh_bytes >= (8 << 20)
    wh_buffers = 1 if single_buffer_weights else 2

    # ---- Time-chunk size from a VMEM budget (double-buffered gx / hseq). ----
    if tc is None:
        budget = int(0.75 * vmem_limit_bytes)
        fixed = (wh_bytes * wh_buffers           # recurrent weights
                 + 2 * 2 * tb * Hp * 4           # h0 / c0 (double-buffered)
                 + 2 * tb * Hp * 4)              # h/c scratch carries
        per_t = 2 * tb * 4 * Hp * gx_bytes + 2 * tb * Hp * out_bytes
        tc = max(budget - fixed, per_t * 8) // per_t
        tc = max(8, min(int(tc), 256, _round_up(T, 8)))
        tc = (tc // 8) * 8
    T_pad = _round_up(T, tc)
    if T_pad != T:
        gx = jnp.pad(gx, ((0, T_pad - T), (0, 0), (0, 0)))
    seq_len = T if T_pad != T else None           # tail mask only when padded

    # Fully unroll small chunks; otherwise fori_loop bounds vreg live ranges.
    gates_step_bytes = tb * 4 * Hp * 4
    full_unroll = (tc <= 16) and (gates_step_bytes <= (32 << 10))

    kernel = functools.partial(
        _lstm_recurrence_kernel, tc=tc, hidden_pad=Hp, seq_len=seq_len,
        compute_dtype=compute_dtype, act_dtype=act_dtype,
        full_unroll=full_unroll, fori_unroll=2)

    wh_spec_kwargs = {}
    if single_buffer_weights:
        wh_spec_kwargs = dict(pipeline_mode=pl.Buffered(1))
    wh_spec = pl.BlockSpec((Hp, 4 * Hp), lambda bb, t: (0, 0), **wh_spec_kwargs)

    grid_spec = pltpu.PrefetchScalarGridSpec(
        num_scalar_prefetch=0,
        grid=(Bp // tb, T_pad // tc),
        in_specs=[
            pl.BlockSpec((tc, tb, 4 * Hp), lambda bb, t: (t, bb, 0)),  # gx chunk
            pl.BlockSpec((tb, Hp), lambda bb, t: (bb, 0)),             # h0 tile
            pl.BlockSpec((tb, Hp), lambda bb, t: (bb, 0)),             # c0 tile
            wh_spec,                                                   # Wh packed
        ],
        out_specs=[
            pl.BlockSpec((tc, tb, Hp), lambda bb, t: (t, bb, 0)),      # hseq (T-major)
            pl.BlockSpec((tb, Hp), lambda bb, t: (bb, 0)),             # h_T
            pl.BlockSpec((tb, Hp), lambda bb, t: (bb, 0)),             # c_T
        ],
        scratch_shapes=[
            pltpu.VMEM((tb, Hp), jnp.float32),                         # h carry
            pltpu.VMEM((tb, Hp), jnp.float32),                         # c carry
        ],
    )

    hseq_tm, h_fin, c_fin = pl.pallas_call(
        kernel,
        grid_spec=grid_spec,
        out_shape=(
            jax.ShapeDtypeStruct((T_pad, Bp, Hp), hseq_dtype),
            jax.ShapeDtypeStruct((Bp, Hp), jnp.float32),
            jax.ShapeDtypeStruct((Bp, Hp), jnp.float32),
        ),
        compiler_params=pltpu.CompilerParams(
            dimension_semantics=("parallel", "arbitrary"),
            vmem_limit_bytes=vmem_limit_bytes),
    )(gx, h0p, c0p, wh_p.astype(compute_dtype))

    # One-off layout fix in the wrapper (cheap vs. T masked in-kernel stores),
    # and slice off the batch / hidden / time padding.
    hidden_seq = jnp.transpose(hseq_tm[:T, :B, :H], (1, 0, 2))
    return hidden_seq, (h_fin[:B, :H], c_fin[:B, :H])


def _xavier_uniform(key, shape, dtype=jnp.float32):
    fan_in, fan_out = shape[-2], shape[-1]
    limit = jnp.sqrt(6.0 / (fan_in + fan_out))
    return jax.random.uniform(key, shape, dtype, minval=-limit, maxval=limit)


def init_params(key, input_dim, hidden_dim):
    """Xavier-uniform matrices, zero biases (matches the PyTorch module init)."""
    keys = jax.random.split(key, 8)
    # gate order: i, f, g, o
    w_x = jnp.stack([_xavier_uniform(keys[i], (input_dim, hidden_dim)) for i in range(4)])
    w_h = jnp.stack([_xavier_uniform(keys[4 + i], (hidden_dim, hidden_dim)) for i in range(4)])
    b = jnp.zeros((4, hidden_dim), jnp.float32)
    return w_x, w_h, b


def _reference_lstm(x, h0, c0, w_x, w_h, b):
    """Plain-JAX reference mirroring the PyTorch forward, for validation."""
    T = x.shape[0]
    h, c = h0, c0
    hs = []
    for t in range(T):
        xt = x[t]
        i_t = jax.nn.sigmoid(xt @ w_x[0] + h @ w_h[0] + b[0])
        f_t = jax.nn.sigmoid(xt @ w_x[1] + h @ w_h[1] + b[1])
        g_t = jnp.tanh(xt @ w_x[2] + h @ w_h[2] + b[2])
        o_t = jax.nn.sigmoid(xt @ w_x[3] + h @ w_h[3] + b[3])
        c = f_t * c + i_t * g_t
        h = o_t * jnp.tanh(c)
        hs.append(h)
    hseq = jnp.stack(hs, axis=0)             # (T, B, H)
    return jnp.transpose(hseq, (1, 0, 2)), (h, c)


if __name__ == "__main__":
    T, B, D, H = 16, 8, 16, 32

    key = jax.random.PRNGKey(0)
    k_x, k_h, k_c, k_p = jax.random.split(key, 4)

    x = jax.random.normal(k_x, (T, B, D), jnp.float32)
    h0 = jax.random.normal(k_h, (B, H), jnp.float32)
    c0 = jax.random.normal(k_c, (B, H), jnp.float32)
    w_x, w_h, b = init_params(k_p, D, H)

    ref_seq, (ref_h, ref_c) = _reference_lstm(x, h0, c0, w_x, w_h, b)

    # 1) f32 path (all chips), auto tc -- strict correctness check.
    hidden_seq, (h_T, c_T) = jax.block_until_ready(
        basic_lstm_forward(x, h0, c0, w_x, w_h, b))
    assert hidden_seq.shape == (B, T, H)
    assert jnp.allclose(hidden_seq, ref_seq, atol=1e-4, rtol=1e-4)
    assert jnp.allclose(h_T, ref_h, atol=1e-4, rtol=1e-4)
    assert jnp.allclose(c_T, ref_c, atol=1e-4, rtol=1e-4)

    # 2) Non-multiple-of-chunk T (tail padding + in-kernel mask), f32, strict.
    T2 = 13
    ref_seq2, (ref_h2, ref_c2) = _reference_lstm(x[:T2], h0, c0, w_x, w_h, b)
    hseq2, (h_T2, c_T2) = jax.block_until_ready(
        basic_lstm_forward(x[:T2], h0, c0, w_x, w_h, b, tc=8))
    assert hseq2.shape == (B, T2, H)
    assert jnp.allclose(hseq2, ref_seq2, atol=1e-4, rtol=1e-4)
    assert jnp.allclose(h_T2, ref_h2, atol=1e-4, rtol=1e-4)
    assert jnp.allclose(c_T2, ref_c2, atol=1e-4, rtol=1e-4)

    # 3) bf16 knobs (bf16 MXU operands + bf16 gx stream + bf16 nonlinearities,
    #    f32 accumulation/carries) -- loose sanity check vs the f32 reference.
    # TODO(synk): validate bf16 drift for long sequences before enabling in prod.
    hseq_bf, _ = jax.block_until_ready(
        basic_lstm_forward(x, h0, c0, w_x, w_h, b,
                           compute_dtype=jnp.bfloat16,
                           gx_dtype=jnp.bfloat16,
                           act_dtype=jnp.bfloat16))
    assert jnp.allclose(hseq_bf.astype(jnp.float32), ref_seq, atol=0.25)

    print("KERNEL_OK")
</pallas_src>

<mosaic_0001>
module attributes {stable_mosaic.version = 11 : i64} {
  func.func @_lstm_recurrence_kernel(%arg0: i32, %arg1: i32, %arg2: memref<16x8x512xf32, #tpu.memory_space<vmem>>, %arg3: memref<8x128xf32, #tpu.memory_space<vmem>>, %arg4: memref<8x128xf32, #tpu.memory_space<vmem>>, %arg5: memref<128x512xf32, #tpu.memory_space<vmem>>, %arg6: memref<16x8x128xf32, #tpu.memory_space<vmem>>, %arg7: memref<8x128xf32, #tpu.memory_space<vmem>>, %arg8: memref<8x128xf32, #tpu.memory_space<vmem>>, %arg9: memref<8x128xf32, #tpu.memory_space<vmem>>, %arg10: memref<8x128xf32, #tpu.memory_space<vmem>>) attributes {dimension_semantics = [#tpu.dimension_semantics<parallel>, #tpu.dimension_semantics<arbitrary>], iteration_bounds = array<i64: 1, 1>, scalar_prefetch = 0 : i64, scratch_operands = 2 : i64, tpu.core_type = #tpu.core_type<tc>, window_params = [{transform_indices = @transform_0, window_bounds = array<i64: 16, 8, 512>}, {transform_indices = @transform_1, window_bounds = array<i64: 8, 128>}, {transform_indices = @transform_2, window_bounds = array<i64: 8, 128>}, {pipeline_mode = #tpu.pipeline_mode<synchronous>, transform_indices = @transform_3, window_bounds = array<i64: 128, 512>}, {transform_indices = @transform_4, window_bounds = array<i64: 16, 8, 128>}, {transform_indices = @transform_5, window_bounds = array<i64: 8, 128>}, {transform_indices = @transform_6, window_bounds = array<i64: 8, 128>}]} {
    %c0_i32 = arith.constant 0 : i32
    %0 = arith.cmpi eq, %arg1, %c0_i32 : i32
    %1 = arith.extui %0 : i1 to i32
    %c0_i32_0 = arith.constant 0 : i32
    %2 = arith.cmpi ne, %1, %c0_i32_0 : i32
    scf.if %2 {
      %c0_156 = arith.constant 0 : index
      %c0_157 = arith.constant 0 : index
      %523 = vector.load %arg3[%c0_156, %c0_157] : memref<8x128xf32, #tpu.memory_space<vmem>>, vector<8x128xf32>
      %c0_158 = arith.constant 0 : index
      %c0_159 = arith.constant 0 : index
      %524 = vector.load %arg9[%c0_158, %c0_159] : memref<8x128xf32, #tpu.memory_space<vmem>>, vector<8x128xf32>
      tpu.vector_store %arg9[%c0_158, %c0_159], %523 {strides = array<i32>} : memref<8x128xf32, #tpu.memory_space<vmem>>, vector<8x128xf32>,
      %c0_160 = arith.constant 0 : index
      %c0_161 = arith.constant 0 : index
      %525 = vector.load %arg4[%c0_160, %c0_161] : memref<8x128xf32, #tpu.memory_space<vmem>>, vector<8x128xf32>
      %c0_162 = arith.constant 0 : index
      %c0_163 = arith.constant 0 : index
      %526 = vector.load %arg10[%c0_162, %c0_163] : memref<8x128xf32, #tpu.memory_space<vmem>>, vector<8x128xf32>
      tpu.vector_store %arg10[%c0_162, %c0_163], %525 {strides = array<i32>} : memref<8x128xf32, #tpu.memory_space<vmem>>, vector<8x128xf32>,
    } else {
    }
    %c0 = arith.constant 0 : index
    %c0_1 = arith.constant 0 : index
    %3 = vector.load %arg5[%c0, %c0_1] : memref<128x512xf32, #tpu.memory_space<vmem>>, vector<128x512xf32>
    %c0_2 = arith.constant 0 : index
    %c0_3 = arith.constant 0 : index
    %4 = vector.load %arg9[%c0_2, %c0_3] : memref<8x128xf32, #tpu.memory_space<vmem>>, vector<8x128xf32>
    %c0_4 = arith.constant 0 : index
    %c0_5 = arith.constant 0 : index
    %5 = vector.load %arg10[%c0_4, %c0_5] : memref<8x128xf32, #tpu.memory_space<vmem>>, vector<8x128xf32>
    %c0_6 = arith.constant 0 : index
    %c0_7 = arith.constant 0 : index
    %c0_8 = arith.constant 0 : index
    %6 = vector.load %arg2[%c0_6, %c0_7, %c0_8] : memref<16x8x512xf32, #tpu.memory_space<vmem>>, vector<1x8x512xf32>
    %7 = vector.shape_cast %6 : vector<1x8x512xf32> to vector<8x512xf32>
    %cst = arith.constant dense<0.000000e+00> : vector<8x512xf32>
    %8 = tpu.matmul %4, %3, %cst {dimension_numbers = #tpu.dot_dimension_numbers<[1], [0], [0], [1], [0, 0, 1, 1], [], []>} : vector<8x128xf32>, vector<128x512xf32>, vector<8x512xf32> -> vector<8x512xf32>
    %9 = arith.addf %7, %8 : vector<8x512xf32>
    %10 = vector.extract_strided_slice %9 {offsets = [0, 0], sizes = [8, 128], strides = [1, 1]} : vector<8x512xf32> to vector<8x128xf32>
    %11 = arith.negf %10 : vector<8x128xf32>
    %12 = math.exp %11 : vector<8x128xf32>
    %cst_9 = arith.constant 1.000000e+00 : f32
    %13 = vector.broadcast %cst_9 : f32 to vector<8x128xf32>
    %14 = arith.addf %13, %12 : vector<8x128xf32>
    %15 = arith.divf %13, %14 : vector<8x128xf32>
    %16 = vector.extract_strided_slice %9 {offsets = [0, 128], sizes = [8, 128], strides = [1, 1]} : vector<8x512xf32> to vector<8x128xf32>
    %17 = arith.negf %16 : vector<8x128xf32>
    %18 = math.exp %17 : vector<8x128xf32>
    %cst_10 = arith.constant 1.000000e+00 : f32
    %19 = vector.broadcast %cst_10 : f32 to vector<8x128xf32>
    %20 = arith.addf %19, %18 : vector<8x128xf32>
    %21 = arith.divf %19, %20 : vector<8x128xf32>
    %22 = vector.extract_strided_slice %9 {offsets = [0, 256], sizes = [8, 128], strides = [1, 1]} : vector<8x512xf32> to vector<8x128xf32>
    %23 = math.tanh %22 : vector<8x128xf32>
    %24 = vector.extract_strided_slice %9 {offsets = [0, 384], sizes = [8, 128], strides = [1, 1]} : vector<8x512xf32> to vector<8x128xf32>
    %25 = arith.negf %24 : vector<8x128xf32>
    %26 = math.exp %25 : vector<8x128xf32>
    %cst_11 = arith.constant 1.000000e+00 : f32
    %27 = vector.broadcast %cst_11 : f32 to vector<8x128xf32>
    %28 = arith.addf %27, %26 : vector<8x128xf32>
    %29 = arith.divf %27, %28 : vector<8x128xf32>
    %30 = arith.mulf %21, %5 : vector<8x128xf32>
    %31 = arith.mulf %15, %23 : vector<8x128xf32>
    %32 = arith.addf %30, %31 : vector<8x128xf32>
    %33 = math.tanh %32 : vector<8x128xf32>
    %34 = arith.mulf %29, %33 : vector<8x128xf32>
    %c0_12 = arith.constant 0 : index
    %c0_13 = arith.constant 0 : index
    %c0_14 = arith.constant 0 : index
    %35 = vector.load %arg6[%c0_12, %c0_13, %c0_14] : memref<16x8x128xf32, #tpu.memory_space<vmem>>, vector<1x8x128xf32>
    %36 = vector.shape_cast %35 : vector<1x8x128xf32> to vector<8x128xf32>
    %37 = vector.shape_cast %34 : vector<8x128xf32> to vector<1x8x128xf32>
    tpu.vector_store %arg6[%c0_12, %c0_13, %c0_14], %37 {strides = array<i32>} : memref<16x8x128xf32, #tpu.memory_space<vmem>>, vector<1x8x128xf32>,
    %c1 = arith.constant 1 : index
    %c0_15 = arith.constant 0 : index
    %c0_16 = arith.constant 0 : index
    %38 = vector.load %arg2[%c1, %c0_15, %c0_16] : memref<16x8x512xf32, #tpu.memory_space<vmem>>, vector<1x8x512xf32>
    %39 = vector.shape_cast %38 : vector<1x8x512xf32> to vector<8x512xf32>
    %cst_17 = arith.constant dense<0.000000e+00> : vector<8x512xf32>
    %40 = tpu.matmul %34, %3, %cst_17 {dimension_numbers = #tpu.dot_dimension_numbers<[1], [0], [0], [1], [0, 0, 1, 1], [], []>} : vector<8x128xf32>, vector<128x512xf32>, vector<8x512xf32> -> vector<8x512xf32>
    %41 = arith.addf %39, %40 : vector<8x512xf32>
    %42 = vector.extract_strided_slice %41 {offsets = [0, 0], sizes = [8, 128], strides = [1, 1]} : vector<8x512xf32> to vector<8x128xf32>
    %43 = arith.negf %42 : vector<8x128xf32>
    %44 = math.exp %43 : vector<8x128xf32>
    %cst_18 = arith.constant 1.000000e+00 : f32
    %45 = vector.broadcast %cst_18 : f32 to vector<8x128xf32>
    %46 = arith.addf %45, %44 : vector<8x128xf32>
    %47 = arith.divf %45, %46 : vector<8x128xf32>
    %48 = vector.extract_strided_slice %41 {offsets = [0, 128], sizes = [8, 128], strides = [1, 1]} : vector<8x512xf32> to vector<8x128xf32>
    %49 = arith.negf %48 : vector<8x128xf32>
    %50 = math.exp %49 : vector<8x128xf32>
    %cst_19 = arith.constant 1.000000e+00 : f32
    %51 = vector.broadcast %cst_19 : f32 to vector<8x128xf32>
    %52 = arith.addf %51, %50 : vector<8x128xf32>
    %53 = arith.divf %51, %52 : vector<8x128xf32>
    %54 = vector.extract_strided_slice %41 {offsets = [0, 256], sizes = [8, 128], strides = [1, 1]} : vector<8x512xf32> to vector<8x128xf32>
    %55 = math.tanh %54 : vector<8x128xf32>
    %56 = vector.extract_strided_slice %41 {offsets = [0, 384], sizes = [8, 128], strides = [1, 1]} : vector<8x512xf32> to vector<8x128xf32>
    %57 = arith.negf %56 : vector<8x128xf32>
    %58 = math.exp %57 : vector<8x128xf32>
    %cst_20 = arith.constant 1.000000e+00 : f32
    %59 = vector.broadcast %cst_20 : f32 to vector<8x128xf32>
    %60 = arith.addf %59, %58 : vector<8x128xf32>
    %61 = arith.divf %59, %60 : vector<8x128xf32>
    %62 = arith.mulf %53, %32 : vector<8x128xf32>
    %63 = arith.mulf %47, %55 : vector<8x128xf32>
    %64 = arith.addf %62, %63 : vector<8x128xf32>
    %65 = math.tanh %64 : vector<8x128xf32>
    %66 = arith.mulf %61, %65 : vector<8x128xf32>
    %c1_21 = arith.constant 1 : index
    %c0_22 = arith.constant 0 : index
    %c0_23 = arith.constant 0 : index
    %67 = vector.load %arg6[%c1_21, %c0_22, %c0_23] : memref<16x8x128xf32, #tpu.memory_space<vmem>>, vector<1x8x128xf32>
    %68 = vector.shape_cast %67 : vector<1x8x128xf32> to vector<8x128xf32>
    %69 = vector.shape_cast %66 : vector<8x128xf32> to vector<1x8x128xf32>
    tpu.vector_store %arg6[%c1_21, %c0_22, %c0_23], %69 {strides = array<i32>} : memref<16x8x128xf32, #tpu.memory_space<vmem>>, vector<1x8x128xf32>,
    %c2 = arith.constant 2 : index
    %c0_24 = arith.constant 0 : index
    %c0_25 = arith.constant 0 : index
    %70 = vector.load %arg2[%c2, %c0_24, %c0_25] : memref<16x8x512xf32, #tpu.memory_space<vmem>>, vector<1x8x512xf32>
    %71 = vector.shape_cast %70 : vector<1x8x512xf32> to vector<8x512xf32>
    %cst_26 = arith.constant dense<0.000000e+00> : vector<8x512xf32>
    %72 = tpu.matmul %66, %3, %cst_26 {dimension_numbers = #tpu.dot_dimension_numbers<[1], [0], [0], [1], [0, 0, 1, 1], [], []>} : vector<8x128xf32>, vector<128x512xf32>, vector<8x512xf32> -> vector<8x512xf32>
    %73 = arith.addf %71, %72 : vector<8x512xf32>
    %74 = vector.extract_strided_slice %73 {offsets = [0, 0], sizes = [8, 128], strides = [1, 1]} : vector<8x512xf32> to vector<8x128xf32>
    %75 = arith.negf %74 : vector<8x128xf32>
    %76 = math.exp %75 : vector<8x128xf32>
    %cst_27 = arith.constant 1.000000e+00 : f32
    %77 = vector.broadcast %cst_27 : f32 to vector<8x128xf32>
    %78 = arith.addf %77, %76 : vector<8x128xf32>
    %79 = arith.divf %77, %78 : vector<8x128xf32>
    %80 = vector.extract_strided_slice %73 {offsets = [0, 128], sizes = [8, 128], strides = [1, 1]} : vector<8x512xf32> to vector<8x128xf32>
    %81 = arith.negf %80 : vector<8x128xf32>
    %82 = math.exp %81 : vector<8x128xf32>
    %cst_28 = arith.constant 1.000000e+00 : f32
    %83 = vector.broadcast %cst_28 : f32 to vector<8x128xf32>
    %84 = arith.addf %83, %82 : vector<8x128xf32>
    %85 = arith.divf %83, %84 : vector<8x128xf32>
    %86 = vector.extract_strided_slice %73 {offsets = [0, 256], sizes = [8, 128], strides = [1, 1]} : vector<8x512xf32> to vector<8x128xf32>
    %87 = math.tanh %86 : vector<8x128xf32>
    %88 = vector.extract_strided_slice %73 {offsets = [0, 384], sizes = [8, 128], strides = [1, 1]} : vector<8x512xf32> to vector<8x128xf32>
    %89 = arith.negf %88 : vector<8x128xf32>
    %90 = math.exp %89 : vector<8x128xf32>
    %cst_29 = arith.constant 1.000000e+00 : f32
    %91 = vector.broadcast %cst_29 : f32 to vector<8x128xf32>
    %92 = arith.addf %91, %90 : vector<8x128xf32>
    %93 = arith.divf %91, %92 : vector<8x128xf32>
    %94 = arith.mulf %85, %64 : vector<8x128xf32>
    %95 = arith.mulf %79, %87 : vector<8x128xf32>
    %96 = arith.addf %94, %95 : vector<8x128xf32>
    %97 = math.tanh %96 : vector<8x128xf32>
    %98 = arith.mulf %93, %97 : vector<8x128xf32>
    %c2_30 = arith.constant 2 : index
    %c0_31 = arith.constant 0 : index
    %c0_32 = arith.constant 0 : index
    %99 = vector.load %arg6[%c2_30, %c0_31, %c0_32] : memref<16x8x128xf32, #tpu.memory_space<vmem>>, vector<1x8x128xf32>
    %100 = vector.shape_cast %99 : vector<1x8x128xf32> to vector<8x128xf32>
    %101 = vector.shape_cast %98 : vector<8x128xf32> to vector<1x8x128xf32>
    tpu.vector_store %arg6[%c2_30, %c0_31, %c0_32], %101 {strides = array<i32>} : memref<16x8x128xf32, #tpu.memory_space<vmem>>, vector<1x8x128xf32>,
    %c3 = arith.constant 3 : index
    %c0_33 = arith.constant 0 : index
    %c0_34 = arith.constant 0 : index
    %102 = vector.load %arg2[%c3, %c0_33, %c0_34] : memref<16x8x512xf32, #tpu.memory_space<vmem>>, vector<1x8x512xf32>
    %103 = vector.shape_cast %102 : vector<1x8x512xf32> to vector<8x512xf32>
    %cst_35 = arith.constant dense<0.000000e+00> : vector<8x512xf32>
    %104 = tpu.matmul %98, %3, %cst_35 {dimension_numbers = #tpu.dot_dimension_numbers<[1], [0], [0], [1], [0, 0, 1, 1], [], []>} : vector<8x128xf32>, vector<128x512xf32>, vector<8x512xf32> -> vector<8x512xf32>
    %105 = arith.addf %103, %104 : vector<8x512xf32>
    %106 = vector.extract_strided_slice %105 {offsets = [0, 0], sizes = [8, 128], strides = [1, 1]} : vector<8x512xf32> to vector<8x128xf32>
    %107 = arith.negf %106 : vector<8x128xf32>
    %108 = math.exp %107 : vector<8x128xf32>
    %cst_36 = arith.constant 1.000000e+00 : f32
    %109 = vector.broadcast %cst_36 : f32 to vector<8x128xf32>
    %110 = arith.addf %109, %108 : vector<8x128xf32>
    %111 = arith.divf %109, %110 : vector<8x128xf32>
    %112 = vector.extract_strided_slice %105 {offsets = [0, 128], sizes = [8, 128], strides = [1, 1]} : vector<8x512xf32> to vector<8x128xf32>
    %113 = arith.negf %112 : vector<8x128xf32>
    %114 = math.exp %113 : vector<8x128xf32>
    %cst_37 = arith.constant 1.000000e+00 : f32
    %115 = vector.broadcast %cst_37 : f32 to vector<8x128xf32>
    %116 = arith.addf %115, %114 : vector<8x128xf32>
    %117 = arith.divf %115, %116 : vector<8x128xf32>
    %118 = vector.extract_strided_slice %105 {offsets = [0, 256], sizes = [8, 128], strides = [1, 1]} : vector<8x512xf32> to vector<8x128xf32>
    %119 = math.tanh %118 : vector<8x128xf32>
    %120 = vector.extract_strided_slice %105 {offsets = [0, 384], sizes = [8, 128], strides = [1, 1]} : vector<8x512xf32> to vector<8x128xf32>
    %121 = arith.negf %120 : vector<8x128xf32>
    %122 = math.exp %121 : vector<8x128xf32>
    %cst_38 = arith.constant 1.000000e+00 : f32
    %123 = vector.broadcast %cst_38 : f32 to vector<8x128xf32>
    %124 = arith.addf %123, %122 : vector<8x128xf32>
    %125 = arith.divf %123, %124 : vector<8x128xf32>
    %126 = arith.mulf %117, %96 : vector<8x128xf32>
    %127 = arith.mulf %111, %119 : vector<8x128xf32>
    %128 = arith.addf %126, %127 : vector<8x128xf32>
    %129 = math.tanh %128 : vector<8x128xf32>
    %130 = arith.mulf %125, %129 : vector<8x128xf32>
    %c3_39 = arith.constant 3 : index
    %c0_40 = arith.constant 0 : index
    %c0_41 = arith.constant 0 : index
    %131 = vector.load %arg6[%c3_39, %c0_40, %c0_41] : memref<16x8x128xf32, #tpu.memory_space<vmem>>, vector<1x8x128xf32>
    %132 = vector.shape_cast %131 : vector<1x8x128xf32> to vector<8x128xf32>
    %133 = vector.shape_cast %130 : vector<8x128xf32> to vector<1x8x128xf32>
    tpu.vector_store %arg6[%c3_39, %c0_40, %c0_41], %133 {strides = array<i32>} : memref<16x8x128xf32, #tpu.memory_space<vmem>>, vector<1x8x128xf32>,
    %c4 = arith.constant 4 : index
    %c0_42 = arith.constant 0 : index
    %c0_43 = arith.constant 0 : index
    %134 = vector.load %arg2[%c4, %c0_42, %c0_43] : memref<16x8x512xf32, #tpu.memory_space<vmem>>, vector<1x8x512xf32>
    %135 = vector.shape_cast %134 : vector<1x8x512xf32> to vector<8x512xf32>
    %cst_44 = arith.constant dense<0.000000e+00> : vector<8x512xf32>
    %136 = tpu.matmul %130, %3, %cst_44 {dimension_numbers = #tpu.dot_dimension_numbers<[1], [0], [0], [1], [0, 0, 1, 1], [], []>} : vector<8x128xf32>, vector<128x512xf32>, vector<8x512xf32> -> vector<8x512xf32>
    %137 = arith.addf %135, %136 : vector<8x512xf32>
    %138 = vector.extract_strided_slice %137 {offsets = [0, 0], sizes = [8, 128], strides = [1, 1]} : vector<8x512xf32> to vector<8x128xf32>
    %139 = arith.negf %138 : vector<8x128xf32>
    %140 = math.exp %139 : vector<8x128xf32>
    %cst_45 = arith.constant 1.000000e+00 : f32
    %141 = vector.broadcast %cst_45 : f32 to vector<8x128xf32>
    %142 = arith.addf %141, %140 : vector<8x128xf32>
    %143 = arith.divf %141, %142 : vector<8x128xf32>
    %144 = vector.extract_strided_slice %137 {offsets = [0, 128], sizes = [8, 128], strides = [1, 1]} : vector<8x512xf32> to vector<8x128xf32>
    %145 = arith.negf %144 : vector<8x128xf32>
    %146 = math.exp %145 : vector<8x128xf32>
    %cst_46 = arith.constant 1.000000e+00 : f32
    %147 = vector.broadcast %cst_46 : f32 to vector<8x128xf32>
    %148 = arith.addf %147, %146 : vector<8x128xf32>
    %149 = arith.divf %147, %148 : vector<8x128xf32>
    %150 = vector.extract_strided_slice %137 {offsets = [0, 256], sizes = [8, 128], strides = [1, 1]} : vector<8x512xf32> to vector<8x128xf32>
    %151 = math.tanh %150 : vector<8x128xf32>
    %152 = vector.extract_strided_slice %137 {offsets = [0, 384], sizes = [8, 128], strides = [1, 1]} : vector<8x512xf32> to vector<8x128xf32>
    %153 = arith.negf %152 : vector<8x128xf32>
    %154 = math.exp %153 : vector<8x128xf32>
    %cst_47 = arith.constant 1.000000e+00 : f32
    %155 = vector.broadcast %cst_47 : f32 to vector<8x128xf32>
    %156 = arith.addf %155, %154 : vector<8x128xf32>
    %157 = arith.divf %155, %156 : vector<8x128xf32>
    %158 = arith.mulf %149, %128 : vector<8x128xf32>
    %159 = arith.mulf %143, %151 : vector<8x128xf32>
    %160 = arith.addf %158, %159 : vector<8x128xf32>
    %161 = math.tanh %160 : vector<8x128xf32>
    %162 = arith.mulf %157, %161 : vector<8x128xf32>
    %c4_48 = arith.constant 4 : index
    %c0_49 = arith.constant 0 : index
    %c0_50 = arith.constant 0 : index
    %163 = vector.load %arg6[%c4_48, %c0_49, %c0_50] : memref<16x8x128xf32, #tpu.memory_space<vmem>>, vector<1x8x128xf32>
    %164 = vector.shape_cast %163 : vector<1x8x128xf32> to vector<8x128xf32>
    %165 = vector.shape_cast %162 : vector<8x128xf32> to vector<1x8x128xf32>
    tpu.vector_store %arg6[%c4_48, %c0_49, %c0_50], %165 {strides = array<i32>} : memref<16x8x128xf32, #tpu.memory_space<vmem>>, vector<1x8x128xf32>,
    %c5 = arith.constant 5 : index
    %c0_51 = arith.constant 0 : index
    %c0_52 = arith.constant 0 : index
    %166 = vector.load %arg2[%c5, %c0_51, %c0_52] : memref<16x8x512xf32, #tpu.memory_space<vmem>>, vector<1x8x512xf32>
    %167 = vector.shape_cast %166 : vector<1x8x512xf32> to vector<8x512xf32>
    %cst_53 = arith.constant dense<0.000000e+00> : vector<8x512xf32>
    %168 = tpu.matmul %162, %3, %cst_53 {dimension_numbers = #tpu.dot_dimension_numbers<[1], [0], [0], [1], [0, 0, 1, 1], [], []>} : vector<8x128xf32>, vector<128x512xf32>, vector<8x512xf32> -> vector<8x512xf32>
    %169 = arith.addf %167, %168 : vector<8x512xf32>
    %170 = vector.extract_strided_slice %169 {offsets = [0, 0], sizes = [8, 128], strides = [1, 1]} : vector<8x512xf32> to vector<8x128xf32>
    %171 = arith.negf %170 : vector<8x128xf32>
    %172 = math.exp %171 : vector<8x128xf32>
    %cst_54 = arith.constant 1.000000e+00 : f32
    %173 = vector.broadcast %cst_54 : f32 to vector<8x128xf32>
    %174 = arith.addf %173, %172 : vector<8x128xf32>
    %175 = arith.divf %173, %174 : vector<8x128xf32>
    %176 = vector.extract_strided_slice %169 {offsets = [0, 128], sizes = [8, 128], strides = [1, 1]} : vector<8x512xf32> to vector<8x128xf32>
    %177 = arith.negf %176 : vector<8x128xf32>
    %178 = math.exp %177 : vector<8x128xf32>
    %cst_55 = arith.constant 1.000000e+00 : f32
    %179 = vector.broadcast %cst_55 : f32 to vector<8x128xf32>
    %180 = arith.addf %179, %178 : vector<8x128xf32>
    %181 = arith.divf %179, %180 : vector<8x128xf32>
    %182 = vector.extract_strided_slice %169 {offsets = [0, 256], sizes = [8, 128], strides = [1, 1]} : vector<8x512xf32> to vector<8x128xf32>
    %183 = math.tanh %182 : vector<8x128xf32>
    %184 = vector.extract_strided_slice %169 {offsets = [0, 384], sizes = [8, 128], strides = [1, 1]} : vector<8x512xf32> to vector<8x128xf32>
    %185 = arith.negf %184 : vector<8x128xf32>
    %186 = math.exp %185 : vector<8x128xf32>
    %cst_56 = arith.constant 1.000000e+00 : f32
    %187 = vector.broadcast %cst_56 : f32 to vector<8x128xf32>
    %188 = arith.addf %187, %186 : vector<8x128xf32>
    %189 = arith.divf %187, %188 : vector<8x128xf32>
    %190 = arith.mulf %181, %160 : vector<8x128xf32>
    %191 = arith.mulf %175, %183 : vector<8x128xf32>
    %192 = arith.addf %190, %191 : vector<8x128xf32>
    %193 = math.tanh %192 : vector<8x128xf32>
    %194 = arith.mulf %189, %193 : vector<8x128xf32>
    %c5_57 = arith.constant 5 : index
    %c0_58 = arith.constant 0 : index
    %c0_59 = arith.constant 0 : index
    %195 = vector.load %arg6[%c5_57, %c0_58, %c0_59] : memref<16x8x128xf32, #tpu.memory_space<vmem>>, vector<1x8x128xf32>
    %196 = vector.shape_cast %195 : vector<1x8x128xf32> to vector<8x128xf32>
    %197 = vector.shape_cast %194 : vector<8x128xf32> to vector<1x8x128xf32>
    tpu.vector_store %arg6[%c5_57, %c0_58, %c0_59], %197 {strides = array<i32>} : memref<16x8x128xf32, #tpu.memory_space<vmem>>, vector<1x8x128xf32>,
    %c6 = arith.constant 6 : index
    %c0_60 = arith.constant 0 : index
    %c0_61 = arith.constant 0 : index
    %198 = vector.load %arg2[%c6, %c0_60, %c0_61] : memref<16x8x512xf32, #tpu.memory_space<vmem>>, vector<1x8x512xf32>
    %199 = vector.shape_cast %198 : vector<1x8x512xf32> to vector<8x512xf32>
    %cst_62 = arith.constant dense<0.000000e+00> : vector<8x512xf32>
    %200 = tpu.matmul %194, %3, %cst_62 {dimension_numbers = #tpu.dot_dimension_numbers<[1], [0], [0], [1], [0, 0, 1, 1], [], []>} : vector<8x128xf32>, vector<128x512xf32>, vector<8x512xf32> -> vector<8x512xf32>
    %201 = arith.addf %199, %200 : vector<8x512xf32>
    %202 = vector.extract_strided_slice %201 {offsets = [0, 0], sizes = [8, 128], strides = [1, 1]} : vector<8x512xf32> to vector<8x128xf32>
    %203 = arith.negf %202 : vector<8x128xf32>
    %204 = math.exp %203 : vector<8x128xf32>
    %cst_63 = arith.constant 1.000000e+00 : f32
    %205 = vector.broadcast %cst_63 : f32 to vector<8x128xf32>
    %206 = arith.addf %205, %204 : vector<8x128xf32>
    %207 = arith.divf %205, %206 : vector<8x128xf32>
    %208 = vector.extract_strided_slice %201 {offsets = [0, 128], sizes = [8, 128], strides = [1, 1]} : vector<8x512xf32> to vector<8x128xf32>
    %209 = arith.negf %208 : vector<8x128xf32>
    %210 = math.exp %209 : vector<8x128xf32>
    %cst_64 = arith.constant 1.000000e+00 : f32
    %211 = vector.broadcast %cst_64 : f32 to vector<8x128xf32>
    %212 = arith.addf %211, %210 : vector<8x128xf32>
    %213 = arith.divf %211, %212 : vector<8x128xf32>
    %214 = vector.extract_strided_slice %201 {offsets = [0, 256], sizes = [8, 128], strides = [1, 1]} : vector<8x512xf32> to vector<8x128xf32>
    %215 = math.tanh %214 : vector<8x128xf32>
    %216 = vector.extract_strided_slice %201 {offsets = [0, 384], sizes = [8, 128], strides = [1, 1]} : vector<8x512xf32> to vector<8x128xf32>
    %217 = arith.negf %216 : vector<8x128xf32>
    %218 = math.exp %217 : vector<8x128xf32>
    %cst_65 = arith.constant 1.000000e+00 : f32
    %219 = vector.broadcast %cst_65 : f32 to vector<8x128xf32>
    %220 = arith.addf %219, %218 : vector<8x128xf32>
    %221 = arith.divf %219, %220 : vector<8x128xf32>
    %222 = arith.mulf %213, %192 : vector<8x128xf32>
    %223 = arith.mulf %207, %215 : vector<8x128xf32>
    %224 = arith.addf %222, %223 : vector<8x128xf32>
    %225 = math.tanh %224 : vector<8x128xf32>
    %226 = arith.mulf %221, %225 : vector<8x128xf32>
    %c6_66 = arith.constant 6 : index
    %c0_67 = arith.constant 0 : index
    %c0_68 = arith.constant 0 : index
    %227 = vector.load %arg6[%c6_66, %c0_67, %c0_68] : memref<16x8x128xf32, #tpu.memory_space<vmem>>, vector<1x8x128xf32>
    %228 = vector.shape_cast %227 : vector<1x8x128xf32> to vector<8x128xf32>
    %229 = vector.shape_cast %226 : vector<8x128xf32> to vector<1x8x128xf32>
    tpu.vector_store %arg6[%c6_66, %c0_67, %c0_68], %229 {strides = array<i32>} : memref<16x8x128xf32, #tpu.memory_space<vmem>>, vector<1x8x128xf32>,
    %c7 = arith.constant 7 : index
    %c0_69 = arith.constant 0 : index
    %c0_70 = arith.constant 0 : index
    %230 = vector.load %arg2[%c7, %c0_69, %c0_70] : memref<16x8x512xf32, #tpu.memory_space<vmem>>, vector<1x8x512xf32>
    %231 = vector.shape_cast %230 : vector<1x8x512xf32> to vector<8x512xf32>
    %cst_71 = arith.constant dense<0.000000e+00> : vector<8x512xf32>
    %232 = tpu.matmul %226, %3, %cst_71 {dimension_numbers = #tpu.dot_dimension_numbers<[1], [0], [0], [1], [0, 0, 1, 1], [], []>} : vector<8x128xf32>, vector<128x512xf32>, vector<8x512xf32> -> vector<8x512xf32>
    %233 = arith.addf %231, %232 : vector<8x512xf32>
    %234 = vector.extract_strided_slice %233 {offsets = [0, 0], sizes = [8, 128], strides = [1, 1]} : vector<8x512xf32> to vector<8x128xf32>
    %235 = arith.negf %234 : vector<8x128xf32>
    %236 = math.exp %235 : vector<8x128xf32>
    %cst_72 = arith.constant 1.000000e+00 : f32
    %237 = vector.broadcast %cst_72 : f32 to vector<8x128xf32>
    %238 = arith.addf %237, %236 : vector<8x128xf32>
    %239 = arith.divf %237, %238 : vector<8x128xf32>
    %240 = vector.extract_strided_slice %233 {offsets = [0, 128], sizes = [8, 128], strides = [1, 1]} : vector<8x512xf32> to vector<8x128xf32>
    %241 = arith.negf %240 : vector<8x128xf32>
    %242 = math.exp %241 : vector<8x128xf32>
    %cst_73 = arith.constant 1.000000e+00 : f32
    %243 = vector.broadcast %cst_73 : f32 to vector<8x128xf32>
    %244 = arith.addf %243, %242 : vector<8x128xf32>
    %245 = arith.divf %243, %244 : vector<8x128xf32>
    %246 = vector.extract_strided_slice %233 {offsets = [0, 256], sizes = [8, 128], strides = [1, 1]} : vector<8x512xf32> to vector<8x128xf32>
    %247 = math.tanh %246 : vector<8x128xf32>
    %248 = vector.extract_strided_slice %233 {offsets = [0, 384], sizes = [8, 128], strides = [1, 1]} : vector<8x512xf32> to vector<8x128xf32>
    %249 = arith.negf %248 : vector<8x128xf32>
    %250 = math.exp %249 : vector<8x128xf32>
    %cst_74 = arith.constant 1.000000e+00 : f32
    %251 = vector.broadcast %cst_74 : f32 to vector<8x128xf32>
    %252 = arith.addf %251, %250 : vector<8x128xf32>
    %253 = arith.divf %251, %252 : vector<8x128xf32>
    %254 = arith.mulf %245, %224 : vector<8x128xf32>
    %255 = arith.mulf %239, %247 : vector<8x128xf32>
    %256 = arith.addf %254, %255 : vector<8x128xf32>
    %257 = math.tanh %256 : vector<8x128xf32>
    %258 = arith.mulf %253, %257 : vector<8x128xf32>
    %c7_75 = arith.constant 7 : index
    %c0_76 = arith.constant 0 : index
    %c0_77 = arith.constant 0 : index
    %259 = vector.load %arg6[%c7_75, %c0_76, %c0_77] : memref<16x8x128xf32, #tpu.memory_space<vmem>>, vector<1x8x128xf32>
    %260 = vector.shape_cast %259 : vector<1x8x128xf32> to vector<8x128xf32>
    %261 = vector.shape_cast %258 : vector<8x128xf32> to vector<1x8x128xf32>
    tpu.vector_store %arg6[%c7_75, %c0_76, %c0_77], %261 {strides = array<i32>} : memref<16x8x128xf32, #tpu.memory_space<vmem>>, vector<1x8x128xf32>,
    %c8 = arith.constant 8 : index
    %c0_78 = arith.constant 0 : index
    %c0_79 = arith.constant 0 : index
    %262 = vector.load %arg2[%c8, %c0_78, %c0_79] : memref<16x8x512xf32, #tpu.memory_space<vmem>>, vector<1x8x512xf32>
    %263 = vector.shape_cast %262 : vector<1x8x512xf32> to vector<8x512xf32>
    %cst_80 = arith.constant dense<0.000000e+00> : vector<8x512xf32>
    %264 = tpu.matmul %258, %3, %cst_80 {dimension_numbers = #tpu.dot_dimension_numbers<[1], [0], [0], [1], [0, 0, 1, 1], [], []>} : vector<8x128xf32>, vector<128x512xf32>, vector<8x512xf32> -> vector<8x512xf32>
    %265 = arith.addf %263, %264 : vector<8x512xf32>
    %266 = vector.extract_strided_slice %265 {offsets = [0, 0], sizes = [8, 128], strides = [1, 1]} : vector<8x512xf32> to vector<8x128xf32>
    %267 = arith.negf %266 : vector<8x128xf32>
    %268 = math.exp %267 : vector<8x128xf32>
    %cst_81 = arith.constant 1.000000e+00 : f32
    %269 = vector.broadcast %cst_81 : f32 to vector<8x128xf32>
    %270 = arith.addf %269, %268 : vector<8x128xf32>
    %271 = arith.divf %269, %270 : vector<8x128xf32>
    %272 = vector.extract_strided_slice %265 {offsets = [0, 128], sizes = [8, 128], strides = [1, 1]} : vector<8x512xf32> to vector<8x128xf32>
    %273 = arith.negf %272 : vector<8x128xf32>
    %274 = math.exp %273 : vector<8x128xf32>
    %cst_82 = arith.constant 1.000000e+00 : f32
    %275 = vector.broadcast %cst_82 : f32 to vector<8x128xf32>
    %276 = arith.addf %275, %274 : vector<8x128xf32>
    %277 = arith.divf %275, %276 : vector<8x128xf32>
    %278 = vector.extract_strided_slice %265 {offsets = [0, 256], sizes = [8, 128], strides = [1, 1]} : vector<8x512xf32> to vector<8x128xf32>
    %279 = math.tanh %278 : vector<8x128xf32>
    %280 = vector.extract_strided_slice %265 {offsets = [0, 384], sizes = [8, 128], strides = [1, 1]} : vector<8x512xf32> to vector<8x128xf32>
    %281 = arith.negf %280 : vector<8x128xf32>
    %282 = math.exp %281 : vector<8x128xf32>
    %cst_83 = arith.constant 1.000000e+00 : f32
    %283 = vector.broadcast %cst_83 : f32 to vector<8x128xf32>
    %284 = arith.addf %283, %282 : vector<8x128xf32>
    %285 = arith.divf %283, %284 : vector<8x128xf32>
    %286 = arith.mulf %277, %256 : vector<8x128xf32>
    %287 = arith.mulf %271, %279 : vector<8x128xf32>
    %288 = arith.addf %286, %287 : vector<8x128xf32>
    %289 = math.tanh %288 : vector<8x128xf32>
    %290 = arith.mulf %285, %289 : vector<8x128xf32>
    %c8_84 = arith.constant 8 : index
    %c0_85 = arith.constant 0 : index
    %c0_86 = arith.constant 0 : index
    %291 = vector.load %arg6[%c8_84, %c0_85, %c0_86] : memref<16x8x128xf32, #tpu.memory_space<vmem>>, vector<1x8x128xf32>
    %292 = vector.shape_cast %291 : vector<1x8x128xf32> to vector<8x128xf32>
    %293 = vector.shape_cast %290 : vector<8x128xf32> to vector<1x8x128xf32>
    tpu.vector_store %arg6[%c8_84, %c0_85, %c0_86], %293 {strides = array<i32>} : memref<16x8x128xf32, #tpu.memory_space<vmem>>, vector<1x8x128xf32>,
    %c9 = arith.constant 9 : index
    %c0_87 = arith.constant 0 : index
    %c0_88 = arith.constant 0 : index
    %294 = vector.load %arg2[%c9, %c0_87, %c0_88] : memref<16x8x512xf32, #tpu.memory_space<vmem>>, vector<1x8x512xf32>
    %295 = vector.shape_cast %294 : vector<1x8x512xf32> to vector<8x512xf32>
    %cst_89 = arith.constant dense<0.000000e+00> : vector<8x512xf32>
    %296 = tpu.matmul %290, %3, %cst_89 {dimension_numbers = #tpu.dot_dimension_numbers<[1], [0], [0], [1], [0, 0, 1, 1], [], []>} : vector<8x128xf32>, vector<128x512xf32>, vector<8x512xf32> -> vector<8x512xf32>
    %297 = arith.addf %295, %296 : vector<8x512xf32>
    %298 = vector.extract_strided_slice %297 {offsets = [0, 0], sizes = [8, 128], strides = [1, 1]} : vector<8x512xf32> to vector<8x128xf32>
    %299 = arith.negf %298 : vector<8x128xf32>
    %300 = math.exp %299 : vector<8x128xf32>
    %cst_90 = arith.constant 1.000000e+00 : f32
    %301 = vector.broadcast %cst_90 : f32 to vector<8x128xf32>
    %302 = arith.addf %301, %300 : vector<8x128xf32>
    %303 = arith.divf %301, %302 : vector<8x128xf32>
    %304 = vector.extract_strided_slice %297 {offsets = [0, 128], sizes = [8, 128], strides = [1, 1]} : vector<8x512xf32> to vector<8x128xf32>
    %305 = arith.negf %304 : vector<8x128xf32>
    %306 = math.exp %305 : vector<8x128xf32>
    %cst_91 = arith.constant 1.000000e+00 : f32
    %307 = vector.broadcast %cst_91 : f32 to vector<8x128xf32>
    %308 = arith.addf %307, %306 : vector<8x128xf32>
    %309 = arith.divf %307, %308 : vector<8x128xf32>
    %310 = vector.extract_strided_slice %297 {offsets = [0, 256], sizes = [8, 128], strides = [1, 1]} : vector<8x512xf32> to vector<8x128xf32>
    %311 = math.tanh %310 : vector<8x128xf32>
    %312 = vector.extract_strided_slice %297 {offsets = [0, 384], sizes = [8, 128], strides = [1, 1]} : vector<8x512xf32> to vector<8x128xf32>
    %313 = arith.negf %312 : vector<8x128xf32>
    %314 = math.exp %313 : vector<8x128xf32>
    %cst_92 = arith.constant 1.000000e+00 : f32
    %315 = vector.broadcast %cst_92 : f32 to vector<8x128xf32>
    %316 = arith.addf %315, %314 : vector<8x128xf32>
    %317 = arith.divf %315, %316 : vector<8x128xf32>
    %318 = arith.mulf %309, %288 : vector<8x128xf32>
    %319 = arith.mulf %303, %311 : vector<8x128xf32>
    %320 = arith.addf %318, %319 : vector<8x128xf32>
    %321 = math.tanh %320 : vector<8x128xf32>
    %322 = arith.mulf %317, %321 : vector<8x128xf32>
    %c9_93 = arith.constant 9 : index
    %c0_94 = arith.constant 0 : index
    %c0_95 = arith.constant 0 : index
    %323 = vector.load %arg6[%c9_93, %c0_94, %c0_95] : memref<16x8x128xf32, #tpu.memory_space<vmem>>, vector<1x8x128xf32>
    %324 = vector.shape_cast %323 : vector<1x8x128xf32> to vector<8x128xf32>
    %325 = vector.shape_cast %322 : vector<8x128xf32> to vector<1x8x128xf32>
    tpu.vector_store %arg6[%c9_93, %c0_94, %c0_95], %325 {strides = array<i32>} : memref<16x8x128xf32, #tpu.memory_space<vmem>>, vector<1x8x128xf32>,
    %c10 = arith.constant 10 : index
    %c0_96 = arith.constant 0 : index
    %c0_97 = arith.constant 0 : index
    %326 = vector.load %arg2[%c10, %c0_96, %c0_97] : memref<16x8x512xf32, #tpu.memory_space<vmem>>, vector<1x8x512xf32>
    %327 = vector.shape_cast %326 : vector<1x8x512xf32> to vector<8x512xf32>
    %cst_98 = arith.constant dense<0.000000e+00> : vector<8x512xf32>
    %328 = tpu.matmul %322, %3, %cst_98 {dimension_numbers = #tpu.dot_dimension_numbers<[1], [0], [0], [1], [0, 0, 1, 1], [], []>} : vector<8x128xf32>, vector<128x512xf32>, vector<8x512xf32> -> vector<8x512xf32>
    %329 = arith.addf %327, %328 : vector<8x512xf32>
    %330 = vector.extract_strided_slice %329 {offsets = [0, 0], sizes = [8, 128], strides = [1, 1]} : vector<8x512xf32> to vector<8x128xf32>
    %331 = arith.negf %330 : vector<8x128xf32>
    %332 = math.exp %331 : vector<8x128xf32>
    %cst_99 = arith.constant 1.000000e+00 : f32
    %333 = vector.broadcast %cst_99 : f32 to vector<8x128xf32>
    %334 = arith.addf %333, %332 : vector<8x128xf32>
    %335 = arith.divf %333, %334 : vector<8x128xf32>
    %336 = vector.extract_strided_slice %329 {offsets = [0, 128], sizes = [8, 128], strides = [1, 1]} : vector<8x512xf32> to vector<8x128xf32>
    %337 = arith.negf %336 : vector<8x128xf32>
    %338 = math.exp %337 : vector<8x128xf32>
    %cst_100 = arith.constant 1.000000e+00 : f32
    %339 = vector.broadcast %cst_100 : f32 to vector<8x128xf32>
    %340 = arith.addf %339, %338 : vector<8x128xf32>
    %341 = arith.divf %339, %340 : vector<8x128xf32>
    %342 = vector.extract_strided_slice %329 {offsets = [0, 256], sizes = [8, 128], strides = [1, 1]} : vector<8x512xf32> to vector<8x128xf32>
    %343 = math.tanh %342 : vector<8x128xf32>
    %344 = vector.extract_strided_slice %329 {offsets = [0, 384], sizes = [8, 128], strides = [1, 1]} : vector<8x512xf32> to vector<8x128xf32>
    %345 = arith.negf %344 : vector<8x128xf32>
    %346 = math.exp %345 : vector<8x128xf32>
    %cst_101 = arith.constant 1.000000e+00 : f32
    %347 = vector.broadcast %cst_101 : f32 to vector<8x128xf32>
    %348 = arith.addf %347, %346 : vector<8x128xf32>
    %349 = arith.divf %347, %348 : vector<8x128xf32>
    %350 = arith.mulf %341, %320 : vector<8x128xf32>
    %351 = arith.mulf %335, %343 : vector<8x128xf32>
    %352 = arith.addf %350, %351 : vector<8x128xf32>
    %353 = math.tanh %352 : vector<8x128xf32>
    %354 = arith.mulf %349, %353 : vector<8x128xf32>
    %c10_102 = arith.constant 10 : index
    %c0_103 = arith.constant 0 : index
    %c0_104 = arith.constant 0 : index
    %355 = vector.load %arg6[%c10_102, %c0_103, %c0_104] : memref<16x8x128xf32, #tpu.memory_space<vmem>>, vector<1x8x128xf32>
    %356 = vector.shape_cast %355 : vector<1x8x128xf32> to vector<8x128xf32>
    %357 = vector.shape_cast %354 : vector<8x128xf32> to vector<1x8x128xf32>
    tpu.vector_store %arg6[%c10_102, %c0_103, %c0_104], %357 {strides = array<i32>} : memref<16x8x128xf32, #tpu.memory_space<vmem>>, vector<1x8x128xf32>,
    %c11 = arith.constant 11 : index
    %c0_105 = arith.constant 0 : index
    %c0_106 = arith.constant 0 : index
    %358 = vector.load %arg2[%c11, %c0_105, %c0_106] : memref<16x8x512xf32, #tpu.memory_space<vmem>>, vector<1x8x512xf32>
    %359 = vector.shape_cast %358 : vector<1x8x512xf32> to vector<8x512xf32>
    %cst_107 = arith.constant dense<0.000000e+00> : vector<8x512xf32>
    %360 = tpu.matmul %354, %3, %cst_107 {dimension_numbers = #tpu.dot_dimension_numbers<[1], [0], [0], [1], [0, 0, 1, 1], [], []>} : vector<8x128xf32>, vector<128x512xf32>, vector<8x512xf32> -> vector<8x512xf32>
    %361 = arith.addf %359, %360 : vector<8x512xf32>
    %362 = vector.extract_strided_slice %361 {offsets = [0, 0], sizes = [8, 128], strides = [1, 1]} : vector<8x512xf32> to vector<8x128xf32>
    %363 = arith.negf %362 : vector<8x128xf32>
    %364 = math.exp %363 : vector<8x128xf32>
    %cst_108 = arith.constant 1.000000e+00 : f32
    %365 = vector.broadcast %cst_108 : f32 to vector<8x128xf32>
    %366 = arith.addf %365, %364 : vector<8x128xf32>
    %367 = arith.divf %365, %366 : vector<8x128xf32>
    %368 = vector.extract_strided_slice %361 {offsets = [0, 128], sizes = [8, 128], strides = [1, 1]} : vector<8x512xf32> to vector<8x128xf32>
    %369 = arith.negf %368 : vector<8x128xf32>
    %370 = math.exp %369 : vector<8x128xf32>
    %cst_109 = arith.constant 1.000000e+00 : f32
    %371 = vector.broadcast %cst_109 : f32 to vector<8x128xf32>
    %372 = arith.addf %371, %370 : vector<8x128xf32>
    %373 = arith.divf %371, %372 : vector<8x128xf32>
    %374 = vector.extract_strided_slice %361 {offsets = [0, 256], sizes = [8, 128], strides = [1, 1]} : vector<8x512xf32> to vector<8x128xf32>
    %375 = math.tanh %374 : vector<8x128xf32>
    %376 = vector.extract_strided_slice %361 {offsets = [0, 384], sizes = [8, 128], strides = [1, 1]} : vector<8x512xf32> to vector<8x128xf32>
    %377 = arith.negf %376 : vector<8x128xf32>
    %378 = math.exp %377 : vector<8x128xf32>
    %cst_110 = arith.constant 1.000000e+00 : f32
    %379 = vector.broadcast %cst_110 : f32 to vector<8x128xf32>
    %380 = arith.addf %379, %378 : vector<8x128xf32>
    %381 = arith.divf %379, %380 : vector<8x128xf32>
    %382 = arith.mulf %373, %352 : vector<8x128xf32>
    %383 = arith.mulf %367, %375 : vector<8x128xf32>
    %384 = arith.addf %382, %383 : vector<8x128xf32>
    %385 = math.tanh %384 : vector<8x128xf32>
    %386 = arith.mulf %381, %385 : vector<8x128xf32>
    %c11_111 = arith.constant 11 : index
    %c0_112 = arith.constant 0 : index
    %c0_113 = arith.constant 0 : index
    %387 = vector.load %arg6[%c11_111, %c0_112, %c0_113] : memref<16x8x128xf32, #tpu.memory_space<vmem>>, vector<1x8x128xf32>
    %388 = vector.shape_cast %387 : vector<1x8x128xf32> to vector<8x128xf32>
    %389 = vector.shape_cast %386 : vector<8x128xf32> to vector<1x8x128xf32>
    tpu.vector_store %arg6[%c11_111, %c0_112, %c0_113], %389 {strides = array<i32>} : memref<16x8x128xf32, #tpu.memory_space<vmem>>, vector<1x8x128xf32>,
    %c12 = arith.constant 12 : index
    %c0_114 = arith.constant 0 : index
    %c0_115 = arith.constant 0 : index
    %390 = vector.load %arg2[%c12, %c0_114, %c0_115] : memref<16x8x512xf32, #tpu.memory_space<vmem>>, vector<1x8x512xf32>
    %391 = vector.shape_cast %390 : vector<1x8x512xf32> to vector<8x512xf32>
    %cst_116 = arith.constant dense<0.000000e+00> : vector<8x512xf32>
    %392 = tpu.matmul %386, %3, %cst_116 {dimension_numbers = #tpu.dot_dimension_numbers<[1], [0], [0], [1], [0, 0, 1, 1], [], []>} : vector<8x128xf32>, vector<128x512xf32>, vector<8x512xf32> -> vector<8x512xf32>
    %393 = arith.addf %391, %392 : vector<8x512xf32>
    %394 = vector.extract_strided_slice %393 {offsets = [0, 0], sizes = [8, 128], strides = [1, 1]} : vector<8x512xf32> to vector<8x128xf32>
    %395 = arith.negf %394 : vector<8x128xf32>
    %396 = math.exp %395 : vector<8x128xf32>
    %cst_117 = arith.constant 1.000000e+00 : f32
    %397 = vector.broadcast %cst_117 : f32 to vector<8x128xf32>
    %398 = arith.addf %397, %396 : vector<8x128xf32>
    %399 = arith.divf %397, %398 : vector<8x128xf32>
    %400 = vector.extract_strided_slice %393 {offsets = [0, 128], sizes = [8, 128], strides = [1, 1]} : vector<8x512xf32> to vector<8x128xf32>
    %401 = arith.negf %400 : vector<8x128xf32>
    %402 = math.exp %401 : vector<8x128xf32>
    %cst_118 = arith.constant 1.000000e+00 : f32
    %403 = vector.broadcast %cst_118 : f32 to vector<8x128xf32>
    %404 = arith.addf %403, %402 : vector<8x128xf32>
    %405 = arith.divf %403, %404 : vector<8x128xf32>
    %406 = vector.extract_strided_slice %393 {offsets = [0, 256], sizes = [8, 128], strides = [1, 1]} : vector<8x512xf32> to vector<8x128xf32>
    %407 = math.tanh %406 : vector<8x128xf32>
    %408 = vector.extract_strided_slice %393 {offsets = [0, 384], sizes = [8, 128], strides = [1, 1]} : vector<8x512xf32> to vector<8x128xf32>
    %409 = arith.negf %408 : vector<8x128xf32>
    %410 = math.exp %409 : vector<8x128xf32>
    %cst_119 = arith.constant 1.000000e+00 : f32
    %411 = vector.broadcast %cst_119 : f32 to vector<8x128xf32>
    %412 = arith.addf %411, %410 : vector<8x128xf32>
    %413 = arith.divf %411, %412 : vector<8x128xf32>
    %414 = arith.mulf %405, %384 : vector<8x128xf32>
    %415 = arith.mulf %399, %407 : vector<8x128xf32>
    %416 = arith.addf %414, %415 : vector<8x128xf32>
    %417 = math.tanh %416 : vector<8x128xf32>
    %418 = arith.mulf %413, %417 : vector<8x128xf32>
    %c12_120 = arith.constant 12 : index
    %c0_121 = arith.constant 0 : index
    %c0_122 = arith.constant 0 : index
    %419 = vector.load %arg6[%c12_120, %c0_121, %c0_122] : memref<16x8x128xf32, #tpu.memory_space<vmem>>, vector<1x8x128xf32>
    %420 = vector.shape_cast %419 : vector<1x8x128xf32> to vector<8x128xf32>
    %421 = vector.shape_cast %418 : vector<8x128xf32> to vector<1x8x128xf32>
    tpu.vector_store %arg6[%c12_120, %c0_121, %c0_122], %421 {strides = array<i32>} : memref<16x8x128xf32, #tpu.memory_space<vmem>>, vector<1x8x128xf32>,
    %c13 = arith.constant 13 : index
    %c0_123 = arith.constant 0 : index
    %c0_124 = arith.constant 0 : index
    %422 = vector.load %arg2[%c13, %c0_123, %c0_124] : memref<16x8x512xf32, #tpu.memory_space<vmem>>, vector<1x8x512xf32>
    %423 = vector.shape_cast %422 : vector<1x8x512xf32> to vector<8x512xf32>
    %cst_125 = arith.constant dense<0.000000e+00> : vector<8x512xf32>
    %424 = tpu.matmul %418, %3, %cst_125 {dimension_numbers = #tpu.dot_dimension_numbers<[1], [0], [0], [1], [0, 0, 1, 1], [], []>} : vector<8x128xf32>, vector<128x512xf32>, vector<8x512xf32> -> vector<8x512xf32>
    %425 = arith.addf %423, %424 : vector<8x512xf32>
    %426 = vector.extract_strided_slice %425 {offsets = [0, 0], sizes = [8, 128], strides = [1, 1]} : vector<8x512xf32> to vector<8x128xf32>
    %427 = arith.negf %426 : vector<8x128xf32>
    %428 = math.exp %427 : vector<8x128xf32>
    %cst_126 = arith.constant 1.000000e+00 : f32
    %429 = vector.broadcast %cst_126 : f32 to vector<8x128xf32>
    %430 = arith.addf %429, %428 : vector<8x128xf32>
    %431 = arith.divf %429, %430 : vector<8x128xf32>
    %432 = vector.extract_strided_slice %425 {offsets = [0, 128], sizes = [8, 128], strides = [1, 1]} : vector<8x512xf32> to vector<8x128xf32>
    %433 = arith.negf %432 : vector<8x128xf32>
    %434 = math.exp %433 : vector<8x128xf32>
    %cst_127 = arith.constant 1.000000e+00 : f32
    %435 = vector.broadcast %cst_127 : f32 to vector<8x128xf32>
    %436 = arith.addf %435, %434 : vector<8x128xf32>
    %437 = arith.divf %435, %436 : vector<8x128xf32>
    %438 = vector.extract_strided_slice %425 {offsets = [0, 256], sizes = [8, 128], strides = [1, 1]} : vector<8x512xf32> to vector<8x128xf32>
    %439 = math.tanh %438 : vector<8x128xf32>
    %440 = vector.extract_strided_slice %425 {offsets = [0, 384], sizes = [8, 128], strides = [1, 1]} : vector<8x512xf32> to vector<8x128xf32>
    %441 = arith.negf %440 : vector<8x128xf32>
    %442 = math.exp %441 : vector<8x128xf32>
    %cst_128 = arith.constant 1.000000e+00 : f32
    %443 = vector.broadcast %cst_128 : f32 to vector<8x128xf32>
    %444 = arith.addf %443, %442 : vector<8x128xf32>
    %445 = arith.divf %443, %444 : vector<8x128xf32>
    %446 = arith.mulf %437, %416 : vector<8x128xf32>
    %447 = arith.mulf %431, %439 : vector<8x128xf32>
    %448 = arith.addf %446, %447 : vector<8x128xf32>
    %449 = math.tanh %448 : vector<8x128xf32>
    %450 = arith.mulf %445, %449 : vector<8x128xf32>
    %c13_129 = arith.constant 13 : index
    %c0_130 = arith.constant 0 : index
    %c0_131 = arith.constant 0 : index
    %451 = vector.load %arg6[%c13_129, %c0_130, %c0_131] : memref<16x8x128xf32, #tpu.memory_space<vmem>>, vector<1x8x128xf32>
    %452 = vector.shape_cast %451 : vector<1x8x128xf32> to vector<8x128xf32>
    %453 = vector.shape_cast %450 : vector<8x128xf32> to vector<1x8x128xf32>
    tpu.vector_store %arg6[%c13_129, %c0_130, %c0_131], %453 {strides = array<i32>} : memref<16x8x128xf32, #tpu.memory_space<vmem>>, vector<1x8x128xf32>,
    %c14 = arith.constant 14 : index
    %c0_132 = arith.constant 0 : index
    %c0_133 = arith.constant 0 : index
    %454 = vector.load %arg2[%c14, %c0_132, %c0_133] : memref<16x8x512xf32, #tpu.memory_space<vmem>>, vector<1x8x512xf32>
    %455 = vector.shape_cast %454 : vector<1x8x512xf32> to vector<8x512xf32>
    %cst_134 = arith.constant dense<0.000000e+00> : vector<8x512xf32>
    %456 = tpu.matmul %450, %3, %cst_134 {dimension_numbers = #tpu.dot_dimension_numbers<[1], [0], [0], [1], [0, 0, 1, 1], [], []>} : vector<8x128xf32>, vector<128x512xf32>, vector<8x512xf32> -> vector<8x512xf32>
    %457 = arith.addf %455, %456 : vector<8x512xf32>
    %458 = vector.extract_strided_slice %457 {offsets = [0, 0], sizes = [8, 128], strides = [1, 1]} : vector<8x512xf32> to vector<8x128xf32>
    %459 = arith.negf %458 : vector<8x128xf32>
    %460 = math.exp %459 : vector<8x128xf32>
    %cst_135 = arith.constant 1.000000e+00 : f32
    %461 = vector.broadcast %cst_135 : f32 to vector<8x128xf32>
    %462 = arith.addf %461, %460 : vector<8x128xf32>
    %463 = arith.divf %461, %462 : vector<8x128xf32>
    %464 = vector.extract_strided_slice %457 {offsets = [0, 128], sizes = [8, 128], strides = [1, 1]} : vector<8x512xf32> to vector<8x128xf32>
    %465 = arith.negf %464 : vector<8x128xf32>
    %466 = math.exp %465 : vector<8x128xf32>
    %cst_136 = arith.constant 1.000000e+00 : f32
    %467 = vector.broadcast %cst_136 : f32 to vector<8x128xf32>
    %468 = arith.addf %467, %466 : vector<8x128xf32>
    %469 = arith.divf %467, %468 : vector<8x128xf32>
    %470 = vector.extract_strided_slice %457 {offsets = [0, 256], sizes = [8, 128], strides = [1, 1]} : vector<8x512xf32> to vector<8x128xf32>
    %471 = math.tanh %470 : vector<8x128xf32>
    %472 = vector.extract_strided_slice %457 {offsets = [0, 384], sizes = [8, 128], strides = [1, 1]} : vector<8x512xf32> to vector<8x128xf32>
    %473 = arith.negf %472 : vector<8x128xf32>
    %474 = math.exp %473 : vector<8x128xf32>
    %cst_137 = arith.constant 1.000000e+00 : f32
    %475 = vector.broadcast %cst_137 : f32 to vector<8x128xf32>
    %476 = arith.addf %475, %474 : vector<8x128xf32>
    %477 = arith.divf %475, %476 : vector<8x128xf32>
    %478 = arith.mulf %469, %448 : vector<8x128xf32>
    %479 = arith.mulf %463, %471 : vector<8x128xf32>
    %480 = arith.addf %478, %479 : vector<8x128xf32>
    %481 = math.tanh %480 : vector<8x128xf32>
    %482 = arith.mulf %477, %481 : vector<8x128xf32>
    %c14_138 = arith.constant 14 : index
    %c0_139 = arith.constant 0 : index
    %c0_140 = arith.constant 0 : index
    %483 = vector.load %arg6[%c14_138, %c0_139, %c0_140] : memref<16x8x128xf32, #tpu.memory_space<vmem>>, vector<1x8x128xf32>
    %484 = vector.shape_cast %483 : vector<1x8x128xf32> to vector<8x128xf32>
    %485 = vector.shape_cast %482 : vector<8x128xf32> to vector<1x8x128xf32>
    tpu.vector_store %arg6[%c14_138, %c0_139, %c0_140], %485 {strides = array<i32>} : memref<16x8x128xf32, #tpu.memory_space<vmem>>, vector<1x8x128xf32>,
    %c15 = arith.constant 15 : index
    %c0_141 = arith.constant 0 : index
    %c0_142 = arith.constant 0 : index
    %486 = vector.load %arg2[%c15, %c0_141, %c0_142] : memref<16x8x512xf32, #tpu.memory_space<vmem>>, vector<1x8x512xf32>
    %487 = vector.shape_cast %486 : vector<1x8x512xf32> to vector<8x512xf32>
    %cst_143 = arith.constant dense<0.000000e+00> : vector<8x512xf32>
    %488 = tpu.matmul %482, %3, %cst_143 {dimension_numbers = #tpu.dot_dimension_numbers<[1], [0], [0], [1], [0, 0, 1, 1], [], []>} : vector<8x128xf32>, vector<128x512xf32>, vector<8x512xf32> -> vector<8x512xf32>
    %489 = arith.addf %487, %488 : vector<8x512xf32>
    %490 = vector.extract_strided_slice %489 {offsets = [0, 0], sizes = [8, 128], strides = [1, 1]} : vector<8x512xf32> to vector<8x128xf32>
    %491 = arith.negf %490 : vector<8x128xf32>
    %492 = math.exp %491 : vector<8x128xf32>
    %cst_144 = arith.constant 1.000000e+00 : f32
    %493 = vector.broadcast %cst_144 : f32 to vector<8x128xf32>
    %494 = arith.addf %493, %492 : vector<8x128xf32>
    %495 = arith.divf %493, %494 : vector<8x128xf32>
    %496 = vector.extract_strided_slice %489 {offsets = [0, 128], sizes = [8, 128], strides = [1, 1]} : vector<8x512xf32> to vector<8x128xf32>
    %497 = arith.negf %496 : vector<8x128xf32>
    %498 = math.exp %497 : vector<8x128xf32>
    %cst_145 = arith.constant 1.000000e+00 : f32
    %499 = vector.broadcast %cst_145 : f32 to vector<8x128xf32>
    %500 = arith.addf %499, %498 : vector<8x128xf32>
    %501 = arith.divf %499, %500 : vector<8x128xf32>
    %502 = vector.extract_strided_slice %489 {offsets = [0, 256], sizes = [8, 128], strides = [1, 1]} : vector<8x512xf32> to vector<8x128xf32>
    %503 = math.tanh %502 : vector<8x128xf32>
    %504 = vector.extract_strided_slice %489 {offsets = [0, 384], sizes = [8, 128], strides = [1, 1]} : vector<8x512xf32> to vector<8x128xf32>
    %505 = arith.negf %504 : vector<8x128xf32>
    %506 = math.exp %505 : vector<8x128xf32>
    %cst_146 = arith.constant 1.000000e+00 : f32
    %507 = vector.broadcast %cst_146 : f32 to vector<8x128xf32>
    %508 = arith.addf %507, %506 : vector<8x128xf32>
    %509 = arith.divf %507, %508 : vector<8x128xf32>
    %510 = arith.mulf %501, %480 : vector<8x128xf32>
    %511 = arith.mulf %495, %503 : vector<8x128xf32>
    %512 = arith.addf %510, %511 : vector<8x128xf32>
    %513 = math.tanh %512 : vector<8x128xf32>
    %514 = arith.mulf %509, %513 : vector<8x128xf32>
    %c15_147 = arith.constant 15 : index
    %c0_148 = arith.constant 0 : index
    %c0_149 = arith.constant 0 : index
    %515 = vector.load %arg6[%c15_147, %c0_148, %c0_149] : memref<16x8x128xf32, #tpu.memory_space<vmem>>, vector<1x8x128xf32>
    %516 = vector.shape_cast %515 : vector<1x8x128xf32> to vector<8x128xf32>
    %517 = vector.shape_cast %514 : vector<8x128xf32> to vector<1x8x128xf32>
    tpu.vector_store %arg6[%c15_147, %c0_148, %c0_149], %517 {strides = array<i32>} : memref<16x8x128xf32, #tpu.memory_space<vmem>>, vector<1x8x128xf32>,
    %c0_150 = arith.constant 0 : index
    %c0_151 = arith.constant 0 : index
    %518 = vector.load %arg9[%c0_150, %c0_151] : memref<8x128xf32, #tpu.memory_space<vmem>>, vector<8x128xf32>
    tpu.vector_store %arg9[%c0_150, %c0_151], %514 {strides = array<i32>} : memref<8x128xf32, #tpu.memory_space<vmem>>, vector<8x128xf32>,
    %c0_152 = arith.constant 0 : index
    %c0_153 = arith.constant 0 : index
    %519 = vector.load %arg10[%c0_152, %c0_153] : memref<8x128xf32, #tpu.memory_space<vmem>>, vector<8x128xf32>
    tpu.vector_store %arg10[%c0_152, %c0_153], %512 {strides = array<i32>} : memref<8x128xf32, #tpu.memory_space<vmem>>, vector<8x128xf32>,
    %c0_i32_154 = arith.constant 0 : i32
    %520 = arith.cmpi eq, %arg1, %c0_i32_154 : i32
    %521 = arith.extui %520 : i1 to i32
    %c0_i32_155 = arith.constant 0 : i32
    %522 = arith.cmpi ne, %521, %c0_i32_155 : i32
    scf.if %522 {
      %c0_156 = arith.constant 0 : index
      %c0_157 = arith.constant 0 : index
      %523 = vector.load %arg7[%c0_156, %c0_157] : memref<8x128xf32, #tpu.memory_space<vmem>>, vector<8x128xf32>
      tpu.vector_store %arg7[%c0_156, %c0_157], %514 {strides = array<i32>} : memref<8x128xf32, #tpu.memory_space<vmem>>, vector<8x128xf32>,
      %c0_158 = arith.constant 0 : index
      %c0_159 = arith.constant 0 : index
      %524 = vector.load %arg8[%c0_158, %c0_159] : memref<8x128xf32, #tpu.memory_space<vmem>>, vector<8x128xf32>
      tpu.vector_store %arg8[%c0_158, %c0_159], %512 {strides = array<i32>} : memref<8x128xf32, #tpu.memory_space<vmem>>, vector<8x128xf32>,
    } else {
    }
    return
  }
  func.func @transform_0(%arg0: i32, %arg1: i32) -> (i32, i32, i32) {
    %c0_i32 = arith.constant 0 : i32
    %c0_i32_0 = arith.constant 0 : i32
    return %arg1, %arg0, %c0_i32 : i32, i32, i32
  }
  func.func @transform_1(%arg0: i32, %arg1: i32) -> (i32, i32) {
    %c0_i32 = arith.constant 0 : i32
    %c0_i32_0 = arith.constant 0 : i32
    return %arg0, %c0_i32 : i32, i32
  }
  func.func @transform_2(%arg0: i32, %arg1: i32) -> (i32, i32) {
    %c0_i32 = arith.constant 0 : i32
    %c0_i32_0 = arith.constant 0 : i32
    return %arg0, %c0_i32 : i32, i32
  }
  func.func @transform_3(%arg0: i32, %arg1: i32) -> (i32, i32) {
    %c0_i32 = arith.constant 0 : i32
    %c0_i32_0 = arith.constant 0 : i32
    %c0_i32_1 = arith.constant 0 : i32
    return %c0_i32, %c0_i32_0 : i32, i32
  }
  func.func @transform_4(%arg0: i32, %arg1: i32) -> (i32, i32, i32) {
    %c0_i32 = arith.constant 0 : i32
    %c0_i32_0 = arith.constant 0 : i32
    return %arg1, %arg0, %c0_i32 : i32, i32, i32
  }
  func.func @transform_5(%arg0: i32, %arg1: i32) -> (i32, i32) {
    %c0_i32 = arith.constant 0 : i32
    %c0_i32_0 = arith.constant 0 : i32
    return %arg0, %c0_i32 : i32, i32
  }
  func.func @transform_6(%arg0: i32, %arg1: i32) -> (i32, i32) {
    %c0_i32 = arith.constant 0 : i32
    %c0_i32_0 = arith.constant 0 : i32
    return %arg0, %c0_i32 : i32, i32
  }
}

</mosaic_0001>

<bundles_post_ra>
// kernel: tpu_custom_call.1
= control target key start
LH: loop header
LB: loop body
LE: loop exit
PB: predicated region body
PF: predicated region fallthrough
CT: control target
= control target key end

     0   :  { %12 = vsyncpa [#allocation5], 0  ;;  %s5024_s0 = inlined_call_operand.hbm [shape: f32[16,8,512], index: 0, kind: input, shape index: {}]   ;;  %s5025_s1 = inlined_call_operand.hbm [shape: f32[8,128], index: 1, kind: input, shape index: {}]   ;;  %s5026_s2 = inlined_call_operand.hbm [shape: f32[8,128], index: 2, kind: input, shape index: {}]   ;;  %s5027_s3 = inlined_call_operand.hbm [shape: f32[128,512], index: 3, kind: input, shape index: {}]   ;;  %s5028_s4 = inlined_call_operand.hbm [shape: f32[16,8,128], index: 4, kind: output, shape index: {0}]   ;;  %s5029_s5 = inlined_call_operand.hbm [shape: f32[8,128], index: 5, kind: output, shape index: {1}]   ;;  %s5030_s6 = inlined_call_operand.hbm [shape: f32[8,128], index: 6, kind: output, shape index: {2}]  }
   0x1   :  { %13 = vsyncpa [#allocation8], 0 }
   0x2   :  { %14 = vsyncpa [#allocation11], 0 }
   0x3   :  { %15 = vsyncpa [#allocation6], 0  ;;  %s35_s23 = sshll.u32 %s5025_s1, 4  ;;  %s36_s23 = int_to_ptr.hbm [resolvable:$true] %s35_s23 }
   0x4   :  { %16 = vsyncpa [#allocation14], 0  ;;  %s3361_s24 = smov [#allocation7]   ;;  %s21_s28 = sshll.u32 %s5024_s0, 4  ;;  %s22_s28 = int_to_ptr.hbm [resolvable:$true] %s21_s28 }
   0x5   :  { %s37_s25 = sshll.u32 %s3361_s24, 4  ;;  %s3362_s29 = smov [#allocation4]   ;;  %s38_s25 = int_to_ptr.vmem [resolvable:$true] %s37_s25 }
   0x6   :  { %40 = dma.hbm_to_vmem [thread:$0]  %s36_s23, 128, %s38_s25, [#allocation8]  }
   0x7   :  { %s23_s30 = sshll.u32 %s3362_s29, 4  ;;  %s3363_s7 = smov 512   ;;  %s24_s30 = int_to_ptr.vmem [resolvable:$true] %s23_s30 }
   0x8   :  { %s3364_s8 = smov 32   ;;  %s46_s1 = sshll.u32 %s5026_s2, 4  ;;  %s47_s1 = int_to_ptr.hbm [resolvable:$true] %s46_s1 }
   0x9   :  { %29 = dma.hbm_to_vmem [thread:$0]  %s22_s28, 8192, %s24_s30, [#allocation5], %s3363_s7, %s3363_s7, %s3364_s8  }
   0xa   :  { %s3365_s11 = smov [#allocation9]   ;;  %s56_s0 = sshll.u32 %s5027_s3, 4  ;;  %s57_s0 = int_to_ptr.hbm [resolvable:$true] %s56_s0 }
   0xb   :  { %s48_s12 = sshll.u32 %s3365_s11, 4  ;;  %s3366_s15 = smov [#allocation10]   ;;  %s49_s12 = int_to_ptr.vmem [resolvable:$true] %s48_s12 }
   0xc   :  { %51 = dma.hbm_to_vmem [thread:$0]  %s47_s1, 128, %s49_s12, [#allocation8]  }
   0xd   :  { %s58_s16 = sshll.u32 %s3366_s15, 4  ;;  %s59_s16 = int_to_ptr.vmem [resolvable:$true] %s58_s16 }
   0xe   :  { %64 = dma.hbm_to_vmem [thread:$0]  %s57_s0, 8192, %s59_s16, [#allocation11], %s3363_s7, %s3363_s7, %s3364_s8  }
   0xf   :  { %3351 = dma.done.wait [#allocation5], 8192  }
  0x10   :  { %3352 = vsyncadd [#allocation5], 4294959104 }
  0x11   :  { %3353 = dma.done.wait [#allocation8], 256  }
  0x12   :  { %3354 = vsyncadd [#allocation8], 4294967040 }
  0x13   :  { %3355 = dma.done.wait [#allocation11], 8192  }
  0x14   :  { %3356 = vsyncadd [#allocation11], 4294959104  ;;  %v3419_v0 = vld [vmem:[#allocation10 + $0x1e0] sm:$0xff]  ;;  %v3421_v1 = vld [vmem:[#allocation10 + $0x1e8] sm:$0xff]  ;;  %s3367_s2 = smov [#allocation12]   ;;  %s2630_s19 = sshll.u32 %s5028_s4, 4  ;;  %s2631_s19 = int_to_ptr.hbm [resolvable:$true] %s2630_s19 }
  0x15   :  { %5243 = vst [vmem:[#allocation21_spill] sm:$0xff] %v3419_v0  ;;  %v3423_v2 = vld [vmem:[#allocation10 + $0x1f8] sm:$0xff]  ;;  %159 = vmatpush.msra.mxu0 %v3419_v0  ;;  %179 = vmatpush.msra.mxu1 %v3421_v1  ;;  %v3427_v3 = vld [vmem:[#allocation10 + $0x1c0] sm:$0xff]  ;;  %v3429_v4 = vld [vmem:[#allocation10 + $0x1c8] sm:$0xff]  ;;  %s2628_s3 = sshll.u32 %s3367_s2, 4  ;;  %s3368_s20 = smov [#allocation13]   ;;  %s2629_s3 = int_to_ptr.vmem [resolvable:$true] %s2628_s3 }
  0x16   :  { %v3431_v5 = vld [vmem:[#allocation10 + $0x1d8] sm:$0xff]  ;;  %219 = vmatpush.msra.mxu3 %v3423_v2  ;;  %v3434_v6 = vld [vmem:[#allocation10 + $0x1a0] sm:$0xff]  ;;  %v3436_v7 = vld [vmem:[#allocation10 + $0x1a8] sm:$0xff]  ;;  %s2642_s21 = sshll.u32 %s3368_s20, 4  ;;  %s2644_s24 = sshll.u32 %s5029_s5, 4  ;;  %s2643_s21 = int_to_ptr.vmem [resolvable:$true] %s2642_s21  ;;  %s2645_s24 = int_to_ptr.hbm [resolvable:$true] %s2644_s24 }
  0x17   :  { %160 = vmatpush.msra.mxu0 %v3427_v3  ;;  %180 = vmatpush.msra.mxu1 %v3429_v4  ;;  %v3440_v8 = vld [vmem:[#allocation10 + $0x1b8] sm:$0xff]  ;;  %v3443_v9 = vld [vmem:[#allocation10 + $0x180] sm:$0xff]  ;;  %v3445_v10 = vld [vmem:[#allocation10 + $0x188] sm:$0xff]  ;;  %s3369_s25 = smov [#allocation15]   ;;  %s2655_s29 = sshll.u32 %s5030_s6, 4  ;;  %s2656_s29 = int_to_ptr.hbm [resolvable:$true] %s2655_s29 }
  0x18   :  { %220 = vmatpush.msra.mxu3 %v3431_v5  ;;  %v3449_v11 = vld [vmem:[#allocation10 + $0x198] sm:$0xff]  ;;  %v3452_v12 = vld [vmem:[#allocation10 + $0x160] sm:$0xff]  ;;  %v3454_v13 = vld [vmem:[#allocation10 + $0x168] sm:$0xff]  ;;  %s2653_s26 = sshll.u32 %s3369_s25, 4  ;;  %s3370_s4 = smov 128   ;;  %s2654_s26 = int_to_ptr.vmem [resolvable:$true] %s2653_s26 }
  0x19   :  { %161 = vmatpush.msra.mxu0 %v3434_v6  ;;  %181 = vmatpush.msra.mxu1 %v3436_v7  ;;  %v3458_v14 = vld [vmem:[#allocation10 + $0x178] sm:$0xff]  ;;  %v3461_v15 = vld [vmem:[#allocation10 + $0x140] sm:$0xff]  ;;  %v3463_v16 = vld [vmem:[#allocation10 + $0x148] sm:$0xff]  ;;  %s3371_s5 = smov 8  }
  0x1a   :  { %221 = vmatpush.msra.mxu3 %v3440_v8  ;;  %v3465_v17 = vld [vmem:[#allocation10 + $0x1f0] sm:$0xff]  ;;  %v3469_v18 = vld [vmem:[#allocation10 + $0x158] sm:$0xff]  ;;  %v3474_v20 = vld [vmem:[#allocation10 + $0x120] sm:$0xff] }
  0x1b   :  { %162 = vmatpush.msra.mxu0 %v3443_v9  ;;  %182 = vmatpush.msra.mxu1 %v3445_v10  ;;  %v3471_v19 = vld [vmem:[#allocation10 + $0x1d0] sm:$0xff]  ;;  %v3476_v21 = vld [vmem:[#allocation10 + $0x128] sm:$0xff]  ;;  %v3481_v22 = vld [vmem:[#allocation10 + $0x138] sm:$0xff] }
  0x1c   :  { %222 = vmatpush.msra.mxu3 %v3449_v11  ;;  %199 = vmatpush.msra.mxu2 %v3465_v17  ;;  %v3483_v23 = vld [vmem:[#allocation10 + $0x1b0] sm:$0xff]  ;;  %v3486_v24 = vld [vmem:[#allocation10 + $0x100] sm:$0xff]  ;;  %v3488_v25 = vld [vmem:[#allocation10 + $0x108] sm:$0xff] }
  0x1d   :  { %163 = vmatpush.msra.mxu0 %v3452_v12  ;;  %183 = vmatpush.msra.mxu1 %v3454_v13  ;;  %v3493_v26 = vld [vmem:[#allocation10 + $0x118] sm:$0xff]  ;;  %v3495_v27 = vld [vmem:[#allocation10 + $0x190] sm:$0xff]  ;;  %v3498_v28 = vld [vmem:[#allocation10 + $0xe0] sm:$0xff] }
  0x1e   :  { %223 = vmatpush.msra.mxu3 %v3458_v14  ;;  %200 = vmatpush.msra.mxu2 %v3471_v19  ;;  %v3500_v29 = vld [vmem:[#allocation10 + $0xe8] sm:$0xff]  ;;  %v3505_v30 = vld [vmem:[#allocation10 + $0xf8] sm:$0xff]  ;;  %v3507_v31 = vld [vmem:[#allocation10 + $0x170] sm:$0xff] }
  0x1f   :  { %164 = vmatpush.msra.mxu0 %v3461_v15  ;;  %184 = vmatpush.msra.mxu1 %v3463_v16  ;;  %v3510_v32 = vld [vmem:[#allocation10 + $0xc0] sm:$0xff]  ;;  %v3512_v33 = vld [vmem:[#allocation10 + $0xc8] sm:$0xff]  ;;  %v3517_v34 = vld [vmem:[#allocation10 + $0xd8] sm:$0xff] }
  0x20   :  { %224 = vmatpush.msra.mxu3 %v3469_v18  ;;  %201 = vmatpush.msra.mxu2 %v3483_v23  ;;  %5244 = vst [vmem:[#allocation22_spill] sm:$0xff] %v3512_v33  ;;  %v3519_v35 = vld [vmem:[#allocation10 + $0x150] sm:$0xff]  ;;  %v3522_v36 = vld [vmem:[#allocation10 + $0xa0] sm:$0xff]  ;;  %v3524_v37 = vld [vmem:[#allocation10 + $0xa8] sm:$0xff] }
  0x21   :  { %165 = vmatpush.msra.mxu0 %v3474_v20  ;;  %185 = vmatpush.msra.mxu1 %v3476_v21  ;;  %5245 = vst [vmem:[#allocation23_spill] sm:$0xff] %v3517_v34  ;;  %v3529_v38 = vld [vmem:[#allocation10 + $0xb8] sm:$0xff]  ;;  %v3531_v39 = vld [vmem:[#allocation10 + $0x130] sm:$0xff]  ;;  %v3534_v40 = vld [vmem:[#allocation10 + $0x80] sm:$0xff] }
  0x22   :  { %225 = vmatpush.msra.mxu3 %v3481_v22  ;;  %202 = vmatpush.msra.mxu2 %v3495_v27  ;;  %5246 = vst [vmem:[#allocation24_spill] sm:$0xff] %v3522_v36  ;;  %v3536_v41 = vld [vmem:[#allocation10 + $0x88] sm:$0xff]  ;;  %v3541_v42 = vld [vmem:[#allocation10 + $0x98] sm:$0xff]  ;;  %v3543_v43 = vld [vmem:[#allocation10 + $0x110] sm:$0xff] }
  0x23   :  { %166 = vmatpush.msra.mxu0 %v3486_v24  ;;  %186 = vmatpush.msra.mxu1 %v3488_v25  ;;  %5247 = vst [vmem:[#allocation25_spill] sm:$0xff] %v3524_v37  ;;  %v3546_v44 = vld [vmem:[#allocation10 + $0x60] sm:$0xff]  ;;  %v3548_v45 = vld [vmem:[#allocation10 + $0x68] sm:$0xff]  ;;  %v3553_v46 = vld [vmem:[#allocation10 + $0x78] sm:$0xff] }
  0x24   :  { %226 = vmatpush.msra.mxu3 %v3493_v26  ;;  %203 = vmatpush.msra.mxu2 %v3507_v31  ;;  %5248 = vst [vmem:[#allocation26_spill] sm:$0xff] %v3529_v38  ;;  %v3555_v47 = vld [vmem:[#allocation10 + $0xf0] sm:$0xff]  ;;  %v3558_v48 = vld [vmem:[#allocation10 + $0x40] sm:$0xff]  ;;  %v3560_v49 = vld [vmem:[#allocation10 + $0x48] sm:$0xff] }
  0x25   :  { %167 = vmatpush.msra.mxu0 %v3498_v28  ;;  %187 = vmatpush.msra.mxu1 %v3500_v29  ;;  %5249 = vst [vmem:[#allocation27_spill] sm:$0xff] %v3534_v40  ;;  %v3565_v50 = vld [vmem:[#allocation10 + $0x58] sm:$0xff]  ;;  %v3567_v51 = vld [vmem:[#allocation10 + $0xd0] sm:$0xff]  ;;  %v3570_v52 = vld [vmem:[#allocation10 + $0x20] sm:$0xff] }
  0x26   :  { %227 = vmatpush.msra.mxu3 %v3505_v30  ;;  %5250 = vst [vmem:[#allocation28_spill] sm:$0xff] %v3536_v41  ;;  %204 = vmatpush.msra.mxu2 %v3519_v35  ;;  %v3572_v53 = vld [vmem:[#allocation10 + $0x28] sm:$0xff]  ;;  %v3577_v54 = vld [vmem:[#allocation10 + $0x38] sm:$0xff]  ;;  %v3579_v55 = vld [vmem:[#allocation10 + $0xb0] sm:$0xff] }
  0x27   :  { %168 = vmatpush.msra.mxu0 %v3510_v32  ;;  %188 = vmatpush.msra.mxu1 %v3512_v33  ;;  %5251 = vst [vmem:[#allocation29_spill] sm:$0xff] %v3541_v42  ;;  %v3582_v56 = vld [vmem:[#allocation10] sm:$0xff]  ;;  %v3584_v57 = vld [vmem:[#allocation10 + $0x8] sm:$0xff]  ;;  %v3589_v58 = vld [vmem:[#allocation10 + $0x18] sm:$0xff] }
  0x28   :  { %228 = vmatpush.msra.mxu3 %v3517_v34  ;;  %5252 = vst [vmem:[#allocation30_spill] sm:$0xff] %v3546_v44  ;;  %205 = vmatpush.msra.mxu2 %v3531_v39  ;;  %v85_v59 = vld [vmem:[#allocation7] sm:$0xff] }
  0x29   :  { %169 = vmatpush.msra.mxu0 %v3522_v36  ;;  %189 = vmatpush.msra.mxu1 %v3524_v37  ;;  %5253 = vst [vmem:[#allocation31_spill] sm:$0xff] %v3548_v45  ;;  %v3595_v60 = vld [vmem:[#allocation10 + $0x90] sm:$0xff] }
  0x2a   :  { %229 = vmatpush.msra.mxu3 %v3529_v38  ;;  %5254 = vst [vmem:[#allocation32_spill] sm:$0xff] %v3553_v46  ;;  %206 = vmatpush.msra.mxu2 %v3543_v43  ;;  %v3598_v61 = vld [vmem:[#allocation10 + $0x70] sm:$0xff] }
  0x2b   :  { %170 = vmatpush.msra.mxu0 %v3534_v40  ;;  %190 = vmatpush.msra.mxu1 %v3536_v41  ;;  %5255 = vst [vmem:[#allocation33_spill] sm:$0xff] %v3558_v48  ;;  %v3602_v62 = vld [vmem:[#allocation10 + $0x50] sm:$0xff] }
  0x2c   :  { %230 = vmatpush.msra.mxu3 %v3541_v42  ;;  %5256 = vst [vmem:[#allocation34_spill] sm:$0xff] %v3560_v49  ;;  %207 = vmatpush.msra.mxu2 %v3555_v47  ;;  %v3608_v63 = vld [vmem:[#allocation10 + $0x30] sm:$0xff] }
  0x2d   :  { %171 = vmatpush.msra.mxu0 %v3546_v44  ;;  %191 = vmatpush.msra.mxu1 %v3548_v45  ;;  %5257 = vst [vmem:[#allocation35_spill] sm:$0xff] %v3565_v50 }
  0x2e   :  { %5258 = vst [vmem:[#allocation36_spill] sm:$0xff] %v3567_v51  ;;  %231 = vmatpush.msra.mxu3 %v3553_v46  ;;  %208 = vmatpush.msra.mxu2 %v3567_v51 }
  0x2f   :  { %5259 = vst [vmem:[#allocation37_spill] sm:$0xff] %v3570_v52  ;;  %172 = vmatpush.msra.mxu0 %v3558_v48  ;;  %192 = vmatpush.msra.mxu1 %v3560_v49 }
  0x30   :  { %5260 = vst [vmem:[#allocation38_spill] sm:$0xff] %v3572_v53  ;;  %232 = vmatpush.msra.mxu3 %v3565_v50  ;;  %209 = vmatpush.msra.mxu2 %v3579_v55 }
  0x31   :  { %5261 = vst [vmem:[#allocation39_spill] sm:$0xff] %v3577_v54  ;;  %173 = vmatpush.msra.mxu0 %v3570_v52  ;;  %193 = vmatpush.msra.mxu1 %v3572_v53 }
  0x32   :  { %5262 = vst [vmem:[#allocation40_spill] sm:$0xff] %v3579_v55  ;;  %233 = vmatpush.msra.mxu3 %v3577_v54  ;;  %210 = vmatpush.msra.mxu2 %v3595_v60 }
  0x33   :  { %5263 = vst [vmem:[#allocation41_spill] sm:$0xff] %v3582_v56  ;;  %174 = vmatpush.msra.mxu0 %v3582_v56  ;;  %194 = vmatpush.msra.mxu1 %v3584_v57 }
  0x34   :  { %5264 = vst [vmem:[#allocation42_spill] sm:$0xff] %v3584_v57  ;;  %234 = vmatpush.msra.mxu3 %v3589_v58  ;;  %175 = vmatmul.f32.vlgmr.msra.gmra.mxu0 %v85_v59 }
  0x35   :  { %5265 = vst [vmem:[#allocation43_spill] sm:$0xff] %v3589_v58  ;;  %195 = vmatmul.f32.vlgmr.msra.gmra.mxu1 %v85_v59  ;;  %235 = vmatmul.f32.vlgmr.msra.gmra.mxu3 %v85_v59 }
  0x36   :  { %5266 = vst [vmem:[#allocation44_spill] sm:$0xff] %v3595_v60  ;;  %312 = vmatpush.msrb.mxu0 %v3419_v0  ;;  %332 = vmatpush.msrb.mxu1 %v3421_v1  ;;  %v3614_v0 = vld [vmem:[#allocation10 + $0x10] sm:$0xff] }
  0x37   :  { %5267 = vst [vmem:[#allocation45_spill] sm:$0xff] %v3598_v61  ;;  %372 = vmatpush.msrb.mxu3 %v3423_v2  ;;  %211 = vmatpush.msra.mxu2 %v3598_v61 }
  0x38   :  { %5268 = vst [vmem:[#allocation46_spill] sm:$0xff] %v3602_v62  ;;  %313 = vmatpush.msrb.mxu0 %v3427_v3  ;;  %333 = vmatpush.msrb.mxu1 %v3429_v4 }
  0x39   :  { %5269 = vst [vmem:[#allocation47_spill] sm:$0xff] %v3608_v63  ;;  %373 = vmatpush.msrb.mxu3 %v3431_v5  ;;  %212 = vmatpush.msra.mxu2 %v3602_v62 }
  0x3a   :  { %314 = vmatpush.msrb.mxu0 %v3434_v6  ;;  %5270 = vst [vmem:[#allocation48_spill] sm:$0xff] %v3614_v0  ;;  %334 = vmatpush.msrb.mxu1 %v3436_v7 }
  0x3b   :  { %374 = vmatpush.msrb.mxu3 %v3440_v8  ;;  %213 = vmatpush.msra.mxu2 %v3608_v63 }
  0x3c   :  { %315 = vmatpush.msrb.mxu0 %v3443_v9  ;;  %335 = vmatpush.msrb.mxu1 %v3445_v10 }
  0x3d   :  { %375 = vmatpush.msrb.mxu3 %v3449_v11  ;;  %214 = vmatpush.msra.mxu2 %v3614_v0 }
  0x3e   :  { %316 = vmatpush.msrb.mxu0 %v3452_v12  ;;  %215 = vmatmul.f32.vlgmr.msra.gmra.mxu2 %v85_v59  ;;  %v5271_v59 = vld [vmem:[#allocation21_spill] sm:$0xff] }
  0x3f   :  { %336 = vmatpush.msrb.mxu1 %v3454_v13  ;;  %352 = vmatpush.msrb.mxu2 %v3465_v17 }
  0x40   :  { %376 = vmatpush.msrb.mxu3 %v3458_v14  ;;  %317 = vmatpush.msrb.mxu0 %v3461_v15 }
  0x41   :  { %337 = vmatpush.msrb.mxu1 %v3463_v16  ;;  %353 = vmatpush.msrb.mxu2 %v3471_v19 }
  0x42   :  { %377 = vmatpush.msrb.mxu3 %v3469_v18  ;;  %318 = vmatpush.msrb.mxu0 %v3474_v20 }
  0x43   :  { %338 = vmatpush.msrb.mxu1 %v3476_v21  ;;  %354 = vmatpush.msrb.mxu2 %v3483_v23 }
  0x44   :  { %378 = vmatpush.msrb.mxu3 %v3481_v22  ;;  %319 = vmatpush.msrb.mxu0 %v3486_v24 }
  0x45   :  { %339 = vmatpush.msrb.mxu1 %v3488_v25  ;;  %355 = vmatpush.msrb.mxu2 %v3495_v27 }
  0x46   :  { %379 = vmatpush.msrb.mxu3 %v3493_v26  ;;  %320 = vmatpush.msrb.mxu0 %v3498_v28 }
  0x47   :  { %340 = vmatpush.msrb.mxu1 %v3500_v29  ;;  %356 = vmatpush.msrb.mxu2 %v3507_v31 }
  0x48   :  { %380 = vmatpush.msrb.mxu3 %v3505_v30  ;;  %321 = vmatpush.msrb.mxu0 %v3510_v32 }
  0x49   :  { %341 = vmatpush.msrb.mxu1 %v3512_v33  ;;  %357 = vmatpush.msrb.mxu2 %v3519_v35 }
  0x4a   :  { %381 = vmatpush.msrb.mxu3 %v3517_v34  ;;  %322 = vmatpush.msrb.mxu0 %v3522_v36 }
  0x4b   :  { %342 = vmatpush.msrb.mxu1 %v3524_v37  ;;  %358 = vmatpush.msrb.mxu2 %v3531_v39 }
  0x4c   :  { %382 = vmatpush.msrb.mxu3 %v3529_v38  ;;  %323 = vmatpush.msrb.mxu0 %v3534_v40 }
  0x4d   :  { %343 = vmatpush.msrb.mxu1 %v3536_v41  ;;  %359 = vmatpush.msrb.mxu2 %v3543_v43 }
  0x4e   :  { %383 = vmatpush.msrb.mxu3 %v3541_v42  ;;  %324 = vmatpush.msrb.mxu0 %v3546_v44 }
  0x4f   :  { %344 = vmatpush.msrb.mxu1 %v3548_v45  ;;  %360 = vmatpush.msrb.mxu2 %v3555_v47 }
  0x50   :  { %384 = vmatpush.msrb.mxu3 %v3553_v46  ;;  %325 = vmatpush.msrb.mxu0 %v3558_v48 }
  0x51   :  { %345 = vmatpush.msrb.mxu1 %v3560_v49  ;;  %361 = vmatpush.msrb.mxu2 %v3567_v51 }
  0x52   :  { %385 = vmatpush.msrb.mxu3 %v3565_v50  ;;  %326 = vmatpush.msrb.mxu0 %v3570_v52 }
  0x53   :  { %346 = vmatpush.msrb.mxu1 %v3572_v53  ;;  %362 = vmatpush.msrb.mxu2 %v3579_v55 }
  0x54   :  { %386 = vmatpush.msrb.mxu3 %v3577_v54  ;;  %327 = vmatpush.msrb.mxu0 %v3582_v56 }
  0x55   :  { %347 = vmatpush.msrb.mxu1 %v3584_v57  ;;  %363 = vmatpush.msrb.mxu2 %v3595_v60 }
  0x56   :  { %387 = vmatpush.msrb.mxu3 %v3589_v58  ;;  %466 = vmatpush.msra.mxu0 %v5271_v59 }
  0x57   :  { %486 = vmatpush.msra.mxu1 %v3421_v1  ;;  %364 = vmatpush.msrb.mxu2 %v3598_v61 }
  0x58   :  { %526 = vmatpush.msra.mxu3 %v3423_v2  ;;  %467 = vmatpush.msra.mxu0 %v3427_v3 }
  0x59   :  { %487 = vmatpush.msra.mxu1 %v3429_v4  ;;  %365 = vmatpush.msrb.mxu2 %v3602_v62 }
  0x5a   :  { %527 = vmatpush.msra.mxu3 %v3431_v5  ;;  %468 = vmatpush.msra.mxu0 %v3434_v6 }
  0x5b   :  { %488 = vmatpush.msra.mxu1 %v3436_v7  ;;  %366 = vmatpush.msrb.mxu2 %v3608_v63 }
  0x5c   :  { %528 = vmatpush.msra.mxu3 %v3440_v8  ;;  %469 = vmatpush.msra.mxu0 %v3443_v9 }
  0x5d   :  { %489 = vmatpush.msra.mxu1 %v3445_v10  ;;  %367 = vmatpush.msrb.mxu2 %v3614_v0 }
  0x5e   :  { %529 = vmatpush.msra.mxu3 %v3449_v11  ;;  %470 = vmatpush.msra.mxu0 %v3452_v12 }
  0x5f   :  { %506 = vmatpush.msra.mxu2 %v3465_v17  ;;  %490 = vmatpush.msra.mxu1 %v3454_v13 }
  0x60   :  { %530 = vmatpush.msra.mxu3 %v3458_v14  ;;  %471 = vmatpush.msra.mxu0 %v3461_v15 }
  0x61   :  { %507 = vmatpush.msra.mxu2 %v3471_v19  ;;  %491 = vmatpush.msra.mxu1 %v3463_v16 }
  0x62   :  { %531 = vmatpush.msra.mxu3 %v3469_v18  ;;  %472 = vmatpush.msra.mxu0 %v3474_v20 }
  0x63   :  { %508 = vmatpush.msra.mxu2 %v3483_v23  ;;  %492 = vmatpush.msra.mxu1 %v3476_v21 }
  0x64   :  { %532 = vmatpush.msra.mxu3 %v3481_v22  ;;  %473 = vmatpush.msra.mxu0 %v3486_v24 }
  0x65   :  { %509 = vmatpush.msra.mxu2 %v3495_v27  ;;  %493 = vmatpush.msra.mxu1 %v3488_v25 }
  0x66   :  { %533 = vmatpush.msra.mxu3 %v3493_v26  ;;  %474 = vmatpush.msra.mxu0 %v3498_v28 }
  0x67   :  { %510 = vmatpush.msra.mxu2 %v3507_v31  ;;  %494 = vmatpush.msra.mxu1 %v3500_v29 }
  0x68   :  { %534 = vmatpush.msra.mxu3 %v3505_v30  ;;  %475 = vmatpush.msra.mxu0 %v3510_v32 }
  0x69   :  { %511 = vmatpush.msra.mxu2 %v3519_v35  ;;  %495 = vmatpush.msra.mxu1 %v3512_v33 }
  0x6a   :  { %535 = vmatpush.msra.mxu3 %v3517_v34  ;;  %476 = vmatpush.msra.mxu0 %v3522_v36 }
  0x6b   :  { %512 = vmatpush.msra.mxu2 %v3531_v39  ;;  %496 = vmatpush.msra.mxu1 %v3524_v37 }
  0x6c   :  { %536 = vmatpush.msra.mxu3 %v3529_v38  ;;  %477 = vmatpush.msra.mxu0 %v3534_v40 }
  0x6d   :  { %513 = vmatpush.msra.mxu2 %v3543_v43  ;;  %497 = vmatpush.msra.mxu1 %v3536_v41 }
  0x6e   :  { %537 = vmatpush.msra.mxu3 %v3541_v42  ;;  %478 = vmatpush.msra.mxu0 %v3546_v44 }
  0x6f   :  { %514 = vmatpush.msra.mxu2 %v3555_v47  ;;  %498 = vmatpush.msra.mxu1 %v3548_v45 }
  0x70   :  { %538 = vmatpush.msra.mxu3 %v3553_v46  ;;  %479 = vmatpush.msra.mxu0 %v3558_v48 }
  0x71   :  { %515 = vmatpush.msra.mxu2 %v3567_v51  ;;  %499 = vmatpush.msra.mxu1 %v3560_v49 }
  0x72   :  { %539 = vmatpush.msra.mxu3 %v3565_v50  ;;  %480 = vmatpush.msra.mxu0 %v3570_v52  ;;  %v155_v52 = vld [vmem:[#allocation4] sm:$0xff] }
  0x73   :  { %516 = vmatpush.msra.mxu2 %v3579_v55  ;;  %500 = vmatpush.msra.mxu1 %v3572_v53  ;;  %v156_v53 = vld [vmem:[#allocation4 + $0x8] sm:$0xff] }
  0x74   :  { %540 = vmatpush.msra.mxu3 %v3577_v54  ;;  %481 = vmatpush.msra.mxu0 %v3582_v56 }
  0x75   :  { %517 = vmatpush.msra.mxu2 %v3595_v60  ;;  %501 = vmatpush.msra.mxu1 %v3584_v57  ;;  %v158_v57 = vld [vmem:[#allocation4 + $0x18] sm:$0xff] }
  0x76   :  { %541 = vmatpush.msra.mxu3 %v3589_v58 }
  0x77   :  { %518 = vmatpush.msra.mxu2 %v3598_v61 }
  0x79   :  { %519 = vmatpush.msra.mxu2 %v3602_v62 }
  0x7b   :  { %520 = vmatpush.msra.mxu2 %v3608_v63 }
  0x7d   :  { %521 = vmatpush.msra.mxu2 %v3614_v0  ;;  %v157_v0 = vld [vmem:[#allocation4 + $0x10] sm:$0xff] }
  0xb1   :  { %v176_v50 = vpop.f32.mrf.mxu0 }
  0xb2   :  { %v239_v54 = vadd.f32 %v176_v50, %v155_v52  ;;  %v196_v49 = vpop.f32.mrf.mxu1 }
  0xb3   :  { %v240_v48 = vadd.f32 %v196_v49, %v156_v53 }
  0xb4   :  { %v2676_v46 = vmul.f32 -1.442695, %v239_v54 }
  0xb5   :  { %v2677_v56 = vmul.f32 -1.442695, %v240_v48 }
  0xb6   :  { %2735 = vpow2.f32 %v2676_v46 }
  0xb7   :  { %2737 = vpow2.f32 %v2677_v56 }
  0xb8   :  { %v236_v58 = vpop.f32.mrf.mxu3 }
  0xb9   :  { %v242_v45 = vadd.f32 %v236_v58, %v158_v57 }
  0xbb   :  { %v2678_v61 = vmul.f32 -1.442695, %v242_v45 }
  0xbc   :  { %v2736_v44 = vpop.eup %2735 }
  0xbd   :  { %v2738_v62 = vpop.eup %2737  ;;  %v246_v42 = vadd.f32 1.0, %v2736_v44  ;;  %2739 = vpow2.f32 %v2678_v61 }
  0xbe   :  { %v265_v63 = vadd.f32 1.0, %v2738_v62 }
  0xbf   :  { %2741 = vrcp.f32 %v246_v42  ;;  %v258_v57 = vand.u32 2147483648, %v246_v42  ;;  %v256_v61 = vand.u32 2147483647, %v246_v42  ;;  %vm252_vm2 = vweird.f32 %v246_v42 }
  0xc0   :  { %2743 = vrcp.f32 %v265_v63  ;;  %v277_v58 = vand.u32 2147483648, %v265_v63  ;;  %v275_v41 = vand.u32 2147483647, %v265_v63  ;;  %vm271_vm3 = vweird.f32 %v265_v63 }
  0xc1   :  { %v216_v60 = vpop.f32.mrf.mxu2  ;;  %vm257_vm6 = vcmp.eq.f32.partialorder %v256_v61, 8.507059e+37  ;;  %v5280_v61 = vld [vmem:[#allocation28_spill] sm:$0xff] }
  0xc2   :  { %v241_v52 = vadd.f32 %v216_v60, %v157_v0  ;;  %vm276_vm7 = vcmp.eq.f32.partialorder %v275_v41, 8.507059e+37 }
  0xc3   :  { %v2740_v50 = vpop.eup %2739 }
  0xc4   :  { %v285_v49 = vadd.f32 1.0, %v2740_v50  ;;  %v259_v50 = vor.u32 1.1754944e-38, %v258_v57 }
  0xc5   :  { %v2742_v53 = vpop.eup %2741 }
  0xc6   :  { %v2744_v48 = vpop.eup %2743  ;;  %v248_v46 = vmul.f32 %v2742_v53, %v246_v42  ;;  %2745 = vrcp.f32 %v285_v49  ;;  %vm253_vm0 = vweird.f32 %v2742_v53  ;;  %v297_v33 = vand.u32 2147483648, %v285_v49 }
  0xc7   :  { %v267_v54 = vmul.f32 %v2744_v48, %v265_v63  ;;  %2747 = vtanh.f32 %v241_v52  ;;  %vm272_vm1 = vweird.f32 %v2744_v48  ;;  %vm254_vm4 = vmor %vm252_vm2, %vm253_vm0  ;;  %v278_v52 = vor.u32 1.1754944e-38, %v277_v58 }
  0xc8   :  { %v249_v56 = vsub.f32 1.0, %v248_v46  ;;  %vm273_vm5 = vmor %vm271_vm3, %vm272_vm1  ;;  %v87_v46 = vld [vmem:[#allocation9] sm:$0xff]  ;;  %vm291_vm9 = vweird.f32 %v285_v49  ;;  %v295_v57 = vand.u32 2147483647, %v285_v49 }
  0xc9   :  { %v268_v45 = vsub.f32 1.0, %v267_v54 }
  0xca   :  { %v250_v44 = vmul.f32 %v2742_v53, %v249_v56  ;;  %vm296_vm11 = vcmp.eq.f32.partialorder %v295_v57, 8.507059e+37  ;;  %v5292_v57 = vld [vmem:[#allocation38_spill] sm:$0xff] }
  0xcb   :  { %v269_v62 = vmul.f32 %v2744_v48, %v268_v45 }
  0xcc   :  { %v2746_v40 = vpop.eup %2745  ;;  %v251_v38 = vadd.f32 %v2742_v53, %v250_v44 }
  0xcd   :  { %v2748_v0 = vpop.eup %2747  ;;  %v287_v60 = vmul.f32 %v2746_v40, %v285_v49  ;;  %v270_v55 = vadd.f32 %v2744_v48, %v269_v62  ;;  %vm292_vm8 = vweird.f32 %v2746_v40  ;;  %v5278_v49 = vld [vmem:[#allocation26_spill] sm:$0xff]  ;;  %v5281_v62 = vld [vmem:[#allocation44_spill] sm:$0xff] }
  0xce   :  { %v255_v54 = vsel %vm254_vm4, %v2742_v53, %v251_v38  ;;  %vm293_vm10 = vmor %vm291_vm9, %vm292_vm8  ;;  %v298_v53 = vor.u32 1.1754944e-38, %v297_v33  ;;  %v5272_v33 = vld [vmem:[#allocation22_spill] sm:$0xff] }
  0xcf   :  { %v288_v56 = vsub.f32 1.0, %v287_v60  ;;  %v260_v37 = vsel %vm257_vm6, %v259_v50, %v255_v54  ;;  %v274_v36 = vsel %vm273_vm5, %v2744_v48, %v270_v55  ;;  %v5279_v48 = vld [vmem:[#allocation27_spill] sm:$0xff]  ;;  %v5283_v60 = vld [vmem:[#allocation30_spill] sm:$0xff]  ;;  %v5287_v54 = vld [vmem:[#allocation33_spill] sm:$0xff] }
  0xd0   :  { %v279_v45 = vsel %vm276_vm7, %v278_v52, %v274_v36  ;;  %v302_v34 = vmul.f32 %v2748_v0, %v260_v37  ;;  %v5274_v36 = vld [vmem:[#allocation23_spill] sm:$0xff]  ;;  %v5275_v37 = vld [vmem:[#allocation24_spill] sm:$0xff]  ;;  %v5282_v0 = vld [vmem:[#allocation29_spill] sm:$0xff] }
  0xd1   :  { %v289_v51 = vmul.f32 %v2746_v40, %v288_v56  ;;  %v301_v44 = vmul.f32 %v279_v45, %v87_v46  ;;  %v5284_v50 = vld [vmem:[#allocation31_spill] sm:$0xff]  ;;  %v5285_v52 = vld [vmem:[#allocation45_spill] sm:$0xff]  ;;  %v5286_v46 = vld [vmem:[#allocation32_spill] sm:$0xff] }
  0xd2   :  { %v5288_v56 = vld [vmem:[#allocation34_spill] sm:$0xff] }
  0xd3   :  { %v3739_v42 = vadd.f32 %v302_v34, %v301_v44  ;;  %v290_v63 = vadd.f32 %v2746_v40, %v289_v51  ;;  %v5273_v34 = vld [vmem:[#allocation36_spill] sm:$0xff]  ;;  %v5289_v45 = vld [vmem:[#allocation46_spill] sm:$0xff]  ;;  %v5290_v44 = vld [vmem:[#allocation35_spill] sm:$0xff] }
  0xd4   :  { %v5277_v51 = vld [vmem:[#allocation40_spill] sm:$0xff] }
  0xd5   :  { %2749 = vtanh.f32 %v3739_v42  ;;  %v294_v38 = vsel %vm293_vm10, %v2746_v40, %v290_v63  ;;  %v5276_v40 = vld [vmem:[#allocation25_spill] sm:$0xff] }
  0xd6   :  { %v299_v55 = vsel %vm296_vm11, %v298_v53, %v294_v38  ;;  %v5291_v63 = vld [vmem:[#allocation37_spill] sm:$0xff]  ;;  %v5293_v38 = vld [vmem:[#allocation47_spill] sm:$0xff] }
  0xd7   :  { %v5294_v53 = vld [vmem:[#allocation39_spill] sm:$0xff] }
  0xdb   :  { %v2750_v58 = vpop.eup %2749 }
  0xdc   :  { %v305_v41 = vmul.f32 %v2750_v58, %v299_v55  ;;  %v5295_v58 = vld [vmem:[#allocation41_spill] sm:$0xff]  ;;  %v5296_v55 = vld [vmem:[#allocation42_spill] sm:$0xff] }
  0xde   :  { %306 = vst [vmem:[#allocation12] sm:$0xff] %v305_v41  ;;  %328 = vmatmul.f32.vlgmr.msrb.gmra.mxu0 %v305_v41  ;;  %348 = vmatmul.f32.vlgmr.msrb.gmra.mxu1 %v305_v41 }
  0xdf   :  { %368 = vmatmul.f32.vlgmr.msrb.gmra.mxu2 %v305_v41  ;;  %388 = vmatmul.f32.vlgmr.msrb.gmra.mxu3 %v305_v41  ;;  %v5297_v41 = vld [vmem:[#allocation48_spill] sm:$0xff] }
  0xe0   :  { %620 = vmatpush.msrb.mxu0 %v5271_v59  ;;  %640 = vmatpush.msrb.mxu1 %v3421_v1 }
  0xe1   :  { %660 = vmatpush.msrb.mxu2 %v3465_v17  ;;  %680 = vmatpush.msrb.mxu3 %v3423_v2 }
  0xe2   :  { %621 = vmatpush.msrb.mxu0 %v3427_v3  ;;  %641 = vmatpush.msrb.mxu1 %v3429_v4 }
  0xe3   :  { %661 = vmatpush.msrb.mxu2 %v3471_v19  ;;  %681 = vmatpush.msrb.mxu3 %v3431_v5 }
  0xe4   :  { %622 = vmatpush.msrb.mxu0 %v3434_v6  ;;  %642 = vmatpush.msrb.mxu1 %v3436_v7 }
  0xe5   :  { %662 = vmatpush.msrb.mxu2 %v3483_v23  ;;  %682 = vmatpush.msrb.mxu3 %v3440_v8 }
  0xe6   :  { %623 = vmatpush.msrb.mxu0 %v3443_v9  ;;  %643 = vmatpush.msrb.mxu1 %v3445_v10 }
  0xe7   :  { %663 = vmatpush.msrb.mxu2 %v3495_v27  ;;  %683 = vmatpush.msrb.mxu3 %v3449_v11 }
  0xe8   :  { %624 = vmatpush.msrb.mxu0 %v3452_v12  ;;  %644 = vmatpush.msrb.mxu1 %v3454_v13 }
  0xe9   :  { %664 = vmatpush.msrb.mxu2 %v3507_v31  ;;  %684 = vmatpush.msrb.mxu3 %v3458_v14 }
  0xea   :  { %625 = vmatpush.msrb.mxu0 %v3461_v15  ;;  %645 = vmatpush.msrb.mxu1 %v3463_v16 }
  0xeb   :  { %665 = vmatpush.msrb.mxu2 %v3519_v35  ;;  %685 = vmatpush.msrb.mxu3 %v3469_v18 }
  0xec   :  { %626 = vmatpush.msrb.mxu0 %v3474_v20  ;;  %646 = vmatpush.msrb.mxu1 %v3476_v21 }
  0xed   :  { %666 = vmatpush.msrb.mxu2 %v3531_v39  ;;  %686 = vmatpush.msrb.mxu3 %v3481_v22 }
  0xee   :  { %627 = vmatpush.msrb.mxu0 %v3486_v24  ;;  %647 = vmatpush.msrb.mxu1 %v3488_v25 }
  0xef   :  { %667 = vmatpush.msrb.mxu2 %v3543_v43  ;;  %687 = vmatpush.msrb.mxu3 %v3493_v26 }
  0xf0   :  { %628 = vmatpush.msrb.mxu0 %v3498_v28  ;;  %648 = vmatpush.msrb.mxu1 %v3500_v29 }
  0xf1   :  { %668 = vmatpush.msrb.mxu2 %v3555_v47  ;;  %688 = vmatpush.msrb.mxu3 %v3505_v30 }
  0xf2   :  { %629 = vmatpush.msrb.mxu0 %v3510_v32  ;;  %649 = vmatpush.msrb.mxu1 %v5272_v33 }
  0xf3   :  { %669 = vmatpush.msrb.mxu2 %v5273_v34  ;;  %689 = vmatpush.msrb.mxu3 %v5274_v36 }
  0xf4   :  { %630 = vmatpush.msrb.mxu0 %v5275_v37  ;;  %650 = vmatpush.msrb.mxu1 %v5276_v40 }
  0xf5   :  { %670 = vmatpush.msrb.mxu2 %v5277_v51  ;;  %690 = vmatpush.msrb.mxu3 %v5278_v49 }
  0xf6   :  { %631 = vmatpush.msrb.mxu0 %v5279_v48  ;;  %651 = vmatpush.msrb.mxu1 %v5280_v61 }
  0xf7   :  { %671 = vmatpush.msrb.mxu2 %v5281_v62  ;;  %691 = vmatpush.msrb.mxu3 %v5282_v0 }
  0xf8   :  { %632 = vmatpush.msrb.mxu0 %v5283_v60  ;;  %652 = vmatpush.msrb.mxu1 %v5284_v50 }
  0xf9   :  { %672 = vmatpush.msrb.mxu2 %v5285_v52  ;;  %692 = vmatpush.msrb.mxu3 %v5286_v46 }
  0xfa   :  { %633 = vmatpush.msrb.mxu0 %v5287_v54  ;;  %653 = vmatpush.msrb.mxu1 %v5288_v56  ;;  %v5298_v54 = vld [vmem:[#allocation43_spill] sm:$0xff]  ;;  %v308_v56 = vld [vmem:[#allocation4 + $0x20] sm:$0xff] }
  0xfb   :  { %673 = vmatpush.msrb.mxu2 %v5289_v45  ;;  %693 = vmatpush.msrb.mxu3 %v5290_v44  ;;  %v309_v45 = vld [vmem:[#allocation4 + $0x28] sm:$0xff] }
  0xfc   :  { %634 = vmatpush.msrb.mxu0 %v5291_v63  ;;  %654 = vmatpush.msrb.mxu1 %v5292_v57 }
  0xfd   :  { %674 = vmatpush.msrb.mxu2 %v5293_v38  ;;  %694 = vmatpush.msrb.mxu3 %v5294_v53  ;;  %v311_v38 = vld [vmem:[#allocation4 + $0x38] sm:$0xff] }
  0xfe   :  { %635 = vmatpush.msrb.mxu0 %v5295_v58  ;;  %655 = vmatpush.msrb.mxu1 %v5296_v55 }
  0xff   :  { %675 = vmatpush.msrb.mxu2 %v5297_v41  ;;  %695 = vmatpush.msrb.mxu3 %v5298_v54  ;;  %v310_v54 = vld [vmem:[#allocation4 + $0x30] sm:$0xff] }
 0x15b   :  { %v329_v46 = vpop.f32.mrf.mxu0  ;;  %v349_v44 = vpop.f32.mrf.mxu1 }
 0x15c   :  { %v392_v52 = vadd.f32 %v329_v46, %v308_v56  ;;  %v393_v63 = vadd.f32 %v349_v44, %v309_v45 }
 0x15e   :  { %v2679_v50 = vmul.f32 -1.442695, %v392_v52  ;;  %v2680_v57 = vmul.f32 -1.442695, %v393_v63 }
 0x160   :  { %2751 = vpow2.f32 %v2679_v50 }
 0x161   :  { %2753 = vpow2.f32 %v2680_v57 }
 0x162   :  { %v389_v53 = vpop.f32.mrf.mxu3  ;;  %v369_v61 = vpop.f32.mrf.mxu2 }
 0x163   :  { %v395_v60 = vadd.f32 %v389_v53, %v311_v38  ;;  %v394_v52 = vadd.f32 %v369_v61, %v310_v54 }
 0x165   :  { %v2681_v58 = vmul.f32 -1.442695, %v395_v60 }
 0x166   :  { %v2752_v0 = vpop.eup %2751 }
 0x167   :  { %v2754_v55 = vpop.eup %2753  ;;  %v399_v62 = vadd.f32 1.0, %v2752_v0  ;;  %2755 = vpow2.f32 %v2681_v58 }
 0x168   :  { %v418_v41 = vadd.f32 1.0, %v2754_v55 }
 0x169   :  { %2757 = vrcp.f32 %v399_v62  ;;  %v411_v60 = vand.u32 2147483648, %v399_v62  ;;  %v409_v53 = vand.u32 2147483647, %v399_v62  ;;  %vm405_vm14 = vweird.f32 %v399_v62 }
 0x16a   :  { %2759 = vrcp.f32 %v418_v41  ;;  %v430_v38 = vand.u32 2147483648, %v418_v41  ;;  %v428_v55 = vand.u32 2147483647, %v418_v41  ;;  %vm424_vm15 = vweird.f32 %v418_v41 }
 0x16b   :  { %vm410_vm2 = vcmp.eq.f32.partialorder %v409_v53, 8.507059e+37 }
 0x16c   :  { %vm429_vm3 = vcmp.eq.f32.partialorder %v428_v55, 8.507059e+37 }
 0x16d   :  { %v2756_v48 = vpop.eup %2755 }
 0x16e   :  { %v438_v46 = vadd.f32 1.0, %v2756_v48  ;;  %v412_v48 = vor.u32 1.1754944e-38, %v411_v60 }
 0x16f   :  { %v2758_v56 = vpop.eup %2757 }
 0x170   :  { %v2760_v45 = vpop.eup %2759  ;;  %v401_v50 = vmul.f32 %v2758_v56, %v399_v62  ;;  %2761 = vrcp.f32 %v438_v46  ;;  %vm406_vm12 = vweird.f32 %v2758_v56  ;;  %v450_v60 = vand.u32 2147483648, %v438_v46 }
 0x171   :  { %v420_v44 = vmul.f32 %v2760_v45, %v418_v41  ;;  %2763 = vtanh.f32 %v394_v52  ;;  %vm425_vm13 = vweird.f32 %v2760_v45  ;;  %vm407_vm0 = vmor %vm405_vm14, %vm406_vm12  ;;  %vm444_vm5 = vweird.f32 %v438_v46 }
 0x172   :  { %v402_v63 = vsub.f32 1.0, %v401_v50  ;;  %vm426_vm1 = vmor %vm424_vm15, %vm425_vm13  ;;  %v431_v50 = vor.u32 1.1754944e-38, %v430_v38  ;;  %v451_v38 = vor.u32 1.1754944e-38, %v450_v60 }
 0x173   :  { %v421_v57 = vsub.f32 1.0, %v420_v44 }
 0x174   :  { %v403_v0 = vmul.f32 %v2758_v56, %v402_v63 }
 0x175   :  { %v422_v58 = vmul.f32 %v2760_v45, %v421_v57 }
 0x176   :  { %v2762_v49 = vpop.eup %2761  ;;  %v404_v51 = vadd.f32 %v2758_v56, %v403_v0 }
 0x177   :  { %v423_v61 = vadd.f32 %v2760_v45, %v422_v58  ;;  %v440_v54 = vmul.f32 %v2762_v49, %v438_v46  ;;  %v2764_v52 = vpop.eup %2763  ;;  %vm445_vm4 = vweird.f32 %v2762_v49 }
 0x178   :  { %v408_v44 = vsel %vm407_vm0, %v2758_v56, %v404_v51  ;;  %v448_v51 = vand.u32 2147483647, %v438_v46  ;;  %vm446_vm6 = vmor %vm444_vm5, %vm445_vm4 }
 0x179   :  { %v413_v40 = vsel %vm410_vm2, %v412_v48, %v408_v44  ;;  %v427_v63 = vsel %vm426_vm1, %v2760_v45, %v423_v61  ;;  %v441_v37 = vsub.f32 1.0, %v440_v54 }
 0x17a   :  { %v432_v57 = vsel %vm429_vm3, %v431_v50, %v427_v63  ;;  %v455_v36 = vmul.f32 %v2764_v52, %v413_v40  ;;  %vm449_vm7 = vcmp.eq.f32.partialorder %v448_v51, 8.507059e+37  ;;  %v464_v40 = vld [vmem:[#allocation4 + $0x50] sm:$0xff] }
 0x17b   :  { %v454_v34 = vmul.f32 %v432_v57, %v3739_v42  ;;  %v442_v0 = vmul.f32 %v2762_v49, %v441_v37 }
 0x17d   :  { %v3807_v62 = vadd.f32 %v455_v36, %v454_v34  ;;  %v443_v41 = vadd.f32 %v2762_v49, %v442_v0 }
 0x17f   :  { %2765 = vtanh.f32 %v3807_v62  ;;  %v447_v56 = vsel %vm446_vm6, %v2762_v49, %v443_v41 }
 0x180   :  { %v452_v53 = vsel %vm449_vm7, %v451_v38, %v447_v56 }
 0x185   :  { %v2766_v45 = vpop.eup %2765 }
 0x186   :  { %v458_v58 = vmul.f32 %v2766_v45, %v452_v53 }
 0x188   :  { %460 = vst [vmem:[#allocation12 + $0x8] sm:$0xff] %v458_v58  ;;  %482 = vmatmul.f32.vlgmr.msra.gmra.mxu0 %v458_v58  ;;  %502 = vmatmul.f32.vlgmr.msra.gmra.mxu1 %v458_v58 }
 0x189   :  { %522 = vmatmul.f32.vlgmr.msra.gmra.mxu2 %v458_v58  ;;  %542 = vmatmul.f32.vlgmr.msra.gmra.mxu3 %v458_v58 }
 0x18a   :  { %774 = vmatpush.msra.mxu0 %v5271_v59  ;;  %794 = vmatpush.msra.mxu1 %v3421_v1  ;;  %v5299_v1 = vld [vmem:[#allocation36_spill] sm:$0xff] }
 0x18b   :  { %814 = vmatpush.msra.mxu2 %v3465_v17  ;;  %834 = vmatpush.msra.mxu3 %v3423_v2  ;;  %v5300_v2 = vld [vmem:[#allocation23_spill] sm:$0xff]  ;;  %v5315_v17 = vld [vmem:[#allocation46_spill] sm:$0xff] }
 0x18c   :  { %775 = vmatpush.msra.mxu0 %v3427_v3  ;;  %795 = vmatpush.msra.mxu1 %v3429_v4  ;;  %v5301_v3 = vld [vmem:[#allocation24_spill] sm:$0xff]  ;;  %v5302_v4 = vld [vmem:[#allocation25_spill] sm:$0xff] }
 0x18d   :  { %815 = vmatpush.msra.mxu2 %v3471_v19  ;;  %835 = vmatpush.msra.mxu3 %v3431_v5  ;;  %v5303_v5 = vld [vmem:[#allocation40_spill] sm:$0xff]  ;;  %v5317_v19 = vld [vmem:[#allocation37_spill] sm:$0xff] }
 0x18e   :  { %776 = vmatpush.msra.mxu0 %v3434_v6  ;;  %796 = vmatpush.msra.mxu1 %v3436_v7  ;;  %v5304_v6 = vld [vmem:[#allocation26_spill] sm:$0xff]  ;;  %v5305_v7 = vld [vmem:[#allocation27_spill] sm:$0xff] }
 0x18f   :  { %816 = vmatpush.msra.mxu2 %v3483_v23  ;;  %836 = vmatpush.msra.mxu3 %v3440_v8  ;;  %v5306_v8 = vld [vmem:[#allocation28_spill] sm:$0xff]  ;;  %v5321_v23 = vld [vmem:[#allocation41_spill] sm:$0xff] }
 0x190   :  { %777 = vmatpush.msra.mxu0 %v3443_v9  ;;  %797 = vmatpush.msra.mxu1 %v3445_v10  ;;  %v5307_v9 = vld [vmem:[#allocation44_spill] sm:$0xff]  ;;  %v5308_v10 = vld [vmem:[#allocation29_spill] sm:$0xff] }
 0x191   :  { %817 = vmatpush.msra.mxu2 %v3495_v27  ;;  %837 = vmatpush.msra.mxu3 %v3449_v11  ;;  %v5309_v11 = vld [vmem:[#allocation30_spill] sm:$0xff]  ;;  %v462_v27 = vld [vmem:[#allocation4 + $0x40] sm:$0xff] }
 0x192   :  { %778 = vmatpush.msra.mxu0 %v3452_v12  ;;  %798 = vmatpush.msra.mxu1 %v3454_v13  ;;  %v5310_v12 = vld [vmem:[#allocation31_spill] sm:$0xff]  ;;  %v5311_v13 = vld [vmem:[#allocation45_spill] sm:$0xff] }
 0x193   :  { %818 = vmatpush.msra.mxu2 %v3507_v31  ;;  %838 = vmatpush.msra.mxu3 %v3458_v14  ;;  %v5312_v14 = vld [vmem:[#allocation32_spill] sm:$0xff] }
 0x194   :  { %779 = vmatpush.msra.mxu0 %v3461_v15  ;;  %799 = vmatpush.msra.mxu1 %v3463_v16  ;;  %v5313_v15 = vld [vmem:[#allocation33_spill] sm:$0xff]  ;;  %v5314_v16 = vld [vmem:[#allocation34_spill] sm:$0xff] }
 0x195   :  { %819 = vmatpush.msra.mxu2 %v3519_v35  ;;  %839 = vmatpush.msra.mxu3 %v3469_v18  ;;  %v5316_v18 = vld [vmem:[#allocation35_spill] sm:$0xff] }
 0x196   :  { %780 = vmatpush.msra.mxu0 %v3474_v20  ;;  %800 = vmatpush.msra.mxu1 %v3476_v21  ;;  %v5318_v20 = vld [vmem:[#allocation38_spill] sm:$0xff]  ;;  %v5319_v21 = vld [vmem:[#allocation47_spill] sm:$0xff] }
 0x197   :  { %820 = vmatpush.msra.mxu2 %v3531_v39  ;;  %840 = vmatpush.msra.mxu3 %v3481_v22  ;;  %v5320_v22 = vld [vmem:[#allocation39_spill] sm:$0xff] }
 0x198   :  { %781 = vmatpush.msra.mxu0 %v3486_v24  ;;  %801 = vmatpush.msra.mxu1 %v3488_v25  ;;  %v5322_v24 = vld [vmem:[#allocation42_spill] sm:$0xff]  ;;  %v5323_v25 = vld [vmem:[#allocation48_spill] sm:$0xff] }
 0x199   :  { %821 = vmatpush.msra.mxu2 %v3543_v43  ;;  %841 = vmatpush.msra.mxu3 %v3493_v26  ;;  %v5324_v26 = vld [vmem:[#allocation43_spill] sm:$0xff]  ;;  %v465_v43 = vld [vmem:[#allocation4 + $0x58] sm:$0xff] }
 0x19a   :  { %782 = vmatpush.msra.mxu0 %v3498_v28  ;;  %802 = vmatpush.msra.mxu1 %v3500_v29  ;;  %v463_v28 = vld [vmem:[#allocation4 + $0x48] sm:$0xff] }
 0x19b   :  { %822 = vmatpush.msra.mxu2 %v3555_v47  ;;  %842 = vmatpush.msra.mxu3 %v3505_v30 }
 0x19c   :  { %783 = vmatpush.msra.mxu0 %v3510_v32  ;;  %803 = vmatpush.msra.mxu1 %v5272_v33 }
 0x19d   :  { %823 = vmatpush.msra.mxu2 %v5299_v1  ;;  %843 = vmatpush.msra.mxu3 %v5300_v2 }
 0x19e   :  { %784 = vmatpush.msra.mxu0 %v5301_v3  ;;  %804 = vmatpush.msra.mxu1 %v5302_v4 }
 0x19f   :  { %824 = vmatpush.msra.mxu2 %v5303_v5  ;;  %844 = vmatpush.msra.mxu3 %v5304_v6 }
 0x1a0   :  { %785 = vmatpush.msra.mxu0 %v5305_v7  ;;  %805 = vmatpush.msra.mxu1 %v5306_v8 }
 0x1a1   :  { %825 = vmatpush.msra.mxu2 %v5307_v9  ;;  %845 = vmatpush.msra.mxu3 %v5308_v10 }
 0x1a2   :  { %786 = vmatpush.msra.mxu0 %v5309_v11  ;;  %806 = vmatpush.msra.mxu1 %v5310_v12 }
 0x1a3   :  { %826 = vmatpush.msra.mxu2 %v5311_v13  ;;  %846 = vmatpush.msra.mxu3 %v5312_v14 }
 0x1a4   :  { %787 = vmatpush.msra.mxu0 %v5313_v15  ;;  %807 = vmatpush.msra.mxu1 %v5314_v16 }
 0x1a5   :  { %827 = vmatpush.msra.mxu2 %v5315_v17  ;;  %847 = vmatpush.msra.mxu3 %v5316_v18 }
 0x1a6   :  { %788 = vmatpush.msra.mxu0 %v5317_v19  ;;  %808 = vmatpush.msra.mxu1 %v5318_v20 }
 0x1a7   :  { %828 = vmatpush.msra.mxu2 %v5319_v21  ;;  %848 = vmatpush.msra.mxu3 %v5320_v22  ;;  %v3881_v21 = vld [vmem:[#allocation10 + $0x1e8] sm:$0xff]  ;;  %v3884_v22 = vld [vmem:[#allocation10 + $0x1f0] sm:$0xff] }
 0x1a8   :  { %789 = vmatpush.msra.mxu0 %v5321_v23  ;;  %809 = vmatpush.msra.mxu1 %v5322_v24  ;;  %v3887_v23 = vld [vmem:[#allocation10 + $0x1f8] sm:$0xff]  ;;  %v3890_v24 = vld [vmem:[#allocation10 + $0x1c0] sm:$0xff] }
 0x1a9   :  { %829 = vmatpush.msra.mxu2 %v5323_v25  ;;  %849 = vmatpush.msra.mxu3 %v5324_v26  ;;  %v3893_v25 = vld [vmem:[#allocation10 + $0x1c8] sm:$0xff]  ;;  %v3896_v26 = vld [vmem:[#allocation10 + $0x1d0] sm:$0xff] }
 0x205   :  { %v483_v29 = vpop.f32.mrf.mxu0  ;;  %v503_v30 = vpop.f32.mrf.mxu1 }
 0x206   :  { %v546_v31 = vadd.f32 %v483_v29, %v462_v27  ;;  %v547_v32 = vadd.f32 %v503_v30, %v463_v28  ;;  %v3899_v27 = vld [vmem:[#allocation10 + $0x1d8] sm:$0xff]  ;;  %v3902_v28 = vld [vmem:[#allocation10 + $0x1a0] sm:$0xff]  ;;  %v3905_v29 = vld [vmem:[#allocation10 + $0x1a8] sm:$0xff] }
 0x207   :  { %v3908_v30 = vld [vmem:[#allocation10 + $0x1b0] sm:$0xff] }
 0x208   :  { %v2682_v35 = vmul.f32 -1.442695, %v546_v31  ;;  %v2683_v39 = vmul.f32 -1.442695, %v547_v32  ;;  %v3911_v31 = vld [vmem:[#allocation10 + $0x1b8] sm:$0xff]  ;;  %v3914_v32 = vld [vmem:[#allocation10 + $0x180] sm:$0xff] }
 0x20a   :  { %2767 = vpow2.f32 %v2682_v35  ;;  %v3917_v35 = vld [vmem:[#allocation10 + $0x188] sm:$0xff] }
 0x20b   :  { %2769 = vpow2.f32 %v2683_v39  ;;  %v3920_v39 = vld [vmem:[#allocation10 + $0x190] sm:$0xff] }
 0x20c   :  { %v543_v47 = vpop.f32.mrf.mxu3  ;;  %v523_v49 = vpop.f32.mrf.mxu2 }
 0x20d   :  { %v549_v59 = vadd.f32 %v543_v47, %v465_v43  ;;  %v548_v61 = vadd.f32 %v523_v49, %v464_v40  ;;  %v3923_v43 = vld [vmem:[#allocation10 + $0x198] sm:$0xff]  ;;  %v3926_v47 = vld [vmem:[#allocation10 + $0x160] sm:$0xff] }
 0x20e   :  { %v3947_v40 = vld [vmem:[#allocation10 + $0x158] sm:$0xff]  ;;  %v3950_v49 = vld [vmem:[#allocation10 + $0x120] sm:$0xff] }
 0x20f   :  { %v2684_v42 = vmul.f32 -1.442695, %v549_v59  ;;  %v3929_v59 = vld [vmem:[#allocation10 + $0x168] sm:$0xff] }
 0x210   :  { %v2768_v33 = vpop.eup %2767 }
 0x211   :  { %v2770_v34 = vpop.eup %2769  ;;  %v553_v36 = vadd.f32 1.0, %v2768_v33  ;;  %2771 = vpow2.f32 %v2684_v42  ;;  %v3932_v42 = vld [vmem:[#allocation10 + $0x170] sm:$0xff]  ;;  %v3935_v33 = vld [vmem:[#allocation10 + $0x178] sm:$0xff] }
 0x212   :  { %v572_v37 = vadd.f32 1.0, %v2770_v34  ;;  %v3938_v34 = vld [vmem:[#allocation10 + $0x140] sm:$0xff] }
 0x213   :  { %2773 = vrcp.f32 %v553_v36  ;;  %v565_v57 = vand.u32 2147483648, %v553_v36  ;;  %v563_v60 = vand.u32 2147483647, %v553_v36  ;;  %vm559_vm10 = vweird.f32 %v553_v36 }
 0x214   :  { %2775 = vrcp.f32 %v572_v37  ;;  %v584_v0 = vand.u32 2147483648, %v572_v37  ;;  %v582_v56 = vand.u32 2147483647, %v572_v37  ;;  %vm578_vm11 = vweird.f32 %v572_v37 }
 0x215   :  { %v566_v53 = vor.u32 1.1754944e-38, %v565_v57  ;;  %vm564_vm14 = vcmp.eq.f32.partialorder %v563_v60, 8.507059e+37  ;;  %v3980_v57 = vld [vmem:[#allocation10 + $0xf0] sm:$0xff]  ;;  %v3989_v60 = vld [vmem:[#allocation10 + $0xc8] sm:$0xff] }
 0x216   :  { %v585_v2 = vor.u32 1.1754944e-38, %v584_v0  ;;  %vm583_vm15 = vcmp.eq.f32.partialorder %v582_v56, 8.507059e+37  ;;  %v3983_v0 = vld [vmem:[#allocation10 + $0xf8] sm:$0xff] }
 0x217   :  { %v2772_v46 = vpop.eup %2771  ;;  %v3995_v56 = vld [vmem:[#allocation10 + $0xd8] sm:$0xff] }
 0x218   :  { %v592_v55 = vadd.f32 1.0, %v2772_v46  ;;  %v3953_v46 = vld [vmem:[#allocation10 + $0x128] sm:$0xff]  ;;  %5326 = vst [vmem:[#allocation22_spill] sm:$0xff] %v3995_v56 }
 0x219   :  { %v2774_v48 = vpop.eup %2773 }
 0x21a   :  { %v2776_v54 = vpop.eup %2775  ;;  %v555_v50 = vmul.f32 %v2774_v48, %v553_v36  ;;  %2777 = vrcp.f32 %v592_v55  ;;  %vm560_vm8 = vweird.f32 %v2774_v48  ;;  %v604_v14 = vand.u32 2147483648, %v592_v55  ;;  %v3941_v36 = vld [vmem:[#allocation10 + $0x148] sm:$0xff] }
 0x21b   :  { %v574_v44 = vmul.f32 %v2776_v54, %v572_v37  ;;  %2779 = vtanh.f32 %v548_v61  ;;  %vm579_vm9 = vweird.f32 %v2776_v54  ;;  %vm561_vm12 = vmor %vm559_vm10, %vm560_vm8  ;;  %vm598_vm1 = vweird.f32 %v592_v55  ;;  %v3944_v37 = vld [vmem:[#allocation10 + $0x150] sm:$0xff]  ;;  %v3962_v61 = vld [vmem:[#allocation10 + $0x100] sm:$0xff] }
 0x21c   :  { %v556_v52 = vsub.f32 1.0, %v555_v50  ;;  %vm580_vm13 = vmor %vm578_vm11, %vm579_vm9  ;;  %v602_v15 = vand.u32 2147483647, %v592_v55  ;;  %v605_v17 = vor.u32 1.1754944e-38, %v604_v14  ;;  %v3968_v50 = vld [vmem:[#allocation10 + $0x110] sm:$0xff]  ;;  %v4046_v14 = vld [vmem:[#allocation10 + $0x20] sm:$0xff] }
 0x21d   :  { %v575_v63 = vsub.f32 1.0, %v574_v44  ;;  %v3971_v44 = vld [vmem:[#allocation10 + $0x118] sm:$0xff]  ;;  %5343 = vst [vmem:[#allocation46_spill] sm:$0xff] %v4046_v14 }
 0x21e   :  { %v557_v41 = vmul.f32 %v2774_v48, %v556_v52  ;;  %vm603_vm3 = vcmp.eq.f32.partialorder %v602_v15, 8.507059e+37  ;;  %v3974_v52 = vld [vmem:[#allocation10 + $0xe0] sm:$0xff]  ;;  %v4049_v15 = vld [vmem:[#allocation10 + $0x28] sm:$0xff] }
 0x21f   :  { %v576_v51 = vmul.f32 %v2776_v54, %v575_v63  ;;  %v3977_v63 = vld [vmem:[#allocation10 + $0xe8] sm:$0xff]  ;;  %5344 = vst [vmem:[#allocation35_spill] sm:$0xff] %v4049_v15 }
 0x220   :  { %v2778_v38 = vpop.eup %2777  ;;  %v558_v45 = vadd.f32 %v2774_v48, %v557_v41  ;;  %v3986_v41 = vld [vmem:[#allocation10 + $0xc0] sm:$0xff] }
 0x221   :  { %v577_v58 = vadd.f32 %v2776_v54, %v576_v51  ;;  %v594_v1 = vmul.f32 %v2778_v38, %v592_v55  ;;  %v2780_v4 = vpop.eup %2779  ;;  %vm599_vm0 = vweird.f32 %v2778_v38  ;;  %v3956_v55 = vld [vmem:[#allocation10 + $0x130] sm:$0xff] }
 0x222   :  { %v562_v3 = vsel %vm561_vm12, %v2774_v48, %v558_v45  ;;  %vm600_vm2 = vmor %vm598_vm1, %vm599_vm0  ;;  %v3959_v48 = vld [vmem:[#allocation10 + $0x138] sm:$0xff]  ;;  %v3992_v51 = vld [vmem:[#allocation10 + $0xd0] sm:$0xff] }
 0x223   :  { %v567_v5 = vsel %vm564_vm14, %v566_v53, %v562_v3  ;;  %v581_v6 = vsel %vm580_vm13, %v2776_v54, %v577_v58  ;;  %v595_v7 = vsub.f32 1.0, %v594_v1  ;;  %v3965_v54 = vld [vmem:[#allocation10 + $0x108] sm:$0xff]  ;;  %5325 = vst [vmem:[#allocation21_spill] sm:$0xff] %v3992_v51  ;;  %v4004_v53 = vld [vmem:[#allocation10 + $0xb0] sm:$0xff]  ;;  %v4007_v58 = vld [vmem:[#allocation10 + $0xb8] sm:$0xff] }
 0x224   :  { %v586_v8 = vsel %vm583_vm15, %v585_v2, %v581_v6  ;;  %v609_v9 = vmul.f32 %v2780_v4, %v567_v5  ;;  %v4001_v45 = vld [vmem:[#allocation10 + $0xa8] sm:$0xff]  ;;  %5329 = vst [vmem:[#allocation24_spill] sm:$0xff] %v4004_v53  ;;  %v4010_v1 = vld [vmem:[#allocation10 + $0x80] sm:$0xff]  ;;  %v4016_v3 = vld [vmem:[#allocation10 + $0x90] sm:$0xff] }
 0x225   :  { %v608_v10 = vmul.f32 %v586_v8, %v3807_v62  ;;  %v596_v11 = vmul.f32 %v2778_v38, %v595_v7  ;;  %v3878_v62 = vld [vmem:[#allocation10 + $0x1e0] sm:$0xff]  ;;  %5328 = vst [vmem:[#allocation23_spill] sm:$0xff] %v4001_v45  ;;  %v4013_v2 = vld [vmem:[#allocation10 + $0x88] sm:$0xff]  ;;  %v4019_v4 = vld [vmem:[#allocation10 + $0x98] sm:$0xff] }
 0x226   :  { %5330 = vst [vmem:[#allocation25_spill] sm:$0xff] %v4007_v58  ;;  %v4022_v5 = vld [vmem:[#allocation10 + $0x60] sm:$0xff]  ;;  %v4025_v6 = vld [vmem:[#allocation10 + $0x68] sm:$0xff]  ;;  %v4028_v7 = vld [vmem:[#allocation10 + $0x70] sm:$0xff] }
 0x227   :  { %v3875_v12 = vadd.f32 %v609_v9, %v608_v10  ;;  %v597_v13 = vadd.f32 %v2778_v38, %v596_v11  ;;  %5331 = vst [vmem:[#allocation40_spill] sm:$0xff] %v4010_v1  ;;  %v4031_v8 = vld [vmem:[#allocation10 + $0x78] sm:$0xff]  ;;  %v4034_v9 = vld [vmem:[#allocation10 + $0x40] sm:$0xff]  ;;  %v4037_v10 = vld [vmem:[#allocation10 + $0x48] sm:$0xff] }
 0x228   :  { %5332 = vst [vmem:[#allocation26_spill] sm:$0xff] %v4013_v2  ;;  %v4040_v11 = vld [vmem:[#allocation10 + $0x50] sm:$0xff] }
 0x229   :  { %2781 = vtanh.f32 %v3875_v12  ;;  %v601_v16 = vsel %vm600_vm2, %v2778_v38, %v597_v13  ;;  %v3998_v38 = vld [vmem:[#allocation10 + $0xa0] sm:$0xff]  ;;  %5333 = vst [vmem:[#allocation27_spill] sm:$0xff] %v4016_v3  ;;  %v4043_v13 = vld [vmem:[#allocation10 + $0x58] sm:$0xff] }
 0x22a   :  { %v606_v19 = vsel %vm603_vm3, %v605_v17, %v601_v16  ;;  %5327 = vst [vmem:[#allocation36_spill] sm:$0xff] %v3998_v38  ;;  %v4052_v16 = vld [vmem:[#allocation10 + $0x30] sm:$0xff]  ;;  %v4055_v17 = vld [vmem:[#allocation10 + $0x38] sm:$0xff] }
 0x22b   :  { %5334 = vst [vmem:[#allocation28_spill] sm:$0xff] %v4019_v4 }
 0x22c   :  { %5335 = vst [vmem:[#allocation44_spill] sm:$0xff] %v4022_v5 }
 0x22d   :  { %5336 = vst [vmem:[#allocation29_spill] sm:$0xff] %v4025_v6 }
 0x22e   :  { %5337 = vst [vmem:[#allocation30_spill] sm:$0xff] %v4028_v7 }
 0x22f   :  { %v2782_v18 = vpop.eup %2781  ;;  %5338 = vst [vmem:[#allocation31_spill] sm:$0xff] %v4031_v8 }
 0x230   :  { %v612_v20 = vmul.f32 %v2782_v18, %v606_v19  ;;  %5339 = vst [vmem:[#allocation45_spill] sm:$0xff] %v4034_v9  ;;  %v4058_v18 = vld [vmem:[#allocation10] sm:$0xff]  ;;  %v4061_v19 = vld [vmem:[#allocation10 + $0x8] sm:$0xff] }
 0x231   :  { %5340 = vst [vmem:[#allocation32_spill] sm:$0xff] %v4037_v10 }
 0x232   :  { %614 = vst [vmem:[#allocation12 + $0x10] sm:$0xff] %v612_v20  ;;  %636 = vmatmul.f32.vlgmr.msrb.gmra.mxu0 %v612_v20  ;;  %656 = vmatmul.f32.vlgmr.msrb.gmra.mxu1 %v612_v20 }
 0x233   :  { %676 = vmatmul.f32.vlgmr.msrb.gmra.mxu2 %v612_v20  ;;  %696 = vmatmul.f32.vlgmr.msrb.gmra.mxu3 %v612_v20  ;;  %5341 = vst [vmem:[#allocation33_spill] sm:$0xff] %v4040_v11  ;;  %v4064_v20 = vld [vmem:[#allocation10 + $0x10] sm:$0xff] }
 0x234   :  { %928 = vmatpush.msrb.mxu0 %v3878_v62  ;;  %948 = vmatpush.msrb.mxu1 %v3881_v21  ;;  %5342 = vst [vmem:[#allocation34_spill] sm:$0xff] %v4043_v13 }
 0x235   :  { %968 = vmatpush.msrb.mxu2 %v3884_v22  ;;  %988 = vmatpush.msrb.mxu3 %v3887_v23  ;;  %5345 = vst [vmem:[#allocation37_spill] sm:$0xff] %v4052_v16 }
 0x236   :  { %929 = vmatpush.msrb.mxu0 %v3890_v24  ;;  %949 = vmatpush.msrb.mxu1 %v3893_v25  ;;  %5346 = vst [vmem:[#allocation38_spill] sm:$0xff] %v4055_v17 }
 0x237   :  { %969 = vmatpush.msrb.mxu2 %v3896_v26  ;;  %989 = vmatpush.msrb.mxu3 %v3899_v27  ;;  %5347 = vst [vmem:[#allocation47_spill] sm:$0xff] %v4058_v18 }
 0x238   :  { %930 = vmatpush.msrb.mxu0 %v3902_v28  ;;  %950 = vmatpush.msrb.mxu1 %v3905_v29  ;;  %5348 = vst [vmem:[#allocation39_spill] sm:$0xff] %v4061_v19 }
 0x239   :  { %970 = vmatpush.msrb.mxu2 %v3908_v30  ;;  %990 = vmatpush.msrb.mxu3 %v3911_v31  ;;  %5349 = vst [vmem:[#allocation41_spill] sm:$0xff] %v4064_v20 }
 0x23a   :  { %931 = vmatpush.msrb.mxu0 %v3914_v32  ;;  %951 = vmatpush.msrb.mxu1 %v3917_v35 }
 0x23b   :  { %971 = vmatpush.msrb.mxu2 %v3920_v39  ;;  %991 = vmatpush.msrb.mxu3 %v3923_v43 }
 0x23c   :  { %932 = vmatpush.msrb.mxu0 %v3926_v47  ;;  %952 = vmatpush.msrb.mxu1 %v3929_v59 }
 0x23d   :  { %972 = vmatpush.msrb.mxu2 %v3932_v42  ;;  %992 = vmatpush.msrb.mxu3 %v3935_v33 }
 0x23e   :  { %933 = vmatpush.msrb.mxu0 %v3938_v34  ;;  %953 = vmatpush.msrb.mxu1 %v3941_v36 }
 0x23f   :  { %973 = vmatpush.msrb.mxu2 %v3944_v37  ;;  %993 = vmatpush.msrb.mxu3 %v3947_v40 }
 0x240   :  { %934 = vmatpush.msrb.mxu0 %v3950_v49  ;;  %954 = vmatpush.msrb.mxu1 %v3953_v46 }
 0x241   :  { %974 = vmatpush.msrb.mxu2 %v3956_v55  ;;  %994 = vmatpush.msrb.mxu3 %v3959_v48 }
 0x242   :  { %935 = vmatpush.msrb.mxu0 %v3962_v61  ;;  %955 = vmatpush.msrb.mxu1 %v3965_v54 }
 0x243   :  { %975 = vmatpush.msrb.mxu2 %v3968_v50  ;;  %995 = vmatpush.msrb.mxu3 %v3971_v44 }
 0x244   :  { %936 = vmatpush.msrb.mxu0 %v3974_v52  ;;  %956 = vmatpush.msrb.mxu1 %v3977_v63 }
 0x245   :  { %976 = vmatpush.msrb.mxu2 %v3980_v57  ;;  %996 = vmatpush.msrb.mxu3 %v3983_v0 }
 0x246   :  { %937 = vmatpush.msrb.mxu0 %v3986_v41  ;;  %957 = vmatpush.msrb.mxu1 %v3989_v60 }
 0x247   :  { %977 = vmatpush.msrb.mxu2 %v3992_v51  ;;  %997 = vmatpush.msrb.mxu3 %v3995_v56 }
 0x248   :  { %938 = vmatpush.msrb.mxu0 %v3998_v38  ;;  %958 = vmatpush.msrb.mxu1 %v4001_v45 }
 0x249   :  { %978 = vmatpush.msrb.mxu2 %v4004_v53  ;;  %998 = vmatpush.msrb.mxu3 %v4007_v58 }
 0x24a   :  { %939 = vmatpush.msrb.mxu0 %v4010_v1  ;;  %959 = vmatpush.msrb.mxu1 %v4013_v2 }
 0x24b   :  { %979 = vmatpush.msrb.mxu2 %v4016_v3  ;;  %999 = vmatpush.msrb.mxu3 %v4019_v4 }
 0x24c   :  { %940 = vmatpush.msrb.mxu0 %v4022_v5  ;;  %960 = vmatpush.msrb.mxu1 %v4025_v6 }
 0x24d   :  { %980 = vmatpush.msrb.mxu2 %v4028_v7  ;;  %1000 = vmatpush.msrb.mxu3 %v4031_v8  ;;  %v619_v8 = vld [vmem:[#allocation4 + $0x78] sm:$0xff] }
 0x24e   :  { %941 = vmatpush.msrb.mxu0 %v4034_v9  ;;  %961 = vmatpush.msrb.mxu1 %v4037_v10 }
 0x24f   :  { %981 = vmatpush.msrb.mxu2 %v4040_v11  ;;  %1001 = vmatpush.msrb.mxu3 %v4043_v13 }
 0x250   :  { %942 = vmatpush.msrb.mxu0 %v4046_v14  ;;  %962 = vmatpush.msrb.mxu1 %v4049_v15  ;;  %v4067_v15 = vld [vmem:[#allocation10 + $0x18] sm:$0xff] }
 0x251   :  { %982 = vmatpush.msrb.mxu2 %v4052_v16  ;;  %1002 = vmatpush.msrb.mxu3 %v4055_v17  ;;  %5350 = vst [vmem:[#allocation42_spill] sm:$0xff] %v4067_v15  ;;  %v616_v16 = vld [vmem:[#allocation4 + $0x60] sm:$0xff]  ;;  %v617_v14 = vld [vmem:[#allocation4 + $0x68] sm:$0xff] }
 0x252   :  { %943 = vmatpush.msrb.mxu0 %v4058_v18  ;;  %963 = vmatpush.msrb.mxu1 %v4061_v19 }
 0x253   :  { %983 = vmatpush.msrb.mxu2 %v4064_v20  ;;  %1003 = vmatpush.msrb.mxu3 %v4067_v15  ;;  %v618_v15 = vld [vmem:[#allocation4 + $0x70] sm:$0xff] }
 0x2af   :  { %v637_v13 = vpop.f32.mrf.mxu0  ;;  %v657_v17 = vpop.f32.mrf.mxu1 }
 0x2b0   :  { %v700_v11 = vadd.f32 %v637_v13, %v616_v16  ;;  %v701_v10 = vadd.f32 %v657_v17, %v617_v14 }
 0x2b2   :  { %v2685_v9 = vmul.f32 -1.442695, %v700_v11  ;;  %v2686_v18 = vmul.f32 -1.442695, %v701_v10 }
 0x2b4   :  { %2783 = vpow2.f32 %v2685_v9 }
 0x2b5   :  { %2785 = vpow2.f32 %v2686_v18 }
 0x2b6   :  { %v697_v19 = vpop.f32.mrf.mxu3  ;;  %v677_v2 = vpop.f32.mrf.mxu2 }
 0x2b7   :  { %v703_v7 = vadd.f32 %v697_v19, %v619_v8  ;;  %v702_v11 = vadd.f32 %v677_v2, %v618_v15 }
 0x2b9   :  { %v2687_v6 = vmul.f32 -1.442695, %v703_v7 }
 0x2ba   :  { %v2784_v5 = vpop.eup %2783 }
 0x2bb   :  { %v2786_v20 = vpop.eup %2785  ;;  %v707_v4 = vadd.f32 1.0, %v2784_v5  ;;  %2787 = vpow2.f32 %v2687_v6 }
 0x2bc   :  { %v726_v3 = vadd.f32 1.0, %v2786_v20 }
 0x2bd   :  { %2789 = vrcp.f32 %v707_v4  ;;  %v719_v7 = vand.u32 2147483648, %v707_v4  ;;  %v717_v6 = vand.u32 2147483647, %v707_v4  ;;  %vm713_vm6 = vweird.f32 %v707_v4 }
 0x2be   :  { %2791 = vrcp.f32 %v726_v3  ;;  %v738_v18 = vand.u32 2147483648, %v726_v3  ;;  %v736_v20 = vand.u32 2147483647, %v726_v3  ;;  %vm732_vm7 = vweird.f32 %v726_v3 }
 0x2bf   :  { %vm718_vm10 = vcmp.eq.f32.partialorder %v717_v6, 8.507059e+37 }
 0x2c0   :  { %vm737_vm11 = vcmp.eq.f32.partialorder %v736_v20, 8.507059e+37  ;;  %v5358_v20 = vld [vmem:[#allocation26_spill] sm:$0xff] }
 0x2c1   :  { %v2788_v1 = vpop.eup %2787 }
 0x2c2   :  { %v746_v13 = vadd.f32 1.0, %v2788_v1  ;;  %v720_v1 = vor.u32 1.1754944e-38, %v719_v7 }
 0x2c3   :  { %v2790_v14 = vpop.eup %2789 }
 0x2c4   :  { %v2792_v10 = vpop.eup %2791  ;;  %v709_v9 = vmul.f32 %v2790_v14, %v707_v4  ;;  %2793 = vrcp.f32 %v746_v13  ;;  %vm714_vm4 = vweird.f32 %v2790_v14  ;;  %v758_v7 = vand.u32 2147483648, %v746_v13 }
 0x2c5   :  { %v728_v16 = vmul.f32 %v2792_v10, %v726_v3  ;;  %2795 = vtanh.f32 %v702_v11  ;;  %vm733_vm5 = vweird.f32 %v2792_v10  ;;  %vm715_vm8 = vmor %vm713_vm6, %vm714_vm4  ;;  %vm752_vm13 = vweird.f32 %v746_v13 }
 0x2c6   :  { %v710_v17 = vsub.f32 1.0, %v709_v9  ;;  %vm734_vm9 = vmor %vm732_vm7, %vm733_vm5  ;;  %v739_v9 = vor.u32 1.1754944e-38, %v738_v18  ;;  %v759_v18 = vor.u32 1.1754944e-38, %v758_v7  ;;  %v5369_v7 = vld [vmem:[#allocation46_spill] sm:$0xff] }
 0x2c7   :  { %v729_v8 = vsub.f32 1.0, %v728_v16 }
 0x2c8   :  { %v711_v5 = vmul.f32 %v2790_v14, %v710_v17 }
 0x2c9   :  { %v730_v19 = vmul.f32 %v2792_v10, %v729_v8 }
 0x2ca   :  { %v2794_v58 = vpop.eup %2793  ;;  %v712_v53 = vadd.f32 %v2790_v14, %v711_v5 }
 0x2cb   :  { %v731_v2 = vadd.f32 %v2792_v10, %v730_v19  ;;  %v748_v15 = vmul.f32 %v2794_v58, %v746_v13  ;;  %v2796_v11 = vpop.eup %2795  ;;  %vm753_vm12 = vweird.f32 %v2794_v58 }
 0x2cc   :  { %v716_v16 = vsel %vm715_vm8, %v2790_v14, %v712_v53  ;;  %v756_v53 = vand.u32 2147483647, %v746_v13  ;;  %vm754_vm14 = vmor %vm752_vm13, %vm753_vm12  ;;  %v5357_v13 = vld [vmem:[#allocation40_spill] sm:$0xff] }
 0x2cd   :  { %v721_v45 = vsel %vm718_vm10, %v720_v1, %v716_v16  ;;  %v735_v17 = vsel %vm734_vm9, %v2792_v10, %v731_v2  ;;  %v749_v38 = vsub.f32 1.0, %v748_v15  ;;  %v5359_v1 = vld [vmem:[#allocation27_spill] sm:$0xff]  ;;  %v5360_v2 = vld [vmem:[#allocation28_spill] sm:$0xff]  ;;  %v5363_v16 = vld [vmem:[#allocation30_spill] sm:$0xff] }
 0x2ce   :  { %v740_v8 = vsel %vm737_vm11, %v739_v9, %v735_v17  ;;  %v763_v56 = vmul.f32 %v2796_v11, %v721_v45  ;;  %vm757_vm15 = vcmp.eq.f32.partialorder %v756_v53, 8.507059e+37  ;;  %v5355_v45 = vld [vmem:[#allocation24_spill] sm:$0xff]  ;;  %v5362_v9 = vld [vmem:[#allocation29_spill] sm:$0xff]  ;;  %v5364_v11 = vld [vmem:[#allocation31_spill] sm:$0xff] }
 0x2cf   :  { %v762_v51 = vmul.f32 %v740_v8, %v3875_v12  ;;  %v750_v5 = vmul.f32 %v2794_v58, %v749_v38  ;;  %v5351_v12 = vld [vmem:[#allocation21_spill] sm:$0xff]  ;;  %v5354_v38 = vld [vmem:[#allocation23_spill] sm:$0xff]  ;;  %v5361_v15 = vld [vmem:[#allocation44_spill] sm:$0xff] }
 0x2d0   :  { %v5365_v17 = vld [vmem:[#allocation45_spill] sm:$0xff]  ;;  %v5366_v8 = vld [vmem:[#allocation32_spill] sm:$0xff]  ;;  %v5370_v53 = vld [vmem:[#allocation35_spill] sm:$0xff] }
 0x2d1   :  { %v4071_v4 = vadd.f32 %v763_v56, %v762_v51  ;;  %v751_v3 = vadd.f32 %v2794_v58, %v750_v5  ;;  %v5352_v51 = vld [vmem:[#allocation22_spill] sm:$0xff]  ;;  %v5353_v56 = vld [vmem:[#allocation36_spill] sm:$0xff]  ;;  %v5367_v5 = vld [vmem:[#allocation33_spill] sm:$0xff] }
 0x2d3   :  { %2797 = vtanh.f32 %v4071_v4  ;;  %v755_v14 = vsel %vm754_vm14, %v2794_v58, %v751_v3  ;;  %v5356_v58 = vld [vmem:[#allocation25_spill] sm:$0xff]  ;;  %v5368_v3 = vld [vmem:[#allocation34_spill] sm:$0xff] }
 0x2d4   :  { %v760_v6 = vsel %vm757_vm15, %v759_v18, %v755_v14  ;;  %v5371_v14 = vld [vmem:[#allocation37_spill] sm:$0xff]  ;;  %v5372_v18 = vld [vmem:[#allocation38_spill] sm:$0xff] }
 0x2d9   :  { %v2798_v10 = vpop.eup %2797 }
 0x2da   :  { %v766_v19 = vmul.f32 %v2798_v10, %v760_v6  ;;  %v5373_v10 = vld [vmem:[#allocation47_spill] sm:$0xff] }
 0x2db   :  { %v5374_v6 = vld [vmem:[#allocation39_spill] sm:$0xff] }
 0x2dc   :  { %768 = vst [vmem:[#allocation12 + $0x18] sm:$0xff] %v766_v19  ;;  %790 = vmatmul.f32.vlgmr.msra.gmra.mxu0 %v766_v19  ;;  %810 = vmatmul.f32.vlgmr.msra.gmra.mxu1 %v766_v19 }
 0x2dd   :  { %830 = vmatmul.f32.vlgmr.msra.gmra.mxu2 %v766_v19  ;;  %850 = vmatmul.f32.vlgmr.msra.gmra.mxu3 %v766_v19  ;;  %v5375_v19 = vld [vmem:[#allocation41_spill] sm:$0xff] }
 0x2de   :  { %1082 = vmatpush.msra.mxu0 %v3878_v62  ;;  %1102 = vmatpush.msra.mxu1 %v3881_v21 }
 0x2df   :  { %1122 = vmatpush.msra.mxu2 %v3884_v22  ;;  %1142 = vmatpush.msra.mxu3 %v3887_v23 }
 0x2e0   :  { %1083 = vmatpush.msra.mxu0 %v3890_v24  ;;  %1103 = vmatpush.msra.mxu1 %v3893_v25 }
 0x2e1   :  { %1123 = vmatpush.msra.mxu2 %v3896_v26  ;;  %1143 = vmatpush.msra.mxu3 %v3899_v27 }
 0x2e2   :  { %1084 = vmatpush.msra.mxu0 %v3902_v28  ;;  %1104 = vmatpush.msra.mxu1 %v3905_v29 }
 0x2e3   :  { %1124 = vmatpush.msra.mxu2 %v3908_v30  ;;  %1144 = vmatpush.msra.mxu3 %v3911_v31 }
 0x2e4   :  { %1085 = vmatpush.msra.mxu0 %v3914_v32  ;;  %1105 = vmatpush.msra.mxu1 %v3917_v35 }
 0x2e5   :  { %1125 = vmatpush.msra.mxu2 %v3920_v39  ;;  %1145 = vmatpush.msra.mxu3 %v3923_v43 }
 0x2e6   :  { %1086 = vmatpush.msra.mxu0 %v3926_v47  ;;  %1106 = vmatpush.msra.mxu1 %v3929_v59 }
 0x2e7   :  { %1126 = vmatpush.msra.mxu2 %v3932_v42  ;;  %1146 = vmatpush.msra.mxu3 %v3935_v33 }
 0x2e8   :  { %1087 = vmatpush.msra.mxu0 %v3938_v34  ;;  %1107 = vmatpush.msra.mxu1 %v3941_v36 }
 0x2e9   :  { %1127 = vmatpush.msra.mxu2 %v3944_v37  ;;  %1147 = vmatpush.msra.mxu3 %v3947_v40 }
 0x2ea   :  { %1088 = vmatpush.msra.mxu0 %v3950_v49  ;;  %1108 = vmatpush.msra.mxu1 %v3953_v46 }
 0x2eb   :  { %1128 = vmatpush.msra.mxu2 %v3956_v55  ;;  %1148 = vmatpush.msra.mxu3 %v3959_v48 }
 0x2ec   :  { %1089 = vmatpush.msra.mxu0 %v3962_v61  ;;  %1109 = vmatpush.msra.mxu1 %v3965_v54 }
 0x2ed   :  { %1129 = vmatpush.msra.mxu2 %v3968_v50  ;;  %1149 = vmatpush.msra.mxu3 %v3971_v44 }
 0x2ee   :  { %1090 = vmatpush.msra.mxu0 %v3974_v52  ;;  %1110 = vmatpush.msra.mxu1 %v3977_v63 }
 0x2ef   :  { %1130 = vmatpush.msra.mxu2 %v3980_v57  ;;  %1150 = vmatpush.msra.mxu3 %v3983_v0 }
 0x2f0   :  { %1091 = vmatpush.msra.mxu0 %v3986_v41  ;;  %1111 = vmatpush.msra.mxu1 %v3989_v60 }
 0x2f1   :  { %1131 = vmatpush.msra.mxu2 %v5351_v12  ;;  %1151 = vmatpush.msra.mxu3 %v5352_v51 }
 0x2f2   :  { %1092 = vmatpush.msra.mxu0 %v5353_v56  ;;  %1112 = vmatpush.msra.mxu1 %v5354_v38 }
 0x2f3   :  { %1132 = vmatpush.msra.mxu2 %v5355_v45  ;;  %1152 = vmatpush.msra.mxu3 %v5356_v58 }
 0x2f4   :  { %1093 = vmatpush.msra.mxu0 %v5357_v13  ;;  %1113 = vmatpush.msra.mxu1 %v5358_v20 }
 0x2f5   :  { %1133 = vmatpush.msra.mxu2 %v5359_v1  ;;  %1153 = vmatpush.msra.mxu3 %v5360_v2 }
 0x2f6   :  { %1094 = vmatpush.msra.mxu0 %v5361_v15  ;;  %1114 = vmatpush.msra.mxu1 %v5362_v9 }
 0x2f7   :  { %1134 = vmatpush.msra.mxu2 %v5363_v16  ;;  %1154 = vmatpush.msra.mxu3 %v5364_v11 }
 0x2f8   :  { %1095 = vmatpush.msra.mxu0 %v5365_v17  ;;  %1115 = vmatpush.msra.mxu1 %v5366_v8  ;;  %v5376_v17 = vld [vmem:[#allocation42_spill] sm:$0xff]  ;;  %v770_v8 = vld [vmem:[#allocation4 + $0x80] sm:$0xff] }
 0x2f9   :  { %1135 = vmatpush.msra.mxu2 %v5367_v5  ;;  %1155 = vmatpush.msra.mxu3 %v5368_v3  ;;  %v771_v5 = vld [vmem:[#allocation4 + $0x88] sm:$0xff] }
 0x2fa   :  { %1096 = vmatpush.msra.mxu0 %v5369_v7  ;;  %1116 = vmatpush.msra.mxu1 %v5370_v53 }
 0x2fb   :  { %1136 = vmatpush.msra.mxu2 %v5371_v14  ;;  %1156 = vmatpush.msra.mxu3 %v5372_v18  ;;  %v773_v14 = vld [vmem:[#allocation4 + $0x98] sm:$0xff] }
 0x2fc   :  { %1097 = vmatpush.msra.mxu0 %v5373_v10  ;;  %1117 = vmatpush.msra.mxu1 %v5374_v6 }
 0x2fd   :  { %1137 = vmatpush.msra.mxu2 %v5375_v19  ;;  %1157 = vmatpush.msra.mxu3 %v5376_v17  ;;  %v772_v17 = vld [vmem:[#allocation4 + $0x90] sm:$0xff] }
 0x359   :  { %v791_v11 = vpop.f32.mrf.mxu0  ;;  %v811_v3 = vpop.f32.mrf.mxu1 }
 0x35a   :  { %v854_v16 = vadd.f32 %v791_v11, %v770_v8  ;;  %v855_v7 = vadd.f32 %v811_v3, %v771_v5 }
 0x35c   :  { %v2688_v9 = vmul.f32 -1.442695, %v854_v16  ;;  %v2689_v53 = vmul.f32 -1.442695, %v855_v7 }
 0x35e   :  { %2799 = vpow2.f32 %v2688_v9 }
 0x35f   :  { %2801 = vpow2.f32 %v2689_v53 }
 0x360   :  { %v851_v18 = vpop.f32.mrf.mxu3  ;;  %v831_v20 = vpop.f32.mrf.mxu2 }
 0x361   :  { %v857_v15 = vadd.f32 %v851_v18, %v773_v14  ;;  %v856_v16 = vadd.f32 %v831_v20, %v772_v17 }
 0x363   :  { %v2690_v10 = vmul.f32 -1.442695, %v857_v15 }
 0x364   :  { %v2800_v2 = vpop.eup %2799 }
 0x365   :  { %v2802_v6 = vpop.eup %2801  ;;  %v861_v1 = vadd.f32 1.0, %v2800_v2  ;;  %2803 = vpow2.f32 %v2690_v10 }
 0x366   :  { %v880_v19 = vadd.f32 1.0, %v2802_v6 }
 0x367   :  { %2805 = vrcp.f32 %v861_v1  ;;  %v873_v15 = vand.u32 2147483648, %v861_v1  ;;  %v871_v18 = vand.u32 2147483647, %v861_v1  ;;  %vm867_vm2 = vweird.f32 %v861_v1 }
 0x368   :  { %2807 = vrcp.f32 %v880_v19  ;;  %v892_v14 = vand.u32 2147483648, %v880_v19  ;;  %v890_v6 = vand.u32 2147483647, %v880_v19  ;;  %vm886_vm3 = vweird.f32 %v880_v19 }
 0x369   :  { %vm872_vm6 = vcmp.eq.f32.partialorder %v871_v18, 8.507059e+37 }
 0x36a   :  { %vm891_vm7 = vcmp.eq.f32.partialorder %v890_v6, 8.507059e+37  ;;  %v5384_v6 = vld [vmem:[#allocation26_spill] sm:$0xff] }
 0x36b   :  { %v2804_v13 = vpop.eup %2803 }
 0x36c   :  { %v900_v11 = vadd.f32 1.0, %v2804_v13  ;;  %v874_v13 = vor.u32 1.1754944e-38, %v873_v15 }
 0x36d   :  { %v2806_v8 = vpop.eup %2805 }
 0x36e   :  { %v2808_v5 = vpop.eup %2807  ;;  %v863_v9 = vmul.f32 %v2806_v8, %v861_v1  ;;  %2809 = vrcp.f32 %v900_v11  ;;  %vm868_vm0 = vweird.f32 %v2806_v8  ;;  %v912_v15 = vand.u32 2147483648, %v900_v11 }
 0x36f   :  { %v882_v3 = vmul.f32 %v2808_v5, %v880_v19  ;;  %2811 = vtanh.f32 %v856_v16  ;;  %vm887_vm1 = vweird.f32 %v2808_v5  ;;  %vm869_vm4 = vmor %vm867_vm2, %vm868_vm0  ;;  %vm906_vm9 = vweird.f32 %v900_v11 }
 0x370   :  { %v864_v7 = vsub.f32 1.0, %v863_v9  ;;  %vm888_vm5 = vmor %vm886_vm3, %vm887_vm1  ;;  %v893_v9 = vor.u32 1.1754944e-38, %v892_v14  ;;  %v913_v14 = vor.u32 1.1754944e-38, %v912_v15  ;;  %v5395_v15 = vld [vmem:[#allocation46_spill] sm:$0xff] }
 0x371   :  { %v883_v53 = vsub.f32 1.0, %v882_v3 }
 0x372   :  { %v865_v2 = vmul.f32 %v2806_v8, %v864_v7 }
 0x373   :  { %v884_v10 = vmul.f32 %v2808_v5, %v883_v53 }
 0x374   :  { %v2810_v58 = vpop.eup %2809  ;;  %v866_v45 = vadd.f32 %v2806_v8, %v865_v2 }
 0x375   :  { %v885_v20 = vadd.f32 %v2808_v5, %v884_v10  ;;  %v902_v17 = vmul.f32 %v2810_v58, %v900_v11  ;;  %v2812_v16 = vpop.eup %2811  ;;  %vm907_vm8 = vweird.f32 %v2810_v58 }
 0x376   :  { %v870_v3 = vsel %vm869_vm4, %v2806_v8, %v866_v45  ;;  %v910_v45 = vand.u32 2147483647, %v900_v11  ;;  %vm908_vm10 = vmor %vm906_vm9, %vm907_vm8  ;;  %v5383_v11 = vld [vmem:[#allocation40_spill] sm:$0xff] }
 0x377   :  { %v875_v38 = vsel %vm872_vm6, %v874_v13, %v870_v3  ;;  %v889_v7 = vsel %vm888_vm5, %v2808_v5, %v885_v20  ;;  %v903_v56 = vsub.f32 1.0, %v902_v17  ;;  %v5385_v13 = vld [vmem:[#allocation27_spill] sm:$0xff]  ;;  %v5386_v20 = vld [vmem:[#allocation28_spill] sm:$0xff]  ;;  %v5389_v3 = vld [vmem:[#allocation30_spill] sm:$0xff] }
 0x378   :  { %v894_v53 = vsel %vm891_vm7, %v893_v9, %v889_v7  ;;  %v917_v51 = vmul.f32 %v2812_v16, %v875_v38  ;;  %vm911_vm11 = vcmp.eq.f32.partialorder %v910_v45, 8.507059e+37  ;;  %v5381_v38 = vld [vmem:[#allocation24_spill] sm:$0xff]  ;;  %v5388_v9 = vld [vmem:[#allocation29_spill] sm:$0xff]  ;;  %v5390_v16 = vld [vmem:[#allocation31_spill] sm:$0xff] }
 0x379   :  { %v916_v12 = vmul.f32 %v894_v53, %v4071_v4  ;;  %v904_v2 = vmul.f32 %v2810_v58, %v903_v56  ;;  %v5377_v4 = vld [vmem:[#allocation21_spill] sm:$0xff]  ;;  %v5380_v56 = vld [vmem:[#allocation23_spill] sm:$0xff]  ;;  %v5387_v17 = vld [vmem:[#allocation44_spill] sm:$0xff] }
 0x37a   :  { %v5391_v7 = vld [vmem:[#allocation45_spill] sm:$0xff]  ;;  %v5392_v53 = vld [vmem:[#allocation32_spill] sm:$0xff]  ;;  %v5396_v45 = vld [vmem:[#allocation35_spill] sm:$0xff] }
 0x37b   :  { %v4139_v1 = vadd.f32 %v917_v51, %v916_v12  ;;  %v905_v19 = vadd.f32 %v2810_v58, %v904_v2  ;;  %v5378_v12 = vld [vmem:[#allocation22_spill] sm:$0xff]  ;;  %v5379_v51 = vld [vmem:[#allocation36_spill] sm:$0xff]  ;;  %v5393_v2 = vld [vmem:[#allocation33_spill] sm:$0xff] }
 0x37d   :  { %2813 = vtanh.f32 %v4139_v1  ;;  %v909_v8 = vsel %vm908_vm10, %v2810_v58, %v905_v19  ;;  %v5382_v58 = vld [vmem:[#allocation25_spill] sm:$0xff]  ;;  %v5394_v19 = vld [vmem:[#allocation34_spill] sm:$0xff] }
 0x37e   :  { %v914_v18 = vsel %vm911_vm11, %v913_v14, %v909_v8  ;;  %v5397_v8 = vld [vmem:[#allocation37_spill] sm:$0xff]  ;;  %v5398_v14 = vld [vmem:[#allocation38_spill] sm:$0xff] }
 0x383   :  { %v2814_v5 = vpop.eup %2813 }
 0x384   :  { %v920_v10 = vmul.f32 %v2814_v5, %v914_v18  ;;  %v5399_v5 = vld [vmem:[#allocation47_spill] sm:$0xff] }
 0x385   :  { %v5400_v18 = vld [vmem:[#allocation39_spill] sm:$0xff] }
 0x386   :  { %922 = vst [vmem:[#allocation12 + $0x20] sm:$0xff] %v920_v10  ;;  %944 = vmatmul.f32.vlgmr.msrb.gmra.mxu0 %v920_v10  ;;  %964 = vmatmul.f32.vlgmr.msrb.gmra.mxu1 %v920_v10 }
 0x387   :  { %984 = vmatmul.f32.vlgmr.msrb.gmra.mxu2 %v920_v10  ;;  %1004 = vmatmul.f32.vlgmr.msrb.gmra.mxu3 %v920_v10  ;;  %v5401_v10 = vld [vmem:[#allocation41_spill] sm:$0xff] }
 0x388   :  { %1236 = vmatpush.msrb.mxu0 %v3878_v62  ;;  %1256 = vmatpush.msrb.mxu1 %v3881_v21 }
 0x389   :  { %1276 = vmatpush.msrb.mxu2 %v3884_v22  ;;  %1296 = vmatpush.msrb.mxu3 %v3887_v23 }
 0x38a   :  { %1237 = vmatpush.msrb.mxu0 %v3890_v24  ;;  %1257 = vmatpush.msrb.mxu1 %v3893_v25 }
 0x38b   :  { %1277 = vmatpush.msrb.mxu2 %v3896_v26  ;;  %1297 = vmatpush.msrb.mxu3 %v3899_v27 }
 0x38c   :  { %1238 = vmatpush.msrb.mxu0 %v3902_v28  ;;  %1258 = vmatpush.msrb.mxu1 %v3905_v29 }
 0x38d   :  { %1278 = vmatpush.msrb.mxu2 %v3908_v30  ;;  %1298 = vmatpush.msrb.mxu3 %v3911_v31 }
 0x38e   :  { %1239 = vmatpush.msrb.mxu0 %v3914_v32  ;;  %1259 = vmatpush.msrb.mxu1 %v3917_v35 }
 0x38f   :  { %1279 = vmatpush.msrb.mxu2 %v3920_v39  ;;  %1299 = vmatpush.msrb.mxu3 %v3923_v43 }
 0x390   :  { %1240 = vmatpush.msrb.mxu0 %v3926_v47  ;;  %1260 = vmatpush.msrb.mxu1 %v3929_v59 }
 0x391   :  { %1280 = vmatpush.msrb.mxu2 %v3932_v42  ;;  %1300 = vmatpush.msrb.mxu3 %v3935_v33 }
 0x392   :  { %1241 = vmatpush.msrb.mxu0 %v3938_v34  ;;  %1261 = vmatpush.msrb.mxu1 %v3941_v36 }
 0x393   :  { %1281 = vmatpush.msrb.mxu2 %v3944_v37  ;;  %1301 = vmatpush.msrb.mxu3 %v3947_v40 }
 0x394   :  { %1242 = vmatpush.msrb.mxu0 %v3950_v49  ;;  %1262 = vmatpush.msrb.mxu1 %v3953_v46 }
 0x395   :  { %1282 = vmatpush.msrb.mxu2 %v3956_v55  ;;  %1302 = vmatpush.msrb.mxu3 %v3959_v48 }
 0x396   :  { %1243 = vmatpush.msrb.mxu0 %v3962_v61  ;;  %1263 = vmatpush.msrb.mxu1 %v3965_v54 }
 0x397   :  { %1283 = vmatpush.msrb.mxu2 %v3968_v50  ;;  %1303 = vmatpush.msrb.mxu3 %v3971_v44 }
 0x398   :  { %1244 = vmatpush.msrb.mxu0 %v3974_v52  ;;  %1264 = vmatpush.msrb.mxu1 %v3977_v63 }
 0x399   :  { %1284 = vmatpush.msrb.mxu2 %v3980_v57  ;;  %1304 = vmatpush.msrb.mxu3 %v3983_v0 }
 0x39a   :  { %1245 = vmatpush.msrb.mxu0 %v3986_v41  ;;  %1265 = vmatpush.msrb.mxu1 %v3989_v60 }
 0x39b   :  { %1285 = vmatpush.msrb.mxu2 %v5377_v4  ;;  %1305 = vmatpush.msrb.mxu3 %v5378_v12 }
 0x39c   :  { %1246 = vmatpush.msrb.mxu0 %v5379_v51  ;;  %1266 = vmatpush.msrb.mxu1 %v5380_v56 }
 0x39d   :  { %1286 = vmatpush.msrb.mxu2 %v5381_v38  ;;  %1306 = vmatpush.msrb.mxu3 %v5382_v58 }
 0x39e   :  { %1247 = vmatpush.msrb.mxu0 %v5383_v11  ;;  %1267 = vmatpush.msrb.mxu1 %v5384_v6 }
 0x39f   :  { %1287 = vmatpush.msrb.mxu2 %v5385_v13  ;;  %1307 = vmatpush.msrb.mxu3 %v5386_v20 }
 0x3a0   :  { %1248 = vmatpush.msrb.mxu0 %v5387_v17  ;;  %1268 = vmatpush.msrb.mxu1 %v5388_v9 }
 0x3a1   :  { %1288 = vmatpush.msrb.mxu2 %v5389_v3  ;;  %1308 = vmatpush.msrb.mxu3 %v5390_v16 }
 0x3a2   :  { %1249 = vmatpush.msrb.mxu0 %v5391_v7  ;;  %1269 = vmatpush.msrb.mxu1 %v5392_v53  ;;  %v5402_v7 = vld [vmem:[#allocation42_spill] sm:$0xff]  ;;  %v924_v53 = vld [vmem:[#allocation4 + $0xa0] sm:$0xff] }
 0x3a3   :  { %1289 = vmatpush.msrb.mxu2 %v5393_v2  ;;  %1309 = vmatpush.msrb.mxu3 %v5394_v19  ;;  %v925_v2 = vld [vmem:[#allocation4 + $0xa8] sm:$0xff] }
 0x3a4   :  { %1250 = vmatpush.msrb.mxu0 %v5395_v15  ;;  %1270 = vmatpush.msrb.mxu1 %v5396_v45 }
 0x3a5   :  { %1290 = vmatpush.msrb.mxu2 %v5397_v8  ;;  %1310 = vmatpush.msrb.mxu3 %v5398_v14  ;;  %v927_v8 = vld [vmem:[#allocation4 + $0xb8] sm:$0xff] }
 0x3a6   :  { %1251 = vmatpush.msrb.mxu0 %v5399_v5  ;;  %1271 = vmatpush.msrb.mxu1 %v5400_v18 }
 0x3a7   :  { %1291 = vmatpush.msrb.mxu2 %v5401_v10  ;;  %1311 = vmatpush.msrb.mxu3 %v5402_v7  ;;  %v926_v7 = vld [vmem:[#allocation4 + $0xb0] sm:$0xff] }
 0x403   :  { %v945_v16 = vpop.f32.mrf.mxu0  ;;  %v965_v19 = vpop.f32.mrf.mxu1 }
 0x404   :  { %v1008_v3 = vadd.f32 %v945_v16, %v924_v53  ;;  %v1009_v15 = vadd.f32 %v965_v19, %v925_v2 }
 0x406   :  { %v2691_v9 = vmul.f32 -1.442695, %v1008_v3  ;;  %v2692_v45 = vmul.f32 -1.442695, %v1009_v15 }
 0x408   :  { %2815 = vpow2.f32 %v2691_v9 }
 0x409   :  { %2817 = vpow2.f32 %v2692_v45 }
 0x40a   :  { %v1005_v14 = vpop.f32.mrf.mxu3  ;;  %v985_v6 = vpop.f32.mrf.mxu2 }
 0x40b   :  { %v1011_v17 = vadd.f32 %v1005_v14, %v927_v8  ;;  %v1010_v3 = vadd.f32 %v985_v6, %v926_v7 }
 0x40d   :  { %v2693_v5 = vmul.f32 -1.442695, %v1011_v17 }
 0x40e   :  { %v2816_v20 = vpop.eup %2815 }
 0x40f   :  { %v2818_v18 = vpop.eup %2817  ;;  %v1015_v13 = vadd.f32 1.0, %v2816_v20  ;;  %2819 = vpow2.f32 %v2693_v5 }
 0x410   :  { %v1034_v10 = vadd.f32 1.0, %v2818_v18 }
 0x411   :  { %2821 = vrcp.f32 %v1015_v13  ;;  %v1027_v17 = vand.u32 2147483648, %v1015_v13  ;;  %v1025_v14 = vand.u32 2147483647, %v1015_v13  ;;  %vm1021_vm14 = vweird.f32 %v1015_v13 }
 0x412   :  { %2823 = vrcp.f32 %v1034_v10  ;;  %v1046_v8 = vand.u32 2147483648, %v1034_v10  ;;  %v1044_v18 = vand.u32 2147483647, %v1034_v10  ;;  %vm1040_vm15 = vweird.f32 %v1034_v10 }
 0x413   :  { %vm1026_vm2 = vcmp.eq.f32.partialorder %v1025_v14, 8.507059e+37 }
 0x414   :  { %vm1045_vm3 = vcmp.eq.f32.partialorder %v1044_v18, 8.507059e+37 }
 0x415   :  { %v2820_v11 = vpop.eup %2819 }
 0x416   :  { %v1054_v16 = vadd.f32 1.0, %v2820_v11  ;;  %v1028_v11 = vor.u32 1.1754944e-38, %v1027_v17 }
 0x417   :  { %v2822_v53 = vpop.eup %2821 }
 0x418   :  { %v2824_v2 = vpop.eup %2823  ;;  %v1017_v9 = vmul.f32 %v2822_v53, %v1015_v13  ;;  %2825 = vrcp.f32 %v1054_v16  ;;  %vm1022_vm12 = vweird.f32 %v2822_v53  ;;  %v1066_v17 = vand.u32 2147483648, %v1054_v16 }
 0x419   :  { %v1036_v19 = vmul.f32 %v2824_v2, %v1034_v10  ;;  %2827 = vtanh.f32 %v1010_v3  ;;  %vm1041_vm13 = vweird.f32 %v2824_v2  ;;  %vm1023_vm0 = vmor %vm1021_vm14, %vm1022_vm12  ;;  %vm1060_vm5 = vweird.f32 %v1054_v16 }
 0x41a   :  { %v1018_v15 = vsub.f32 1.0, %v1017_v9  ;;  %vm1042_vm1 = vmor %vm1040_vm15, %vm1041_vm13  ;;  %v1047_v9 = vor.u32 1.1754944e-38, %v1046_v8  ;;  %v1067_v8 = vor.u32 1.1754944e-38, %v1066_v17 }
 0x41b   :  { %v1037_v45 = vsub.f32 1.0, %v1036_v19 }
 0x41c   :  { %v1019_v20 = vmul.f32 %v2822_v53, %v1018_v15 }
 0x41d   :  { %v1038_v5 = vmul.f32 %v2824_v2, %v1037_v45 }
 0x41e   :  { %v2826_v58 = vpop.eup %2825  ;;  %v1020_v38 = vadd.f32 %v2822_v53, %v1019_v20 }
 0x41f   :  { %v1039_v6 = vadd.f32 %v2824_v2, %v1038_v5  ;;  %v1056_v7 = vmul.f32 %v2826_v58, %v1054_v16  ;;  %v2828_v3 = vpop.eup %2827  ;;  %vm1061_vm4 = vweird.f32 %v2826_v58 }
 0x420   :  { %v1024_v19 = vsel %vm1023_vm0, %v2822_v53, %v1020_v38  ;;  %v1064_v38 = vand.u32 2147483647, %v1054_v16  ;;  %vm1062_vm6 = vmor %vm1060_vm5, %vm1061_vm4 }
 0x421   :  { %v1029_v56 = vsel %vm1026_vm2, %v1028_v11, %v1024_v19  ;;  %v1043_v15 = vsel %vm1042_vm1, %v2824_v2, %v1039_v6  ;;  %v1057_v51 = vsub.f32 1.0, %v1056_v7 }
 0x422   :  { %v1048_v45 = vsel %vm1045_vm3, %v1047_v9, %v1043_v15  ;;  %v1071_v12 = vmul.f32 %v2828_v3, %v1029_v56  ;;  %vm1065_vm7 = vcmp.eq.f32.partialorder %v1064_v38, 8.507059e+37  ;;  %v1080_v56 = vld [vmem:[#allocation4 + $0xd0] sm:$0xff] }
 0x423   :  { %v1070_v4 = vmul.f32 %v1048_v45, %v4139_v1  ;;  %v1058_v20 = vmul.f32 %v2826_v58, %v1057_v51 }
 0x425   :  { %v4207_v13 = vadd.f32 %v1071_v12, %v1070_v4  ;;  %v1059_v10 = vadd.f32 %v2826_v58, %v1058_v20 }
 0x427   :  { %2829 = vtanh.f32 %v4207_v13  ;;  %v1063_v53 = vsel %vm1062_vm6, %v2826_v58, %v1059_v10 }
 0x428   :  { %v1068_v14 = vsel %vm1065_vm7, %v1067_v8, %v1063_v53 }
 0x42d   :  { %v2830_v2 = vpop.eup %2829 }
 0x42e   :  { %v1074_v5 = vmul.f32 %v2830_v2, %v1068_v14 }
 0x430   :  { %1076 = vst [vmem:[#allocation12 + $0x28] sm:$0xff] %v1074_v5  ;;  %1098 = vmatmul.f32.vlgmr.msra.gmra.mxu0 %v1074_v5  ;;  %1118 = vmatmul.f32.vlgmr.msra.gmra.mxu1 %v1074_v5 }
 0x431   :  { %1138 = vmatmul.f32.vlgmr.msra.gmra.mxu2 %v1074_v5  ;;  %1158 = vmatmul.f32.vlgmr.msra.gmra.mxu3 %v1074_v5 }
 0x432   :  { %1390 = vmatpush.msra.mxu0 %v3878_v62  ;;  %1410 = vmatpush.msra.mxu1 %v3881_v21  ;;  %v5403_v62 = vld [vmem:[#allocation21_spill] sm:$0xff]  ;;  %v5404_v21 = vld [vmem:[#allocation22_spill] sm:$0xff] }
 0x433   :  { %1430 = vmatpush.msra.mxu2 %v3884_v22  ;;  %1450 = vmatpush.msra.mxu3 %v3887_v23  ;;  %v5405_v22 = vld [vmem:[#allocation36_spill] sm:$0xff]  ;;  %v5406_v23 = vld [vmem:[#allocation23_spill] sm:$0xff] }
 0x434   :  { %1391 = vmatpush.msra.mxu0 %v3890_v24  ;;  %1411 = vmatpush.msra.mxu1 %v3893_v25  ;;  %v5407_v24 = vld [vmem:[#allocation24_spill] sm:$0xff]  ;;  %v5408_v25 = vld [vmem:[#allocation25_spill] sm:$0xff] }
 0x435   :  { %1431 = vmatpush.msra.mxu2 %v3896_v26  ;;  %1451 = vmatpush.msra.mxu3 %v3899_v27  ;;  %v5409_v26 = vld [vmem:[#allocation40_spill] sm:$0xff]  ;;  %v5410_v27 = vld [vmem:[#allocation26_spill] sm:$0xff] }
 0x436   :  { %1392 = vmatpush.msra.mxu0 %v3902_v28  ;;  %1412 = vmatpush.msra.mxu1 %v3905_v29  ;;  %v5411_v28 = vld [vmem:[#allocation27_spill] sm:$0xff]  ;;  %v5412_v29 = vld [vmem:[#allocation28_spill] sm:$0xff] }
 0x437   :  { %1432 = vmatpush.msra.mxu2 %v3908_v30  ;;  %1452 = vmatpush.msra.mxu3 %v3911_v31  ;;  %v5413_v30 = vld [vmem:[#allocation44_spill] sm:$0xff]  ;;  %v5414_v31 = vld [vmem:[#allocation29_spill] sm:$0xff] }
 0x438   :  { %1393 = vmatpush.msra.mxu0 %v3914_v32  ;;  %1413 = vmatpush.msra.mxu1 %v3917_v35  ;;  %v5415_v32 = vld [vmem:[#allocation30_spill] sm:$0xff]  ;;  %v5416_v35 = vld [vmem:[#allocation31_spill] sm:$0xff] }
 0x439   :  { %1433 = vmatpush.msra.mxu2 %v3920_v39  ;;  %1453 = vmatpush.msra.mxu3 %v3923_v43  ;;  %v5417_v39 = vld [vmem:[#allocation45_spill] sm:$0xff]  ;;  %v5418_v43 = vld [vmem:[#allocation32_spill] sm:$0xff] }
 0x43a   :  { %1394 = vmatpush.msra.mxu0 %v3926_v47  ;;  %1414 = vmatpush.msra.mxu1 %v3929_v59  ;;  %v5419_v47 = vld [vmem:[#allocation33_spill] sm:$0xff]  ;;  %v5420_v59 = vld [vmem:[#allocation34_spill] sm:$0xff] }
 0x43b   :  { %1434 = vmatpush.msra.mxu2 %v3932_v42  ;;  %1454 = vmatpush.msra.mxu3 %v3935_v33  ;;  %v5421_v42 = vld [vmem:[#allocation46_spill] sm:$0xff]  ;;  %v5422_v33 = vld [vmem:[#allocation35_spill] sm:$0xff] }
 0x43c   :  { %1395 = vmatpush.msra.mxu0 %v3938_v34  ;;  %1415 = vmatpush.msra.mxu1 %v3941_v36  ;;  %v5423_v34 = vld [vmem:[#allocation37_spill] sm:$0xff]  ;;  %v5424_v36 = vld [vmem:[#allocation38_spill] sm:$0xff] }
 0x43d   :  { %1435 = vmatpush.msra.mxu2 %v3944_v37  ;;  %1455 = vmatpush.msra.mxu3 %v3947_v40  ;;  %v5425_v37 = vld [vmem:[#allocation47_spill] sm:$0xff] }
 0x43e   :  { %1396 = vmatpush.msra.mxu0 %v3950_v49  ;;  %1416 = vmatpush.msra.mxu1 %v3953_v46  ;;  %v5426_v40 = vld [vmem:[#allocation39_spill] sm:$0xff]  ;;  %v5427_v49 = vld [vmem:[#allocation41_spill] sm:$0xff]  ;;  %v5428_v46 = vld [vmem:[#allocation42_spill] sm:$0xff] }
 0x43f   :  { %1436 = vmatpush.msra.mxu2 %v3956_v55  ;;  %1456 = vmatpush.msra.mxu3 %v3959_v48  ;;  %v1078_v55 = vld [vmem:[#allocation4 + $0xc0] sm:$0xff]  ;;  %v1079_v48 = vld [vmem:[#allocation4 + $0xc8] sm:$0xff] }
 0x440   :  { %1397 = vmatpush.msra.mxu0 %v3962_v61  ;;  %1417 = vmatpush.msra.mxu1 %v3965_v54 }
 0x441   :  { %1437 = vmatpush.msra.mxu2 %v3968_v50  ;;  %1457 = vmatpush.msra.mxu3 %v3971_v44 }
 0x442   :  { %1398 = vmatpush.msra.mxu0 %v3974_v52  ;;  %1418 = vmatpush.msra.mxu1 %v3977_v63 }
 0x443   :  { %1438 = vmatpush.msra.mxu2 %v3980_v57  ;;  %1458 = vmatpush.msra.mxu3 %v3983_v0  ;;  %v1081_v57 = vld [vmem:[#allocation4 + $0xd8] sm:$0xff] }
 0x444   :  { %1399 = vmatpush.msra.mxu0 %v3986_v41  ;;  %1419 = vmatpush.msra.mxu1 %v3989_v60 }
 0x445   :  { %1439 = vmatpush.msra.mxu2 %v5403_v62  ;;  %1459 = vmatpush.msra.mxu3 %v5404_v21 }
 0x446   :  { %1400 = vmatpush.msra.mxu0 %v5405_v22  ;;  %1420 = vmatpush.msra.mxu1 %v5406_v23 }
 0x447   :  { %1440 = vmatpush.msra.mxu2 %v5407_v24  ;;  %1460 = vmatpush.msra.mxu3 %v5408_v25 }
 0x448   :  { %1401 = vmatpush.msra.mxu0 %v5409_v26  ;;  %1421 = vmatpush.msra.mxu1 %v5410_v27 }
 0x449   :  { %1441 = vmatpush.msra.mxu2 %v5411_v28  ;;  %1461 = vmatpush.msra.mxu3 %v5412_v29 }
 0x44a   :  { %1402 = vmatpush.msra.mxu0 %v5413_v30  ;;  %1422 = vmatpush.msra.mxu1 %v5414_v31 }
 0x44b   :  { %1442 = vmatpush.msra.mxu2 %v5415_v32  ;;  %1462 = vmatpush.msra.mxu3 %v5416_v35 }
 0x44c   :  { %1403 = vmatpush.msra.mxu0 %v5417_v39  ;;  %1423 = vmatpush.msra.mxu1 %v5418_v43 }
 0x44d   :  { %1443 = vmatpush.msra.mxu2 %v5419_v47  ;;  %1463 = vmatpush.msra.mxu3 %v5420_v59 }
 0x44e   :  { %1404 = vmatpush.msra.mxu0 %v5421_v42  ;;  %1424 = vmatpush.msra.mxu1 %v5422_v33 }
 0x44f   :  { %1444 = vmatpush.msra.mxu2 %v5423_v34  ;;  %1464 = vmatpush.msra.mxu3 %v5424_v36  ;;  %v4281_v34 = vld [vmem:[#allocation10 + $0x1e8] sm:$0xff]  ;;  %v4284_v36 = vld [vmem:[#allocation10 + $0x1f0] sm:$0xff] }
 0x450   :  { %1405 = vmatpush.msra.mxu0 %v5425_v37  ;;  %1425 = vmatpush.msra.mxu1 %v5426_v40  ;;  %v4287_v37 = vld [vmem:[#allocation10 + $0x1f8] sm:$0xff]  ;;  %v4290_v40 = vld [vmem:[#allocation10 + $0x1c0] sm:$0xff] }
 0x451   :  { %1445 = vmatpush.msra.mxu2 %v5427_v49  ;;  %1465 = vmatpush.msra.mxu3 %v5428_v46  ;;  %v4293_v49 = vld [vmem:[#allocation10 + $0x1c8] sm:$0xff]  ;;  %v4296_v46 = vld [vmem:[#allocation10 + $0x1d0] sm:$0xff] }
 0x4ad   :  { %v1099_v61 = vpop.f32.mrf.mxu0  ;;  %v1119_v54 = vpop.f32.mrf.mxu1 }
 0x4ae   :  { %v1162_v50 = vadd.f32 %v1099_v61, %v1078_v55  ;;  %v1163_v44 = vadd.f32 %v1119_v54, %v1079_v48  ;;  %v4299_v55 = vld [vmem:[#allocation10 + $0x1d8] sm:$0xff]  ;;  %v4302_v48 = vld [vmem:[#allocation10 + $0x1a0] sm:$0xff]  ;;  %v4305_v61 = vld [vmem:[#allocation10 + $0x1a8] sm:$0xff] }
 0x4af   :  { %v4308_v54 = vld [vmem:[#allocation10 + $0x1b0] sm:$0xff] }
 0x4b0   :  { %v2694_v52 = vmul.f32 -1.442695, %v1162_v50  ;;  %v2695_v63 = vmul.f32 -1.442695, %v1163_v44  ;;  %v4311_v50 = vld [vmem:[#allocation10 + $0x1b8] sm:$0xff]  ;;  %v4314_v44 = vld [vmem:[#allocation10 + $0x180] sm:$0xff] }
 0x4b2   :  { %2831 = vpow2.f32 %v2694_v52  ;;  %v4317_v52 = vld [vmem:[#allocation10 + $0x188] sm:$0xff] }
 0x4b3   :  { %2833 = vpow2.f32 %v2695_v63  ;;  %v4320_v63 = vld [vmem:[#allocation10 + $0x190] sm:$0xff] }
 0x4b4   :  { %v1159_v0 = vpop.f32.mrf.mxu3  ;;  %v1139_v58 = vpop.f32.mrf.mxu2 }
 0x4b5   :  { %v1165_v41 = vadd.f32 %v1159_v0, %v1081_v57  ;;  %v1164_v6 = vadd.f32 %v1139_v58, %v1080_v56  ;;  %v4323_v57 = vld [vmem:[#allocation10 + $0x198] sm:$0xff]  ;;  %v4326_v0 = vld [vmem:[#allocation10 + $0x160] sm:$0xff] }
 0x4b6   :  { %v4347_v56 = vld [vmem:[#allocation10 + $0x158] sm:$0xff]  ;;  %v4350_v58 = vld [vmem:[#allocation10 + $0x120] sm:$0xff] }
 0x4b7   :  { %v2696_v60 = vmul.f32 -1.442695, %v1165_v41  ;;  %v4329_v41 = vld [vmem:[#allocation10 + $0x168] sm:$0xff] }
 0x4b8   :  { %v2832_v1 = vpop.eup %2831 }
 0x4b9   :  { %v2834_v4 = vpop.eup %2833  ;;  %v1169_v12 = vadd.f32 1.0, %v2832_v1  ;;  %2835 = vpow2.f32 %v2696_v60  ;;  %v4332_v60 = vld [vmem:[#allocation10 + $0x170] sm:$0xff]  ;;  %v4335_v1 = vld [vmem:[#allocation10 + $0x178] sm:$0xff] }
 0x4ba   :  { %v1188_v51 = vadd.f32 1.0, %v2834_v4  ;;  %v4338_v4 = vld [vmem:[#allocation10 + $0x140] sm:$0xff] }
 0x4bb   :  { %2837 = vrcp.f32 %v1169_v12  ;;  %v1181_v45 = vand.u32 2147483648, %v1169_v12  ;;  %v1179_v17 = vand.u32 2147483647, %v1169_v12  ;;  %vm1175_vm10 = vweird.f32 %v1169_v12 }
 0x4bc   :  { %2839 = vrcp.f32 %v1188_v51  ;;  %v1200_v20 = vand.u32 2147483648, %v1188_v51  ;;  %v1198_v53 = vand.u32 2147483647, %v1188_v51  ;;  %vm1194_vm11 = vweird.f32 %v1188_v51 }
 0x4bd   :  { %v1182_v14 = vor.u32 1.1754944e-38, %v1181_v45  ;;  %vm1180_vm14 = vcmp.eq.f32.partialorder %v1179_v17, 8.507059e+37  ;;  %v4380_v45 = vld [vmem:[#allocation10 + $0xf0] sm:$0xff]  ;;  %v4389_v17 = vld [vmem:[#allocation10 + $0xc8] sm:$0xff] }
 0x4be   :  { %v1201_v21 = vor.u32 1.1754944e-38, %v1200_v20  ;;  %vm1199_vm15 = vcmp.eq.f32.partialorder %v1198_v53, 8.507059e+37  ;;  %v4383_v20 = vld [vmem:[#allocation10 + $0xf8] sm:$0xff] }
 0x4bf   :  { %v2836_v16 = vpop.eup %2835  ;;  %v4395_v53 = vld [vmem:[#allocation10 + $0xd8] sm:$0xff] }
 0x4c0   :  { %v1208_v18 = vadd.f32 1.0, %v2836_v16  ;;  %v4353_v16 = vld [vmem:[#allocation10 + $0x128] sm:$0xff]  ;;  %5430 = vst [vmem:[#allocation43_spill] sm:$0xff] %v4395_v53 }
 0x4c1   :  { %v2838_v11 = vpop.eup %2837 }
 0x4c2   :  { %v2840_v7 = vpop.eup %2839  ;;  %v1171_v9 = vmul.f32 %v2838_v11, %v1169_v12  ;;  %2841 = vrcp.f32 %v1208_v18  ;;  %vm1176_vm8 = vweird.f32 %v2838_v11  ;;  %v1220_v35 = vand.u32 2147483648, %v1208_v18  ;;  %v4341_v12 = vld [vmem:[#allocation10 + $0x148] sm:$0xff] }
 0x4c3   :  { %v1190_v19 = vmul.f32 %v2840_v7, %v1188_v51  ;;  %2843 = vtanh.f32 %v1164_v6  ;;  %vm1195_vm9 = vweird.f32 %v2840_v7  ;;  %vm1177_vm12 = vmor %vm1175_vm10, %vm1176_vm8  ;;  %vm1214_vm1 = vweird.f32 %v1208_v18  ;;  %v4344_v51 = vld [vmem:[#allocation10 + $0x150] sm:$0xff]  ;;  %v4362_v6 = vld [vmem:[#allocation10 + $0x100] sm:$0xff] }
 0x4c4   :  { %v1172_v3 = vsub.f32 1.0, %v1171_v9  ;;  %vm1196_vm13 = vmor %vm1194_vm11, %vm1195_vm9  ;;  %v1218_v39 = vand.u32 2147483647, %v1208_v18  ;;  %v1221_v47 = vor.u32 1.1754944e-38, %v1220_v35  ;;  %v4368_v9 = vld [vmem:[#allocation10 + $0x110] sm:$0xff]  ;;  %v4446_v35 = vld [vmem:[#allocation10 + $0x20] sm:$0xff] }
 0x4c5   :  { %v1191_v15 = vsub.f32 1.0, %v1190_v19  ;;  %v4371_v19 = vld [vmem:[#allocation10 + $0x118] sm:$0xff]  ;;  %5447 = vst [vmem:[#allocation33_spill] sm:$0xff] %v4446_v35 }
 0x4c6   :  { %v1173_v10 = vmul.f32 %v2838_v11, %v1172_v3  ;;  %vm1219_vm3 = vcmp.eq.f32.partialorder %v1218_v39, 8.507059e+37  ;;  %v4374_v3 = vld [vmem:[#allocation10 + $0xe0] sm:$0xff]  ;;  %v4449_v39 = vld [vmem:[#allocation10 + $0x28] sm:$0xff] }
 0x4c7   :  { %v1192_v38 = vmul.f32 %v2840_v7, %v1191_v15  ;;  %v4377_v15 = vld [vmem:[#allocation10 + $0xe8] sm:$0xff]  ;;  %5448 = vst [vmem:[#allocation34_spill] sm:$0xff] %v4449_v39 }
 0x4c8   :  { %v2842_v8 = vpop.eup %2841  ;;  %v1174_v2 = vadd.f32 %v2838_v11, %v1173_v10  ;;  %v4386_v10 = vld [vmem:[#allocation10 + $0xc0] sm:$0xff] }
 0x4c9   :  { %v1193_v5 = vadd.f32 %v2840_v7, %v1192_v38  ;;  %v1210_v62 = vmul.f32 %v2842_v8, %v1208_v18  ;;  %v2844_v23 = vpop.eup %2843  ;;  %vm1215_vm0 = vweird.f32 %v2842_v8  ;;  %v4356_v18 = vld [vmem:[#allocation10 + $0x130] sm:$0xff] }
 0x4ca   :  { %v1178_v22 = vsel %vm1177_vm12, %v2838_v11, %v1174_v2  ;;  %vm1216_vm2 = vmor %vm1214_vm1, %vm1215_vm0  ;;  %v4359_v11 = vld [vmem:[#allocation10 + $0x138] sm:$0xff]  ;;  %v4392_v38 = vld [vmem:[#allocation10 + $0xd0] sm:$0xff] }
 0x4cb   :  { %v1183_v24 = vsel %vm1180_vm14, %v1182_v14, %v1178_v22  ;;  %v1197_v25 = vsel %vm1196_vm13, %v2840_v7, %v1193_v5  ;;  %v1211_v26 = vsub.f32 1.0, %v1210_v62  ;;  %v4365_v7 = vld [vmem:[#allocation10 + $0x108] sm:$0xff]  ;;  %5429 = vst [vmem:[#allocation48_spill] sm:$0xff] %v4392_v38  ;;  %v4404_v14 = vld [vmem:[#allocation10 + $0xb0] sm:$0xff]  ;;  %v4407_v5 = vld [vmem:[#allocation10 + $0xb8] sm:$0xff] }
 0x4cc   :  { %v1202_v27 = vsel %vm1199_vm15, %v1201_v21, %v1197_v25  ;;  %v1225_v28 = vmul.f32 %v2844_v23, %v1183_v24  ;;  %v4401_v2 = vld [vmem:[#allocation10 + $0xa8] sm:$0xff]  ;;  %5433 = vst [vmem:[#allocation36_spill] sm:$0xff] %v4404_v14  ;;  %v4410_v62 = vld [vmem:[#allocation10 + $0x80] sm:$0xff]  ;;  %v4416_v22 = vld [vmem:[#allocation10 + $0x90] sm:$0xff] }
 0x4cd   :  { %v1224_v29 = vmul.f32 %v1202_v27, %v4207_v13  ;;  %v1212_v30 = vmul.f32 %v2842_v8, %v1211_v26  ;;  %v4278_v13 = vld [vmem:[#allocation10 + $0x1e0] sm:$0xff]  ;;  %5432 = vst [vmem:[#allocation22_spill] sm:$0xff] %v4401_v2  ;;  %v4413_v21 = vld [vmem:[#allocation10 + $0x88] sm:$0xff]  ;;  %v4419_v23 = vld [vmem:[#allocation10 + $0x98] sm:$0xff] }
 0x4ce   :  { %5434 = vst [vmem:[#allocation23_spill] sm:$0xff] %v4407_v5  ;;  %v4422_v24 = vld [vmem:[#allocation10 + $0x60] sm:$0xff]  ;;  %v4425_v25 = vld [vmem:[#allocation10 + $0x68] sm:$0xff]  ;;  %v4428_v26 = vld [vmem:[#allocation10 + $0x70] sm:$0xff] }
 0x4cf   :  { %v4275_v31 = vadd.f32 %v1225_v28, %v1224_v29  ;;  %v1213_v32 = vadd.f32 %v2842_v8, %v1212_v30  ;;  %5435 = vst [vmem:[#allocation24_spill] sm:$0xff] %v4410_v62  ;;  %v4431_v27 = vld [vmem:[#allocation10 + $0x78] sm:$0xff]  ;;  %v4434_v28 = vld [vmem:[#allocation10 + $0x40] sm:$0xff]  ;;  %v4437_v29 = vld [vmem:[#allocation10 + $0x48] sm:$0xff] }
 0x4d0   :  { %5436 = vst [vmem:[#allocation25_spill] sm:$0xff] %v4413_v21  ;;  %v4440_v30 = vld [vmem:[#allocation10 + $0x50] sm:$0xff] }
 0x4d1   :  { %2845 = vtanh.f32 %v4275_v31  ;;  %v1217_v43 = vsel %vm1216_vm2, %v2842_v8, %v1213_v32  ;;  %v4398_v8 = vld [vmem:[#allocation10 + $0xa0] sm:$0xff]  ;;  %5437 = vst [vmem:[#allocation40_spill] sm:$0xff] %v4416_v22  ;;  %v4443_v32 = vld [vmem:[#allocation10 + $0x58] sm:$0xff] }
 0x4d2   :  { %v1222_v42 = vsel %vm1219_vm3, %v1221_v47, %v1217_v43  ;;  %5431 = vst [vmem:[#allocation21_spill] sm:$0xff] %v4398_v8  ;;  %v4452_v43 = vld [vmem:[#allocation10 + $0x30] sm:$0xff]  ;;  %v4455_v47 = vld [vmem:[#allocation10 + $0x38] sm:$0xff] }
 0x4d3   :  { %5438 = vst [vmem:[#allocation26_spill] sm:$0xff] %v4419_v23 }
 0x4d4   :  { %5439 = vst [vmem:[#allocation27_spill] sm:$0xff] %v4422_v24 }
 0x4d5   :  { %5440 = vst [vmem:[#allocation28_spill] sm:$0xff] %v4425_v25 }
 0x4d6   :  { %5441 = vst [vmem:[#allocation44_spill] sm:$0xff] %v4428_v26 }
 0x4d7   :  { %v2846_v59 = vpop.eup %2845  ;;  %5442 = vst [vmem:[#allocation29_spill] sm:$0xff] %v4431_v27 }
 0x4d8   :  { %v1228_v33 = vmul.f32 %v2846_v59, %v1222_v42  ;;  %5443 = vst [vmem:[#allocation30_spill] sm:$0xff] %v4434_v28  ;;  %v4458_v59 = vld [vmem:[#allocation10] sm:$0xff]  ;;  %v4461_v42 = vld [vmem:[#allocation10 + $0x8] sm:$0xff] }
 0x4d9   :  { %5444 = vst [vmem:[#allocation31_spill] sm:$0xff] %v4437_v29 }
 0x4da   :  { %1230 = vst [vmem:[#allocation12 + $0x30] sm:$0xff] %v1228_v33  ;;  %1252 = vmatmul.f32.vlgmr.msrb.gmra.mxu0 %v1228_v33  ;;  %1272 = vmatmul.f32.vlgmr.msrb.gmra.mxu1 %v1228_v33 }
 0x4db   :  { %1292 = vmatmul.f32.vlgmr.msrb.gmra.mxu2 %v1228_v33  ;;  %1312 = vmatmul.f32.vlgmr.msrb.gmra.mxu3 %v1228_v33  ;;  %5445 = vst [vmem:[#allocation45_spill] sm:$0xff] %v4440_v30  ;;  %v4464_v33 = vld [vmem:[#allocation10 + $0x10] sm:$0xff] }
 0x4dc   :  { %1544 = vmatpush.msrb.mxu0 %v4278_v13  ;;  %1564 = vmatpush.msrb.mxu1 %v4281_v34  ;;  %5446 = vst [vmem:[#allocation32_spill] sm:$0xff] %v4443_v32 }
 0x4dd   :  { %1584 = vmatpush.msrb.mxu2 %v4284_v36  ;;  %1604 = vmatpush.msrb.mxu3 %v4287_v37  ;;  %5449 = vst [vmem:[#allocation46_spill] sm:$0xff] %v4452_v43 }
 0x4de   :  { %1545 = vmatpush.msrb.mxu0 %v4290_v40  ;;  %1565 = vmatpush.msrb.mxu1 %v4293_v49  ;;  %5450 = vst [vmem:[#allocation35_spill] sm:$0xff] %v4455_v47 }
 0x4df   :  { %1585 = vmatpush.msrb.mxu2 %v4296_v46  ;;  %1605 = vmatpush.msrb.mxu3 %v4299_v55  ;;  %5451 = vst [vmem:[#allocation37_spill] sm:$0xff] %v4458_v59 }
 0x4e0   :  { %1546 = vmatpush.msrb.mxu0 %v4302_v48  ;;  %1566 = vmatpush.msrb.mxu1 %v4305_v61  ;;  %5452 = vst [vmem:[#allocation38_spill] sm:$0xff] %v4461_v42 }
 0x4e1   :  { %1586 = vmatpush.msrb.mxu2 %v4308_v54  ;;  %1606 = vmatpush.msrb.mxu3 %v4311_v50  ;;  %5453 = vst [vmem:[#allocation47_spill] sm:$0xff] %v4464_v33 }
 0x4e2   :  { %1547 = vmatpush.msrb.mxu0 %v4314_v44  ;;  %1567 = vmatpush.msrb.mxu1 %v4317_v52 }
 0x4e3   :  { %1587 = vmatpush.msrb.mxu2 %v4320_v63  ;;  %1607 = vmatpush.msrb.mxu3 %v4323_v57 }
 0x4e4   :  { %1548 = vmatpush.msrb.mxu0 %v4326_v0  ;;  %1568 = vmatpush.msrb.mxu1 %v4329_v41 }
 0x4e5   :  { %1588 = vmatpush.msrb.mxu2 %v4332_v60  ;;  %1608 = vmatpush.msrb.mxu3 %v4335_v1 }
 0x4e6   :  { %1549 = vmatpush.msrb.mxu0 %v4338_v4  ;;  %1569 = vmatpush.msrb.mxu1 %v4341_v12 }
 0x4e7   :  { %1589 = vmatpush.msrb.mxu2 %v4344_v51  ;;  %1609 = vmatpush.msrb.mxu3 %v4347_v56 }
 0x4e8   :  { %1550 = vmatpush.msrb.mxu0 %v4350_v58  ;;  %1570 = vmatpush.msrb.mxu1 %v4353_v16 }
 0x4e9   :  { %1590 = vmatpush.msrb.mxu2 %v4356_v18  ;;  %1610 = vmatpush.msrb.mxu3 %v4359_v11 }
 0x4ea   :  { %1551 = vmatpush.msrb.mxu0 %v4362_v6  ;;  %1571 = vmatpush.msrb.mxu1 %v4365_v7 }
 0x4eb   :  { %1591 = vmatpush.msrb.mxu2 %v4368_v9  ;;  %1611 = vmatpush.msrb.mxu3 %v4371_v19 }
 0x4ec   :  { %1552 = vmatpush.msrb.mxu0 %v4374_v3  ;;  %1572 = vmatpush.msrb.mxu1 %v4377_v15 }
 0x4ed   :  { %1592 = vmatpush.msrb.mxu2 %v4380_v45  ;;  %1612 = vmatpush.msrb.mxu3 %v4383_v20 }
 0x4ee   :  { %1553 = vmatpush.msrb.mxu0 %v4386_v10  ;;  %1573 = vmatpush.msrb.mxu1 %v4389_v17 }
 0x4ef   :  { %1593 = vmatpush.msrb.mxu2 %v4392_v38  ;;  %1613 = vmatpush.msrb.mxu3 %v4395_v53 }
 0x4f0   :  { %1554 = vmatpush.msrb.mxu0 %v4398_v8  ;;  %1574 = vmatpush.msrb.mxu1 %v4401_v2 }
 0x4f1   :  { %1594 = vmatpush.msrb.mxu2 %v4404_v14  ;;  %1614 = vmatpush.msrb.mxu3 %v4407_v5 }
 0x4f2   :  { %1555 = vmatpush.msrb.mxu0 %v4410_v62  ;;  %1575 = vmatpush.msrb.mxu1 %v4413_v21 }
 0x4f3   :  { %1595 = vmatpush.msrb.mxu2 %v4416_v22  ;;  %1615 = vmatpush.msrb.mxu3 %v4419_v23 }
 0x4f4   :  { %1556 = vmatpush.msrb.mxu0 %v4422_v24  ;;  %1576 = vmatpush.msrb.mxu1 %v4425_v25 }
 0x4f5   :  { %1596 = vmatpush.msrb.mxu2 %v4428_v26  ;;  %1616 = vmatpush.msrb.mxu3 %v4431_v27  ;;  %v1235_v27 = vld [vmem:[#allocation4 + $0xf8] sm:$0xff] }
 0x4f6   :  { %1557 = vmatpush.msrb.mxu0 %v4434_v28  ;;  %1577 = vmatpush.msrb.mxu1 %v4437_v29 }
 0x4f7   :  { %1597 = vmatpush.msrb.mxu2 %v4440_v30  ;;  %1617 = vmatpush.msrb.mxu3 %v4443_v32 }
 0x4f8   :  { %1558 = vmatpush.msrb.mxu0 %v4446_v35  ;;  %1578 = vmatpush.msrb.mxu1 %v4449_v39  ;;  %v4467_v39 = vld [vmem:[#allocation10 + $0x18] sm:$0xff] }
 0x4f9   :  { %1598 = vmatpush.msrb.mxu2 %v4452_v43  ;;  %1618 = vmatpush.msrb.mxu3 %v4455_v47  ;;  %5454 = vst [vmem:[#allocation39_spill] sm:$0xff] %v4467_v39  ;;  %v1232_v43 = vld [vmem:[#allocation4 + $0xe0] sm:$0xff]  ;;  %v1233_v35 = vld [vmem:[#allocation4 + $0xe8] sm:$0xff] }
 0x4fa   :  { %1559 = vmatpush.msrb.mxu0 %v4458_v59  ;;  %1579 = vmatpush.msrb.mxu1 %v4461_v42 }
 0x4fb   :  { %1599 = vmatpush.msrb.mxu2 %v4464_v33  ;;  %1619 = vmatpush.msrb.mxu3 %v4467_v39  ;;  %v1234_v39 = vld [vmem:[#allocation4 + $0xf0] sm:$0xff] }
 0x557   :  { %v1253_v32 = vpop.f32.mrf.mxu0  ;;  %v1273_v47 = vpop.f32.mrf.mxu1 }
 0x558   :  { %v1316_v30 = vadd.f32 %v1253_v32, %v1232_v43  ;;  %v1317_v29 = vadd.f32 %v1273_v47, %v1233_v35 }
 0x55a   :  { %v2697_v28 = vmul.f32 -1.442695, %v1316_v30  ;;  %v2698_v59 = vmul.f32 -1.442695, %v1317_v29 }
 0x55c   :  { %2847 = vpow2.f32 %v2697_v28 }
 0x55d   :  { %2849 = vpow2.f32 %v2698_v59 }
 0x55e   :  { %v1313_v42 = vpop.f32.mrf.mxu3  ;;  %v1293_v21 = vpop.f32.mrf.mxu2 }
 0x55f   :  { %v1319_v26 = vadd.f32 %v1313_v42, %v1235_v27  ;;  %v1318_v30 = vadd.f32 %v1293_v21, %v1234_v39 }
 0x561   :  { %v2699_v25 = vmul.f32 -1.442695, %v1319_v26 }
 0x562   :  { %v2848_v24 = vpop.eup %2847 }
 0x563   :  { %v2850_v33 = vpop.eup %2849  ;;  %v1323_v23 = vadd.f32 1.0, %v2848_v24  ;;  %2851 = vpow2.f32 %v2699_v25 }
 0x564   :  { %v1342_v22 = vadd.f32 1.0, %v2850_v33 }
 0x565   :  { %2853 = vrcp.f32 %v1323_v23  ;;  %v1335_v26 = vand.u32 2147483648, %v1323_v23  ;;  %v1333_v25 = vand.u32 2147483647, %v1323_v23  ;;  %vm1329_vm6 = vweird.f32 %v1323_v23 }
 0x566   :  { %2855 = vrcp.f32 %v1342_v22  ;;  %v1354_v59 = vand.u32 2147483648, %v1342_v22  ;;  %v1352_v33 = vand.u32 2147483647, %v1342_v22  ;;  %vm1348_vm7 = vweird.f32 %v1342_v22 }
 0x567   :  { %vm1334_vm10 = vcmp.eq.f32.partialorder %v1333_v25, 8.507059e+37 }
 0x568   :  { %vm1353_vm11 = vcmp.eq.f32.partialorder %v1352_v33, 8.507059e+37  ;;  %v5462_v33 = vld [vmem:[#allocation25_spill] sm:$0xff] }
 0x569   :  { %v2852_v62 = vpop.eup %2851 }
 0x56a   :  { %v1362_v32 = vadd.f32 1.0, %v2852_v62  ;;  %v1336_v62 = vor.u32 1.1754944e-38, %v1335_v26 }
 0x56b   :  { %v2854_v35 = vpop.eup %2853 }
 0x56c   :  { %v2856_v29 = vpop.eup %2855  ;;  %v1325_v28 = vmul.f32 %v2854_v35, %v1323_v23  ;;  %2857 = vrcp.f32 %v1362_v32  ;;  %vm1330_vm4 = vweird.f32 %v2854_v35  ;;  %v1374_v26 = vand.u32 2147483648, %v1362_v32 }
 0x56d   :  { %v1344_v43 = vmul.f32 %v2856_v29, %v1342_v22  ;;  %2859 = vtanh.f32 %v1318_v30  ;;  %vm1349_vm5 = vweird.f32 %v2856_v29  ;;  %vm1331_vm8 = vmor %vm1329_vm6, %vm1330_vm4  ;;  %vm1368_vm13 = vweird.f32 %v1362_v32 }
 0x56e   :  { %v1326_v47 = vsub.f32 1.0, %v1325_v28  ;;  %vm1350_vm9 = vmor %vm1348_vm7, %vm1349_vm5  ;;  %v1355_v28 = vor.u32 1.1754944e-38, %v1354_v59  ;;  %v1375_v59 = vor.u32 1.1754944e-38, %v1374_v26  ;;  %v5473_v26 = vld [vmem:[#allocation33_spill] sm:$0xff] }
 0x56f   :  { %v1345_v27 = vsub.f32 1.0, %v1344_v43 }
 0x570   :  { %v1327_v24 = vmul.f32 %v2854_v35, %v1326_v47 }
 0x571   :  { %v1346_v42 = vmul.f32 %v2856_v29, %v1345_v27 }
 0x572   :  { %v2858_v5 = vpop.eup %2857  ;;  %v1328_v14 = vadd.f32 %v2854_v35, %v1327_v24 }
 0x573   :  { %v1347_v21 = vadd.f32 %v2856_v29, %v1346_v42  ;;  %v1364_v39 = vmul.f32 %v2858_v5, %v1362_v32  ;;  %v2860_v30 = vpop.eup %2859  ;;  %vm1369_vm12 = vweird.f32 %v2858_v5 }
 0x574   :  { %v1332_v43 = vsel %vm1331_vm8, %v2854_v35, %v1328_v14  ;;  %v1372_v14 = vand.u32 2147483647, %v1362_v32  ;;  %vm1370_vm14 = vmor %vm1368_vm13, %vm1369_vm12  ;;  %v5461_v32 = vld [vmem:[#allocation24_spill] sm:$0xff] }
 0x575   :  { %v1337_v2 = vsel %vm1334_vm10, %v1336_v62, %v1332_v43  ;;  %v1351_v47 = vsel %vm1350_vm9, %v2856_v29, %v1347_v21  ;;  %v1365_v8 = vsub.f32 1.0, %v1364_v39  ;;  %v5463_v62 = vld [vmem:[#allocation40_spill] sm:$0xff]  ;;  %v5464_v21 = vld [vmem:[#allocation26_spill] sm:$0xff]  ;;  %v5465_v39 = vld [vmem:[#allocation27_spill] sm:$0xff] }
 0x576   :  { %v1356_v27 = vsel %vm1353_vm11, %v1355_v28, %v1351_v47  ;;  %v1379_v53 = vmul.f32 %v2860_v30, %v1337_v2  ;;  %vm1373_vm15 = vcmp.eq.f32.partialorder %v1372_v14, 8.507059e+37  ;;  %v5459_v2 = vld [vmem:[#allocation36_spill] sm:$0xff]  ;;  %v5468_v30 = vld [vmem:[#allocation29_spill] sm:$0xff]  ;;  %v5469_v47 = vld [vmem:[#allocation30_spill] sm:$0xff] }
 0x577   :  { %v1378_v38 = vmul.f32 %v1356_v27, %v4275_v31  ;;  %v1366_v24 = vmul.f32 %v2858_v5, %v1365_v8  ;;  %v5455_v31 = vld [vmem:[#allocation48_spill] sm:$0xff]  ;;  %v5458_v8 = vld [vmem:[#allocation22_spill] sm:$0xff]  ;;  %v5470_v27 = vld [vmem:[#allocation31_spill] sm:$0xff] }
 0x578   :  { %v5466_v28 = vld [vmem:[#allocation28_spill] sm:$0xff]  ;;  %v5474_v14 = vld [vmem:[#allocation34_spill] sm:$0xff] }
 0x579   :  { %v4471_v23 = vadd.f32 %v1379_v53, %v1378_v38  ;;  %v1367_v22 = vadd.f32 %v2858_v5, %v1366_v24  ;;  %v5456_v38 = vld [vmem:[#allocation43_spill] sm:$0xff]  ;;  %v5457_v53 = vld [vmem:[#allocation21_spill] sm:$0xff]  ;;  %v5467_v43 = vld [vmem:[#allocation44_spill] sm:$0xff] }
 0x57a   :  { %v5471_v24 = vld [vmem:[#allocation45_spill] sm:$0xff] }
 0x57b   :  { %2861 = vtanh.f32 %v4471_v23  ;;  %v1371_v35 = vsel %vm1370_vm14, %v2858_v5, %v1367_v22  ;;  %v5460_v5 = vld [vmem:[#allocation23_spill] sm:$0xff]  ;;  %v5472_v22 = vld [vmem:[#allocation32_spill] sm:$0xff] }
 0x57c   :  { %v1376_v25 = vsel %vm1373_vm15, %v1375_v59, %v1371_v35  ;;  %v5475_v35 = vld [vmem:[#allocation46_spill] sm:$0xff]  ;;  %v5476_v59 = vld [vmem:[#allocation35_spill] sm:$0xff] }
 0x581   :  { %v2862_v29 = vpop.eup %2861 }
 0x582   :  { %v1382_v42 = vmul.f32 %v2862_v29, %v1376_v25  ;;  %v5477_v29 = vld [vmem:[#allocation37_spill] sm:$0xff]  ;;  %v5478_v25 = vld [vmem:[#allocation38_spill] sm:$0xff] }
 0x584   :  { %1384 = vst [vmem:[#allocation12 + $0x38] sm:$0xff] %v1382_v42  ;;  %1406 = vmatmul.f32.vlgmr.msra.gmra.mxu0 %v1382_v42  ;;  %1426 = vmatmul.f32.vlgmr.msra.gmra.mxu1 %v1382_v42 }
 0x585   :  { %1446 = vmatmul.f32.vlgmr.msra.gmra.mxu2 %v1382_v42  ;;  %1466 = vmatmul.f32.vlgmr.msra.gmra.mxu3 %v1382_v42  ;;  %v5479_v42 = vld [vmem:[#allocation47_spill] sm:$0xff] }
 0x586   :  { %1698 = vmatpush.msra.mxu0 %v4278_v13  ;;  %1718 = vmatpush.msra.mxu1 %v4281_v34 }
 0x587   :  { %1738 = vmatpush.msra.mxu2 %v4284_v36  ;;  %1758 = vmatpush.msra.mxu3 %v4287_v37 }
 0x588   :  { %1699 = vmatpush.msra.mxu0 %v4290_v40  ;;  %1719 = vmatpush.msra.mxu1 %v4293_v49 }
 0x589   :  { %1739 = vmatpush.msra.mxu2 %v4296_v46  ;;  %1759 = vmatpush.msra.mxu3 %v4299_v55 }
 0x58a   :  { %1700 = vmatpush.msra.mxu0 %v4302_v48  ;;  %1720 = vmatpush.msra.mxu1 %v4305_v61 }
 0x58b   :  { %1740 = vmatpush.msra.mxu2 %v4308_v54  ;;  %1760 = vmatpush.msra.mxu3 %v4311_v50 }
 0x58c   :  { %1701 = vmatpush.msra.mxu0 %v4314_v44  ;;  %1721 = vmatpush.msra.mxu1 %v4317_v52 }
 0x58d   :  { %1741 = vmatpush.msra.mxu2 %v4320_v63  ;;  %1761 = vmatpush.msra.mxu3 %v4323_v57 }
 0x58e   :  { %1702 = vmatpush.msra.mxu0 %v4326_v0  ;;  %1722 = vmatpush.msra.mxu1 %v4329_v41 }
 0x58f   :  { %1742 = vmatpush.msra.mxu2 %v4332_v60  ;;  %1762 = vmatpush.msra.mxu3 %v4335_v1 }
 0x590   :  { %1703 = vmatpush.msra.mxu0 %v4338_v4  ;;  %1723 = vmatpush.msra.mxu1 %v4341_v12 }
 0x591   :  { %1743 = vmatpush.msra.mxu2 %v4344_v51  ;;  %1763 = vmatpush.msra.mxu3 %v4347_v56 }
 0x592   :  { %1704 = vmatpush.msra.mxu0 %v4350_v58  ;;  %1724 = vmatpush.msra.mxu1 %v4353_v16 }
 0x593   :  { %1744 = vmatpush.msra.mxu2 %v4356_v18  ;;  %1764 = vmatpush.msra.mxu3 %v4359_v11 }
 0x594   :  { %1705 = vmatpush.msra.mxu0 %v4362_v6  ;;  %1725 = vmatpush.msra.mxu1 %v4365_v7 }
 0x595   :  { %1745 = vmatpush.msra.mxu2 %v4368_v9  ;;  %1765 = vmatpush.msra.mxu3 %v4371_v19 }
 0x596   :  { %1706 = vmatpush.msra.mxu0 %v4374_v3  ;;  %1726 = vmatpush.msra.mxu1 %v4377_v15 }
 0x597   :  { %1746 = vmatpush.msra.mxu2 %v4380_v45  ;;  %1766 = vmatpush.msra.mxu3 %v4383_v20 }
 0x598   :  { %1707 = vmatpush.msra.mxu0 %v4386_v10  ;;  %1727 = vmatpush.msra.mxu1 %v4389_v17 }
 0x599   :  { %1747 = vmatpush.msra.mxu2 %v5455_v31  ;;  %1767 = vmatpush.msra.mxu3 %v5456_v38 }
 0x59a   :  { %1708 = vmatpush.msra.mxu0 %v5457_v53  ;;  %1728 = vmatpush.msra.mxu1 %v5458_v8 }
 0x59b   :  { %1748 = vmatpush.msra.mxu2 %v5459_v2  ;;  %1768 = vmatpush.msra.mxu3 %v5460_v5 }
 0x59c   :  { %1709 = vmatpush.msra.mxu0 %v5461_v32  ;;  %1729 = vmatpush.msra.mxu1 %v5462_v33 }
 0x59d   :  { %1749 = vmatpush.msra.mxu2 %v5463_v62  ;;  %1769 = vmatpush.msra.mxu3 %v5464_v21 }
 0x59e   :  { %1710 = vmatpush.msra.mxu0 %v5465_v39  ;;  %1730 = vmatpush.msra.mxu1 %v5466_v28 }
 0x59f   :  { %1750 = vmatpush.msra.mxu2 %v5467_v43  ;;  %1770 = vmatpush.msra.mxu3 %v5468_v30 }
 0x5a0   :  { %1711 = vmatpush.msra.mxu0 %v5469_v47  ;;  %1731 = vmatpush.msra.mxu1 %v5470_v27  ;;  %v5480_v47 = vld [vmem:[#allocation39_spill] sm:$0xff]  ;;  %v1386_v27 = vld [vmem:[#allocation4 + $0x100] sm:$0xff] }
 0x5a1   :  { %1751 = vmatpush.msra.mxu2 %v5471_v24  ;;  %1771 = vmatpush.msra.mxu3 %v5472_v22  ;;  %v1387_v24 = vld [vmem:[#allocation4 + $0x108] sm:$0xff] }
 0x5a2   :  { %1712 = vmatpush.msra.mxu0 %v5473_v26  ;;  %1732 = vmatpush.msra.mxu1 %v5474_v14 }
 0x5a3   :  { %1752 = vmatpush.msra.mxu2 %v5475_v35  ;;  %1772 = vmatpush.msra.mxu3 %v5476_v59  ;;  %v1389_v35 = vld [vmem:[#allocation4 + $0x118] sm:$0xff] }
 0x5a4   :  { %1713 = vmatpush.msra.mxu0 %v5477_v29  ;;  %1733 = vmatpush.msra.mxu1 %v5478_v25 }
 0x5a5   :  { %1753 = vmatpush.msra.mxu2 %v5479_v42  ;;  %1773 = vmatpush.msra.mxu3 %v5480_v47  ;;  %v1388_v47 = vld [vmem:[#allocation4 + $0x110] sm:$0xff] }
 0x601   :  { %v1407_v30 = vpop.f32.mrf.mxu0  ;;  %v1427_v22 = vpop.f32.mrf.mxu1 }
 0x602   :  { %v1470_v43 = vadd.f32 %v1407_v30, %v1386_v27  ;;  %v1471_v26 = vadd.f32 %v1427_v22, %v1387_v24 }
 0x604   :  { %v2700_v28 = vmul.f32 -1.442695, %v1470_v43  ;;  %v2701_v14 = vmul.f32 -1.442695, %v1471_v26 }
 0x606   :  { %2863 = vpow2.f32 %v2700_v28 }
 0x607   :  { %2865 = vpow2.f32 %v2701_v14 }
 0x608   :  { %v1467_v59 = vpop.f32.mrf.mxu3  ;;  %v1447_v33 = vpop.f32.mrf.mxu2 }
 0x609   :  { %v1473_v39 = vadd.f32 %v1467_v59, %v1389_v35  ;;  %v1472_v43 = vadd.f32 %v1447_v33, %v1388_v47 }
 0x60b   :  { %v2702_v29 = vmul.f32 -1.442695, %v1473_v39 }
 0x60c   :  { %v2864_v21 = vpop.eup %2863 }
 0x60d   :  { %v2866_v25 = vpop.eup %2865  ;;  %v1477_v62 = vadd.f32 1.0, %v2864_v21  ;;  %2867 = vpow2.f32 %v2702_v29 }
 0x60e   :  { %v1496_v42 = vadd.f32 1.0, %v2866_v25 }
 0x60f   :  { %2869 = vrcp.f32 %v1477_v62  ;;  %v1489_v39 = vand.u32 2147483648, %v1477_v62  ;;  %v1487_v59 = vand.u32 2147483647, %v1477_v62  ;;  %vm1483_vm2 = vweird.f32 %v1477_v62 }
 0x610   :  { %2871 = vrcp.f32 %v1496_v42  ;;  %v1508_v35 = vand.u32 2147483648, %v1496_v42  ;;  %v1506_v25 = vand.u32 2147483647, %v1496_v42  ;;  %vm1502_vm3 = vweird.f32 %v1496_v42 }
 0x611   :  { %vm1488_vm6 = vcmp.eq.f32.partialorder %v1487_v59, 8.507059e+37 }
 0x612   :  { %vm1507_vm7 = vcmp.eq.f32.partialorder %v1506_v25, 8.507059e+37  ;;  %v5488_v25 = vld [vmem:[#allocation25_spill] sm:$0xff] }
 0x613   :  { %v2868_v32 = vpop.eup %2867 }
 0x614   :  { %v1516_v30 = vadd.f32 1.0, %v2868_v32  ;;  %v1490_v32 = vor.u32 1.1754944e-38, %v1489_v39 }
 0x615   :  { %v2870_v27 = vpop.eup %2869 }
 0x616   :  { %v2872_v24 = vpop.eup %2871  ;;  %v1479_v28 = vmul.f32 %v2870_v27, %v1477_v62  ;;  %2873 = vrcp.f32 %v1516_v30  ;;  %vm1484_vm0 = vweird.f32 %v2870_v27  ;;  %v1528_v39 = vand.u32 2147483648, %v1516_v30 }
 0x617   :  { %v1498_v22 = vmul.f32 %v2872_v24, %v1496_v42  ;;  %2875 = vtanh.f32 %v1472_v43  ;;  %vm1503_vm1 = vweird.f32 %v2872_v24  ;;  %vm1485_vm4 = vmor %vm1483_vm2, %vm1484_vm0  ;;  %vm1522_vm9 = vweird.f32 %v1516_v30 }
 0x618   :  { %v1480_v26 = vsub.f32 1.0, %v1479_v28  ;;  %vm1504_vm5 = vmor %vm1502_vm3, %vm1503_vm1  ;;  %v1509_v28 = vor.u32 1.1754944e-38, %v1508_v35  ;;  %v1529_v35 = vor.u32 1.1754944e-38, %v1528_v39  ;;  %v5499_v39 = vld [vmem:[#allocation33_spill] sm:$0xff] }
 0x619   :  { %v1499_v14 = vsub.f32 1.0, %v1498_v22 }
 0x61a   :  { %v1481_v21 = vmul.f32 %v2870_v27, %v1480_v26 }
 0x61b   :  { %v1500_v29 = vmul.f32 %v2872_v24, %v1499_v14 }
 0x61c   :  { %v2874_v5 = vpop.eup %2873  ;;  %v1482_v2 = vadd.f32 %v2870_v27, %v1481_v21 }
 0x61d   :  { %v1501_v33 = vadd.f32 %v2872_v24, %v1500_v29  ;;  %v1518_v47 = vmul.f32 %v2874_v5, %v1516_v30  ;;  %v2876_v43 = vpop.eup %2875  ;;  %vm1523_vm8 = vweird.f32 %v2874_v5 }
 0x61e   :  { %v1486_v22 = vsel %vm1485_vm4, %v2870_v27, %v1482_v2  ;;  %v1526_v2 = vand.u32 2147483647, %v1516_v30  ;;  %vm1524_vm10 = vmor %vm1522_vm9, %vm1523_vm8  ;;  %v5487_v30 = vld [vmem:[#allocation24_spill] sm:$0xff] }
 0x61f   :  { %v1491_v8 = vsel %vm1488_vm6, %v1490_v32, %v1486_v22  ;;  %v1505_v26 = vsel %vm1504_vm5, %v2872_v24, %v1501_v33  ;;  %v1519_v53 = vsub.f32 1.0, %v1518_v47  ;;  %v5489_v32 = vld [vmem:[#allocation40_spill] sm:$0xff]  ;;  %v5490_v33 = vld [vmem:[#allocation26_spill] sm:$0xff]  ;;  %v5491_v47 = vld [vmem:[#allocation27_spill] sm:$0xff] }
 0x620   :  { %v1510_v14 = vsel %vm1507_vm7, %v1509_v28, %v1505_v26  ;;  %v1533_v38 = vmul.f32 %v2876_v43, %v1491_v8  ;;  %vm1527_vm11 = vcmp.eq.f32.partialorder %v1526_v2, 8.507059e+37  ;;  %v5485_v8 = vld [vmem:[#allocation36_spill] sm:$0xff]  ;;  %v5494_v43 = vld [vmem:[#allocation29_spill] sm:$0xff]  ;;  %v5495_v26 = vld [vmem:[#allocation30_spill] sm:$0xff] }
 0x621   :  { %v1532_v31 = vmul.f32 %v1510_v14, %v4471_v23  ;;  %v1520_v21 = vmul.f32 %v2874_v5, %v1519_v53  ;;  %v5481_v23 = vld [vmem:[#allocation48_spill] sm:$0xff]  ;;  %v5484_v53 = vld [vmem:[#allocation22_spill] sm:$0xff]  ;;  %v5496_v14 = vld [vmem:[#allocation31_spill] sm:$0xff] }
 0x622   :  { %v5492_v28 = vld [vmem:[#allocation28_spill] sm:$0xff]  ;;  %v5500_v2 = vld [vmem:[#allocation34_spill] sm:$0xff] }
 0x623   :  { %v4539_v62 = vadd.f32 %v1533_v38, %v1532_v31  ;;  %v1521_v42 = vadd.f32 %v2874_v5, %v1520_v21  ;;  %v5482_v31 = vld [vmem:[#allocation43_spill] sm:$0xff]  ;;  %v5483_v38 = vld [vmem:[#allocation21_spill] sm:$0xff]  ;;  %v5493_v22 = vld [vmem:[#allocation44_spill] sm:$0xff] }
 0x624   :  { %v5497_v21 = vld [vmem:[#allocation45_spill] sm:$0xff] }
 0x625   :  { %2877 = vtanh.f32 %v4539_v62  ;;  %v1525_v27 = vsel %vm1524_vm10, %v2874_v5, %v1521_v42  ;;  %v5486_v5 = vld [vmem:[#allocation23_spill] sm:$0xff]  ;;  %v5498_v42 = vld [vmem:[#allocation32_spill] sm:$0xff] }
 0x626   :  { %v1530_v59 = vsel %vm1527_vm11, %v1529_v35, %v1525_v27  ;;  %v5501_v27 = vld [vmem:[#allocation46_spill] sm:$0xff]  ;;  %v5502_v35 = vld [vmem:[#allocation35_spill] sm:$0xff] }
 0x62b   :  { %v2878_v24 = vpop.eup %2877 }
 0x62c   :  { %v1536_v29 = vmul.f32 %v2878_v24, %v1530_v59  ;;  %v5503_v24 = vld [vmem:[#allocation37_spill] sm:$0xff]  ;;  %v5504_v59 = vld [vmem:[#allocation38_spill] sm:$0xff] }
 0x62e   :  { %1538 = vst [vmem:[#allocation12 + $0x40] sm:$0xff] %v1536_v29  ;;  %1560 = vmatmul.f32.vlgmr.msrb.gmra.mxu0 %v1536_v29  ;;  %1580 = vmatmul.f32.vlgmr.msrb.gmra.mxu1 %v1536_v29 }
 0x62f   :  { %1600 = vmatmul.f32.vlgmr.msrb.gmra.mxu2 %v1536_v29  ;;  %1620 = vmatmul.f32.vlgmr.msrb.gmra.mxu3 %v1536_v29  ;;  %v5505_v29 = vld [vmem:[#allocation47_spill] sm:$0xff] }
 0x630   :  { %1852 = vmatpush.msrb.mxu0 %v4278_v13  ;;  %1872 = vmatpush.msrb.mxu1 %v4281_v34 }
 0x631   :  { %1892 = vmatpush.msrb.mxu2 %v4284_v36  ;;  %1912 = vmatpush.msrb.mxu3 %v4287_v37 }
 0x632   :  { %1853 = vmatpush.msrb.mxu0 %v4290_v40  ;;  %1873 = vmatpush.msrb.mxu1 %v4293_v49 }
 0x633   :  { %1893 = vmatpush.msrb.mxu2 %v4296_v46  ;;  %1913 = vmatpush.msrb.mxu3 %v4299_v55 }
 0x634   :  { %1854 = vmatpush.msrb.mxu0 %v4302_v48  ;;  %1874 = vmatpush.msrb.mxu1 %v4305_v61 }
 0x635   :  { %1894 = vmatpush.msrb.mxu2 %v4308_v54  ;;  %1914 = vmatpush.msrb.mxu3 %v4311_v50 }
 0x636   :  { %1855 = vmatpush.msrb.mxu0 %v4314_v44  ;;  %1875 = vmatpush.msrb.mxu1 %v4317_v52 }
 0x637   :  { %1895 = vmatpush.msrb.mxu2 %v4320_v63  ;;  %1915 = vmatpush.msrb.mxu3 %v4323_v57 }
 0x638   :  { %1856 = vmatpush.msrb.mxu0 %v4326_v0  ;;  %1876 = vmatpush.msrb.mxu1 %v4329_v41 }
 0x639   :  { %1896 = vmatpush.msrb.mxu2 %v4332_v60  ;;  %1916 = vmatpush.msrb.mxu3 %v4335_v1 }
 0x63a   :  { %1857 = vmatpush.msrb.mxu0 %v4338_v4  ;;  %1877 = vmatpush.msrb.mxu1 %v4341_v12 }
 0x63b   :  { %1897 = vmatpush.msrb.mxu2 %v4344_v51  ;;  %1917 = vmatpush.msrb.mxu3 %v4347_v56 }
 0x63c   :  { %1858 = vmatpush.msrb.mxu0 %v4350_v58  ;;  %1878 = vmatpush.msrb.mxu1 %v4353_v16 }
 0x63d   :  { %1898 = vmatpush.msrb.mxu2 %v4356_v18  ;;  %1918 = vmatpush.msrb.mxu3 %v4359_v11 }
 0x63e   :  { %1859 = vmatpush.msrb.mxu0 %v4362_v6  ;;  %1879 = vmatpush.msrb.mxu1 %v4365_v7 }
 0x63f   :  { %1899 = vmatpush.msrb.mxu2 %v4368_v9  ;;  %1919 = vmatpush.msrb.mxu3 %v4371_v19 }
 0x640   :  { %1860 = vmatpush.msrb.mxu0 %v4374_v3  ;;  %1880 = vmatpush.msrb.mxu1 %v4377_v15 }
 0x641   :  { %1900 = vmatpush.msrb.mxu2 %v4380_v45  ;;  %1920 = vmatpush.msrb.mxu3 %v4383_v20 }
 0x642   :  { %1861 = vmatpush.msrb.mxu0 %v4386_v10  ;;  %1881 = vmatpush.msrb.mxu1 %v4389_v17 }
 0x643   :  { %1901 = vmatpush.msrb.mxu2 %v5481_v23  ;;  %1921 = vmatpush.msrb.mxu3 %v5482_v31 }
 0x644   :  { %1862 = vmatpush.msrb.mxu0 %v5483_v38  ;;  %1882 = vmatpush.msrb.mxu1 %v5484_v53 }
 0x645   :  { %1902 = vmatpush.msrb.mxu2 %v5485_v8  ;;  %1922 = vmatpush.msrb.mxu3 %v5486_v5 }
 0x646   :  { %1863 = vmatpush.msrb.mxu0 %v5487_v30  ;;  %1883 = vmatpush.msrb.mxu1 %v5488_v25 }
 0x647   :  { %1903 = vmatpush.msrb.mxu2 %v5489_v32  ;;  %1923 = vmatpush.msrb.mxu3 %v5490_v33 }
 0x648   :  { %1864 = vmatpush.msrb.mxu0 %v5491_v47  ;;  %1884 = vmatpush.msrb.mxu1 %v5492_v28 }
 0x649   :  { %1904 = vmatpush.msrb.mxu2 %v5493_v22  ;;  %1924 = vmatpush.msrb.mxu3 %v5494_v43 }
 0x64a   :  { %1865 = vmatpush.msrb.mxu0 %v5495_v26  ;;  %1885 = vmatpush.msrb.mxu1 %v5496_v14  ;;  %v5506_v26 = vld [vmem:[#allocation39_spill] sm:$0xff]  ;;  %v1540_v14 = vld [vmem:[#allocation4 + $0x120] sm:$0xff] }
 0x64b   :  { %1905 = vmatpush.msrb.mxu2 %v5497_v21  ;;  %1925 = vmatpush.msrb.mxu3 %v5498_v42  ;;  %v1541_v21 = vld [vmem:[#allocation4 + $0x128] sm:$0xff] }
 0x64c   :  { %1866 = vmatpush.msrb.mxu0 %v5499_v39  ;;  %1886 = vmatpush.msrb.mxu1 %v5500_v2 }
 0x64d   :  { %1906 = vmatpush.msrb.mxu2 %v5501_v27  ;;  %1926 = vmatpush.msrb.mxu3 %v5502_v35  ;;  %v1543_v27 = vld [vmem:[#allocation4 + $0x138] sm:$0xff] }
 0x64e   :  { %1867 = vmatpush.msrb.mxu0 %v5503_v24  ;;  %1887 = vmatpush.msrb.mxu1 %v5504_v59 }
 0x64f   :  { %1907 = vmatpush.msrb.mxu2 %v5505_v29  ;;  %1927 = vmatpush.msrb.mxu3 %v5506_v26  ;;  %v1542_v26 = vld [vmem:[#allocation4 + $0x130] sm:$0xff] }
 0x6ab   :  { %v1561_v43 = vpop.f32.mrf.mxu0  ;;  %v1581_v42 = vpop.f32.mrf.mxu1 }
 0x6ac   :  { %v1624_v22 = vadd.f32 %v1561_v43, %v1540_v14  ;;  %v1625_v39 = vadd.f32 %v1581_v42, %v1541_v21 }
 0x6ae   :  { %v2703_v28 = vmul.f32 -1.442695, %v1624_v22  ;;  %v2704_v2 = vmul.f32 -1.442695, %v1625_v39 }
 0x6b0   :  { %2879 = vpow2.f32 %v2703_v28 }
 0x6b1   :  { %2881 = vpow2.f32 %v2704_v2 }
 0x6b2   :  { %v1621_v35 = vpop.f32.mrf.mxu3  ;;  %v1601_v25 = vpop.f32.mrf.mxu2 }
 0x6b3   :  { %v1627_v47 = vadd.f32 %v1621_v35, %v1543_v27  ;;  %v1626_v22 = vadd.f32 %v1601_v25, %v1542_v26 }
 0x6b5   :  { %v2705_v24 = vmul.f32 -1.442695, %v1627_v47 }
 0x6b6   :  { %v2880_v33 = vpop.eup %2879 }
 0x6b7   :  { %v2882_v59 = vpop.eup %2881  ;;  %v1631_v32 = vadd.f32 1.0, %v2880_v33  ;;  %2883 = vpow2.f32 %v2705_v24 }
 0x6b8   :  { %v1650_v29 = vadd.f32 1.0, %v2882_v59 }
 0x6b9   :  { %2885 = vrcp.f32 %v1631_v32  ;;  %v1643_v47 = vand.u32 2147483648, %v1631_v32  ;;  %v1641_v35 = vand.u32 2147483647, %v1631_v32  ;;  %vm1637_vm14 = vweird.f32 %v1631_v32 }
 0x6ba   :  { %2887 = vrcp.f32 %v1650_v29  ;;  %v1662_v27 = vand.u32 2147483648, %v1650_v29  ;;  %v1660_v59 = vand.u32 2147483647, %v1650_v29  ;;  %vm1656_vm15 = vweird.f32 %v1650_v29 }
 0x6bb   :  { %vm1642_vm2 = vcmp.eq.f32.partialorder %v1641_v35, 8.507059e+37 }
 0x6bc   :  { %vm1661_vm3 = vcmp.eq.f32.partialorder %v1660_v59, 8.507059e+37 }
 0x6bd   :  { %v2884_v30 = vpop.eup %2883 }
 0x6be   :  { %v1670_v43 = vadd.f32 1.0, %v2884_v30  ;;  %v1644_v30 = vor.u32 1.1754944e-38, %v1643_v47 }
 0x6bf   :  { %v2886_v14 = vpop.eup %2885 }
 0x6c0   :  { %v2888_v21 = vpop.eup %2887  ;;  %v1633_v28 = vmul.f32 %v2886_v14, %v1631_v32  ;;  %2889 = vrcp.f32 %v1670_v43  ;;  %vm1638_vm12 = vweird.f32 %v2886_v14  ;;  %v1682_v47 = vand.u32 2147483648, %v1670_v43 }
 0x6c1   :  { %v1652_v42 = vmul.f32 %v2888_v21, %v1650_v29  ;;  %2891 = vtanh.f32 %v1626_v22  ;;  %vm1657_vm13 = vweird.f32 %v2888_v21  ;;  %vm1639_vm0 = vmor %vm1637_vm14, %vm1638_vm12  ;;  %vm1676_vm5 = vweird.f32 %v1670_v43 }
 0x6c2   :  { %v1634_v39 = vsub.f32 1.0, %v1633_v28  ;;  %vm1658_vm1 = vmor %vm1656_vm15, %vm1657_vm13  ;;  %v1663_v28 = vor.u32 1.1754944e-38, %v1662_v27  ;;  %v1683_v27 = vor.u32 1.1754944e-38, %v1682_v47 }
 0x6c3   :  { %v1653_v2 = vsub.f32 1.0, %v1652_v42 }
 0x6c4   :  { %v1635_v33 = vmul.f32 %v2886_v14, %v1634_v39 }
 0x6c5   :  { %v1654_v24 = vmul.f32 %v2888_v21, %v1653_v2 }
 0x6c6   :  { %v2890_v5 = vpop.eup %2889  ;;  %v1636_v8 = vadd.f32 %v2886_v14, %v1635_v33 }
 0x6c7   :  { %v1655_v25 = vadd.f32 %v2888_v21, %v1654_v24  ;;  %v1672_v26 = vmul.f32 %v2890_v5, %v1670_v43  ;;  %v2892_v22 = vpop.eup %2891  ;;  %vm1677_vm4 = vweird.f32 %v2890_v5 }
 0x6c8   :  { %v1640_v42 = vsel %vm1639_vm0, %v2886_v14, %v1636_v8  ;;  %v1680_v8 = vand.u32 2147483647, %v1670_v43  ;;  %vm1678_vm6 = vmor %vm1676_vm5, %vm1677_vm4 }
 0x6c9   :  { %v1645_v53 = vsel %vm1642_vm2, %v1644_v30, %v1640_v42  ;;  %v1659_v39 = vsel %vm1658_vm1, %v2888_v21, %v1655_v25  ;;  %v1673_v38 = vsub.f32 1.0, %v1672_v26 }
 0x6ca   :  { %v1664_v2 = vsel %vm1661_vm3, %v1663_v28, %v1659_v39  ;;  %v1687_v31 = vmul.f32 %v2892_v22, %v1645_v53  ;;  %vm1681_vm7 = vcmp.eq.f32.partialorder %v1680_v8, 8.507059e+37  ;;  %v1696_v53 = vld [vmem:[#allocation4 + $0x150] sm:$0xff] }
 0x6cb   :  { %v1686_v23 = vmul.f32 %v1664_v2, %v4539_v62  ;;  %v1674_v33 = vmul.f32 %v2890_v5, %v1673_v38 }
 0x6cd   :  { %v4607_v32 = vadd.f32 %v1687_v31, %v1686_v23  ;;  %v1675_v29 = vadd.f32 %v2890_v5, %v1674_v33 }
 0x6cf   :  { %2893 = vtanh.f32 %v4607_v32  ;;  %v1679_v14 = vsel %vm1678_vm6, %v2890_v5, %v1675_v29 }
 0x6d0   :  { %v1684_v35 = vsel %vm1681_vm7, %v1683_v27, %v1679_v14 }
 0x6d5   :  { %v2894_v21 = vpop.eup %2893 }
 0x6d6   :  { %v1690_v24 = vmul.f32 %v2894_v21, %v1684_v35 }
 0x6d8   :  { %1692 = vst [vmem:[#allocation12 + $0x48] sm:$0xff] %v1690_v24  ;;  %1714 = vmatmul.f32.vlgmr.msra.gmra.mxu0 %v1690_v24  ;;  %1734 = vmatmul.f32.vlgmr.msra.gmra.mxu1 %v1690_v24 }
 0x6d9   :  { %1754 = vmatmul.f32.vlgmr.msra.gmra.mxu2 %v1690_v24  ;;  %1774 = vmatmul.f32.vlgmr.msra.gmra.mxu3 %v1690_v24 }
 0x6da   :  { %2006 = vmatpush.msra.mxu0 %v4278_v13  ;;  %2026 = vmatpush.msra.mxu1 %v4281_v34  ;;  %v5507_v13 = vld [vmem:[#allocation48_spill] sm:$0xff]  ;;  %v5508_v34 = vld [vmem:[#allocation43_spill] sm:$0xff] }
 0x6db   :  { %2046 = vmatpush.msra.mxu2 %v4284_v36  ;;  %2066 = vmatpush.msra.mxu3 %v4287_v37  ;;  %v5509_v36 = vld [vmem:[#allocation21_spill] sm:$0xff]  ;;  %v5510_v37 = vld [vmem:[#allocation22_spill] sm:$0xff] }
 0x6dc   :  { %2007 = vmatpush.msra.mxu0 %v4290_v40  ;;  %2027 = vmatpush.msra.mxu1 %v4293_v49  ;;  %v5511_v40 = vld [vmem:[#allocation36_spill] sm:$0xff]  ;;  %v5512_v49 = vld [vmem:[#allocation23_spill] sm:$0xff] }
 0x6dd   :  { %2047 = vmatpush.msra.mxu2 %v4296_v46  ;;  %2067 = vmatpush.msra.mxu3 %v4299_v55  ;;  %v5513_v46 = vld [vmem:[#allocation24_spill] sm:$0xff]  ;;  %v5514_v55 = vld [vmem:[#allocation25_spill] sm:$0xff] }
 0x6de   :  { %2008 = vmatpush.msra.mxu0 %v4302_v48  ;;  %2028 = vmatpush.msra.mxu1 %v4305_v61  ;;  %v5515_v48 = vld [vmem:[#allocation40_spill] sm:$0xff]  ;;  %v5516_v61 = vld [vmem:[#allocation26_spill] sm:$0xff] }
 0x6df   :  { %2048 = vmatpush.msra.mxu2 %v4308_v54  ;;  %2068 = vmatpush.msra.mxu3 %v4311_v50  ;;  %v5517_v54 = vld [vmem:[#allocation27_spill] sm:$0xff]  ;;  %v5518_v50 = vld [vmem:[#allocation28_spill] sm:$0xff] }
 0x6e0   :  { %2009 = vmatpush.msra.mxu0 %v4314_v44  ;;  %2029 = vmatpush.msra.mxu1 %v4317_v52  ;;  %v5519_v44 = vld [vmem:[#allocation44_spill] sm:$0xff]  ;;  %v5520_v52 = vld [vmem:[#allocation29_spill] sm:$0xff] }
 0x6e1   :  { %2049 = vmatpush.msra.mxu2 %v4320_v63  ;;  %2069 = vmatpush.msra.mxu3 %v4323_v57  ;;  %v5521_v63 = vld [vmem:[#allocation30_spill] sm:$0xff]  ;;  %v5522_v57 = vld [vmem:[#allocation31_spill] sm:$0xff] }
 0x6e2   :  { %2010 = vmatpush.msra.mxu0 %v4326_v0  ;;  %2030 = vmatpush.msra.mxu1 %v4329_v41  ;;  %v5523_v0 = vld [vmem:[#allocation45_spill] sm:$0xff]  ;;  %v5524_v41 = vld [vmem:[#allocation32_spill] sm:$0xff] }
 0x6e3   :  { %2050 = vmatpush.msra.mxu2 %v4332_v60  ;;  %2070 = vmatpush.msra.mxu3 %v4335_v1  ;;  %v5525_v60 = vld [vmem:[#allocation33_spill] sm:$0xff]  ;;  %v5526_v1 = vld [vmem:[#allocation34_spill] sm:$0xff] }
 0x6e4   :  { %2011 = vmatpush.msra.mxu0 %v4338_v4  ;;  %2031 = vmatpush.msra.mxu1 %v4341_v12  ;;  %v5527_v4 = vld [vmem:[#allocation46_spill] sm:$0xff]  ;;  %v5528_v12 = vld [vmem:[#allocation35_spill] sm:$0xff] }
 0x6e5   :  { %2051 = vmatpush.msra.mxu2 %v4344_v51  ;;  %2071 = vmatpush.msra.mxu3 %v4347_v56  ;;  %v5529_v51 = vld [vmem:[#allocation37_spill] sm:$0xff]  ;;  %v5530_v56 = vld [vmem:[#allocation38_spill] sm:$0xff] }
 0x6e6   :  { %2012 = vmatpush.msra.mxu0 %v4350_v58  ;;  %2032 = vmatpush.msra.mxu1 %v4353_v16  ;;  %v5531_v58 = vld [vmem:[#allocation47_spill] sm:$0xff] }
 0x6e7   :  { %2052 = vmatpush.msra.mxu2 %v4356_v18  ;;  %2072 = vmatpush.msra.mxu3 %v4359_v11  ;;  %v5532_v16 = vld [vmem:[#allocation39_spill] sm:$0xff]  ;;  %v1694_v18 = vld [vmem:[#allocation4 + $0x140] sm:$0xff]  ;;  %v1695_v11 = vld [vmem:[#allocation4 + $0x148] sm:$0xff] }
 0x6e8   :  { %2013 = vmatpush.msra.mxu0 %v4362_v6  ;;  %2033 = vmatpush.msra.mxu1 %v4365_v7 }
 0x6e9   :  { %2053 = vmatpush.msra.mxu2 %v4368_v9  ;;  %2073 = vmatpush.msra.mxu3 %v4371_v19 }
 0x6ea   :  { %2014 = vmatpush.msra.mxu0 %v4374_v3  ;;  %2034 = vmatpush.msra.mxu1 %v4377_v15 }
 0x6eb   :  { %2054 = vmatpush.msra.mxu2 %v4380_v45  ;;  %2074 = vmatpush.msra.mxu3 %v4383_v20  ;;  %v1697_v45 = vld [vmem:[#allocation4 + $0x158] sm:$0xff] }
 0x6ec   :  { %2015 = vmatpush.msra.mxu0 %v4386_v10  ;;  %2035 = vmatpush.msra.mxu1 %v4389_v17 }
 0x6ed   :  { %2055 = vmatpush.msra.mxu2 %v5507_v13  ;;  %2075 = vmatpush.msra.mxu3 %v5508_v34 }
 0x6ee   :  { %2016 = vmatpush.msra.mxu0 %v5509_v36  ;;  %2036 = vmatpush.msra.mxu1 %v5510_v37 }
 0x6ef   :  { %2056 = vmatpush.msra.mxu2 %v5511_v40  ;;  %2076 = vmatpush.msra.mxu3 %v5512_v49 }
 0x6f0   :  { %2017 = vmatpush.msra.mxu0 %v5513_v46  ;;  %2037 = vmatpush.msra.mxu1 %v5514_v55 }
 0x6f1   :  { %2057 = vmatpush.msra.mxu2 %v5515_v48  ;;  %2077 = vmatpush.msra.mxu3 %v5516_v61 }
 0x6f2   :  { %2018 = vmatpush.msra.mxu0 %v5517_v54  ;;  %2038 = vmatpush.msra.mxu1 %v5518_v50 }
 0x6f3   :  { %2058 = vmatpush.msra.mxu2 %v5519_v44  ;;  %2078 = vmatpush.msra.mxu3 %v5520_v52 }
 0x6f4   :  { %2019 = vmatpush.msra.mxu0 %v5521_v63  ;;  %2039 = vmatpush.msra.mxu1 %v5522_v57 }
 0x6f5   :  { %2059 = vmatpush.msra.mxu2 %v5523_v0  ;;  %2079 = vmatpush.msra.mxu3 %v5524_v41 }
 0x6f6   :  { %2020 = vmatpush.msra.mxu0 %v5525_v60  ;;  %2040 = vmatpush.msra.mxu1 %v5526_v1 }
 0x6f7   :  { %2060 = vmatpush.msra.mxu2 %v5527_v4  ;;  %2080 = vmatpush.msra.mxu3 %v5528_v12  ;;  %v4681_v4 = vld [vmem:[#allocation10 + $0x1e8] sm:$0xff]  ;;  %v4684_v12 = vld [vmem:[#allocation10 + $0x1f0] sm:$0xff] }
 0x6f8   :  { %2021 = vmatpush.msra.mxu0 %v5529_v51  ;;  %2041 = vmatpush.msra.mxu1 %v5530_v56  ;;  %v4687_v51 = vld [vmem:[#allocation10 + $0x1f8] sm:$0xff]  ;;  %v4690_v56 = vld [vmem:[#allocation10 + $0x1c0] sm:$0xff] }
 0x6f9   :  { %2061 = vmatpush.msra.mxu2 %v5531_v58  ;;  %2081 = vmatpush.msra.mxu3 %v5532_v16  ;;  %v4693_v58 = vld [vmem:[#allocation10 + $0x1c8] sm:$0xff]  ;;  %v4696_v16 = vld [vmem:[#allocation10 + $0x1d0] sm:$0xff] }
 0x755   :  { %v1715_v6 = vpop.f32.mrf.mxu0  ;;  %v1735_v7 = vpop.f32.mrf.mxu1 }
 0x756   :  { %v1778_v9 = vadd.f32 %v1715_v6, %v1694_v18  ;;  %v1779_v19 = vadd.f32 %v1735_v7, %v1695_v11  ;;  %v4699_v18 = vld [vmem:[#allocation10 + $0x1d8] sm:$0xff]  ;;  %v4702_v11 = vld [vmem:[#allocation10 + $0x1a0] sm:$0xff]  ;;  %v4705_v6 = vld [vmem:[#allocation10 + $0x1a8] sm:$0xff] }
 0x757   :  { %v4708_v7 = vld [vmem:[#allocation10 + $0x1b0] sm:$0xff] }
 0x758   :  { %v2706_v3 = vmul.f32 -1.442695, %v1778_v9  ;;  %v2707_v15 = vmul.f32 -1.442695, %v1779_v19  ;;  %v4711_v9 = vld [vmem:[#allocation10 + $0x1b8] sm:$0xff]  ;;  %v4714_v19 = vld [vmem:[#allocation10 + $0x180] sm:$0xff] }
 0x75a   :  { %2895 = vpow2.f32 %v2706_v3  ;;  %v4717_v3 = vld [vmem:[#allocation10 + $0x188] sm:$0xff] }
 0x75b   :  { %2897 = vpow2.f32 %v2707_v15  ;;  %v4720_v15 = vld [vmem:[#allocation10 + $0x190] sm:$0xff] }
 0x75c   :  { %v1775_v20 = vpop.f32.mrf.mxu3  ;;  %v1755_v5 = vpop.f32.mrf.mxu2 }
 0x75d   :  { %v1781_v10 = vadd.f32 %v1775_v20, %v1697_v45  ;;  %v1780_v25 = vadd.f32 %v1755_v5, %v1696_v53  ;;  %v4723_v45 = vld [vmem:[#allocation10 + $0x198] sm:$0xff]  ;;  %v4726_v20 = vld [vmem:[#allocation10 + $0x160] sm:$0xff] }
 0x75e   :  { %v4747_v53 = vld [vmem:[#allocation10 + $0x158] sm:$0xff]  ;;  %v4750_v5 = vld [vmem:[#allocation10 + $0x120] sm:$0xff] }
 0x75f   :  { %v2708_v17 = vmul.f32 -1.442695, %v1781_v10  ;;  %v4729_v10 = vld [vmem:[#allocation10 + $0x168] sm:$0xff] }
 0x760   :  { %v2896_v62 = vpop.eup %2895 }
 0x761   :  { %v2898_v23 = vpop.eup %2897  ;;  %v1785_v31 = vadd.f32 1.0, %v2896_v62  ;;  %2899 = vpow2.f32 %v2708_v17  ;;  %v4732_v17 = vld [vmem:[#allocation10 + $0x170] sm:$0xff]  ;;  %v4735_v62 = vld [vmem:[#allocation10 + $0x178] sm:$0xff] }
 0x762   :  { %v1804_v38 = vadd.f32 1.0, %v2898_v23  ;;  %v4738_v23 = vld [vmem:[#allocation10 + $0x140] sm:$0xff] }
 0x763   :  { %2901 = vrcp.f32 %v1785_v31  ;;  %v1797_v2 = vand.u32 2147483648, %v1785_v31  ;;  %v1795_v47 = vand.u32 2147483647, %v1785_v31  ;;  %vm1791_vm10 = vweird.f32 %v1785_v31 }
 0x764   :  { %2903 = vrcp.f32 %v1804_v38  ;;  %v1816_v33 = vand.u32 2147483648, %v1804_v38  ;;  %v1814_v14 = vand.u32 2147483647, %v1804_v38  ;;  %vm1810_vm11 = vweird.f32 %v1804_v38 }
 0x765   :  { %v1798_v35 = vor.u32 1.1754944e-38, %v1797_v2  ;;  %vm1796_vm14 = vcmp.eq.f32.partialorder %v1795_v47, 8.507059e+37  ;;  %v4780_v2 = vld [vmem:[#allocation10 + $0xf0] sm:$0xff]  ;;  %v4789_v47 = vld [vmem:[#allocation10 + $0xc8] sm:$0xff] }
 0x766   :  { %v1817_v34 = vor.u32 1.1754944e-38, %v1816_v33  ;;  %vm1815_vm15 = vcmp.eq.f32.partialorder %v1814_v14, 8.507059e+37  ;;  %v4783_v33 = vld [vmem:[#allocation10 + $0xf8] sm:$0xff] }
 0x767   :  { %v2900_v43 = vpop.eup %2899  ;;  %v4795_v14 = vld [vmem:[#allocation10 + $0xd8] sm:$0xff] }
 0x768   :  { %v1824_v59 = vadd.f32 1.0, %v2900_v43  ;;  %v4753_v43 = vld [vmem:[#allocation10 + $0x128] sm:$0xff]  ;;  %5534 = vst [vmem:[#allocation42_spill] sm:$0xff] %v4795_v14 }
 0x769   :  { %v2902_v30 = vpop.eup %2901 }
 0x76a   :  { %v2904_v26 = vpop.eup %2903  ;;  %v1787_v28 = vmul.f32 %v2902_v30, %v1785_v31  ;;  %2905 = vrcp.f32 %v1824_v59  ;;  %vm1792_vm8 = vweird.f32 %v2902_v30  ;;  %v1836_v52 = vand.u32 2147483648, %v1824_v59  ;;  %v4741_v31 = vld [vmem:[#allocation10 + $0x148] sm:$0xff] }
 0x76b   :  { %v1806_v42 = vmul.f32 %v2904_v26, %v1804_v38  ;;  %2907 = vtanh.f32 %v1780_v25  ;;  %vm1811_vm9 = vweird.f32 %v2904_v26  ;;  %vm1793_vm12 = vmor %vm1791_vm10, %vm1792_vm8  ;;  %vm1830_vm1 = vweird.f32 %v1824_v59  ;;  %v4744_v38 = vld [vmem:[#allocation10 + $0x150] sm:$0xff]  ;;  %v4762_v25 = vld [vmem:[#allocation10 + $0x100] sm:$0xff] }
 0x76c   :  { %v1788_v22 = vsub.f32 1.0, %v1787_v28  ;;  %vm1812_vm13 = vmor %vm1810_vm11, %vm1811_vm9  ;;  %v1834_v63 = vand.u32 2147483647, %v1824_v59  ;;  %v1837_v0 = vor.u32 1.1754944e-38, %v1836_v52  ;;  %v4768_v28 = vld [vmem:[#allocation10 + $0x110] sm:$0xff]  ;;  %v4846_v52 = vld [vmem:[#allocation10 + $0x20] sm:$0xff] }
 0x76d   :  { %v1807_v39 = vsub.f32 1.0, %v1806_v42  ;;  %v4771_v42 = vld [vmem:[#allocation10 + $0x118] sm:$0xff]  ;;  %5551 = vst [vmem:[#allocation45_spill] sm:$0xff] %v4846_v52 }
 0x76e   :  { %v1789_v29 = vmul.f32 %v2902_v30, %v1788_v22  ;;  %vm1835_vm3 = vcmp.eq.f32.partialorder %v1834_v63, 8.507059e+37  ;;  %v4774_v22 = vld [vmem:[#allocation10 + $0xe0] sm:$0xff]  ;;  %v4849_v63 = vld [vmem:[#allocation10 + $0x28] sm:$0xff] }
 0x76f   :  { %v1808_v8 = vmul.f32 %v2904_v26, %v1807_v39  ;;  %v4777_v39 = vld [vmem:[#allocation10 + $0xe8] sm:$0xff]  ;;  %5552 = vst [vmem:[#allocation32_spill] sm:$0xff] %v4849_v63 }
 0x770   :  { %v2906_v27 = vpop.eup %2905  ;;  %v1790_v21 = vadd.f32 %v2902_v30, %v1789_v29  ;;  %v4786_v29 = vld [vmem:[#allocation10 + $0xc0] sm:$0xff] }
 0x771   :  { %v1809_v24 = vadd.f32 %v2904_v26, %v1808_v8  ;;  %v1826_v13 = vmul.f32 %v2906_v27, %v1824_v59  ;;  %v2908_v37 = vpop.eup %2907  ;;  %vm1831_vm0 = vweird.f32 %v2906_v27  ;;  %v4756_v59 = vld [vmem:[#allocation10 + $0x130] sm:$0xff] }
 0x772   :  { %v1794_v36 = vsel %vm1793_vm12, %v2902_v30, %v1790_v21  ;;  %vm1832_vm2 = vmor %vm1830_vm1, %vm1831_vm0  ;;  %v4759_v30 = vld [vmem:[#allocation10 + $0x138] sm:$0xff]  ;;  %v4792_v8 = vld [vmem:[#allocation10 + $0xd0] sm:$0xff] }
 0x773   :  { %v1799_v40 = vsel %vm1796_vm14, %v1798_v35, %v1794_v36  ;;  %v1813_v49 = vsel %vm1812_vm13, %v2904_v26, %v1809_v24  ;;  %v1827_v46 = vsub.f32 1.0, %v1826_v13  ;;  %v4765_v26 = vld [vmem:[#allocation10 + $0x108] sm:$0xff]  ;;  %5533 = vst [vmem:[#allocation41_spill] sm:$0xff] %v4792_v8  ;;  %v4804_v35 = vld [vmem:[#allocation10 + $0xb0] sm:$0xff]  ;;  %v4807_v24 = vld [vmem:[#allocation10 + $0xb8] sm:$0xff] }
 0x774   :  { %v1818_v55 = vsel %vm1815_vm15, %v1817_v34, %v1813_v49  ;;  %v1841_v48 = vmul.f32 %v2908_v37, %v1799_v40  ;;  %v4801_v21 = vld [vmem:[#allocation10 + $0xa8] sm:$0xff]  ;;  %5537 = vst [vmem:[#allocation21_spill] sm:$0xff] %v4804_v35  ;;  %v4810_v13 = vld [vmem:[#allocation10 + $0x80] sm:$0xff]  ;;  %v4816_v36 = vld [vmem:[#allocation10 + $0x90] sm:$0xff] }
 0x775   :  { %v1840_v61 = vmul.f32 %v1818_v55, %v4607_v32  ;;  %v1828_v54 = vmul.f32 %v2906_v27, %v1827_v46  ;;  %v4678_v32 = vld [vmem:[#allocation10 + $0x1e0] sm:$0xff]  ;;  %5536 = vst [vmem:[#allocation43_spill] sm:$0xff] %v4801_v21  ;;  %v4813_v34 = vld [vmem:[#allocation10 + $0x88] sm:$0xff]  ;;  %v4819_v37 = vld [vmem:[#allocation10 + $0x98] sm:$0xff] }
 0x776   :  { %5538 = vst [vmem:[#allocation22_spill] sm:$0xff] %v4807_v24  ;;  %v4822_v40 = vld [vmem:[#allocation10 + $0x60] sm:$0xff]  ;;  %v4825_v49 = vld [vmem:[#allocation10 + $0x68] sm:$0xff]  ;;  %v4828_v46 = vld [vmem:[#allocation10 + $0x70] sm:$0xff] }
 0x777   :  { %v4675_v50 = vadd.f32 %v1841_v48, %v1840_v61  ;;  %v1829_v44 = vadd.f32 %v2906_v27, %v1828_v54  ;;  %5539 = vst [vmem:[#allocation36_spill] sm:$0xff] %v4810_v13  ;;  %v4831_v55 = vld [vmem:[#allocation10 + $0x78] sm:$0xff]  ;;  %v4834_v48 = vld [vmem:[#allocation10 + $0x40] sm:$0xff]  ;;  %v4837_v61 = vld [vmem:[#allocation10 + $0x48] sm:$0xff] }
 0x778   :  { %5540 = vst [vmem:[#allocation23_spill] sm:$0xff] %v4813_v34  ;;  %v4840_v54 = vld [vmem:[#allocation10 + $0x50] sm:$0xff] }
 0x779   :  { %2909 = vtanh.f32 %v4675_v50  ;;  %v1833_v57 = vsel %vm1832_vm2, %v2906_v27, %v1829_v44  ;;  %v4798_v27 = vld [vmem:[#allocation10 + $0xa0] sm:$0xff]  ;;  %5541 = vst [vmem:[#allocation24_spill] sm:$0xff] %v4816_v36  ;;  %v4843_v44 = vld [vmem:[#allocation10 + $0x58] sm:$0xff] }
 0x77a   :  { %v1838_v60 = vsel %vm1835_vm3, %v1837_v0, %v1833_v57  ;;  %5535 = vst [vmem:[#allocation48_spill] sm:$0xff] %v4798_v27  ;;  %v4852_v57 = vld [vmem:[#allocation10 + $0x30] sm:$0xff]  ;;  %v4855_v0 = vld [vmem:[#allocation10 + $0x38] sm:$0xff] }
 0x77b   :  { %5542 = vst [vmem:[#allocation25_spill] sm:$0xff] %v4819_v37 }
 0x77c   :  { %5543 = vst [vmem:[#allocation40_spill] sm:$0xff] %v4822_v40 }
 0x77d   :  { %5544 = vst [vmem:[#allocation26_spill] sm:$0xff] %v4825_v49 }
 0x77e   :  { %5545 = vst [vmem:[#allocation27_spill] sm:$0xff] %v4828_v46 }
 0x77f   :  { %v2910_v41 = vpop.eup %2909  ;;  %5546 = vst [vmem:[#allocation28_spill] sm:$0xff] %v4831_v55 }
 0x780   :  { %v1844_v1 = vmul.f32 %v2910_v41, %v1838_v60  ;;  %5547 = vst [vmem:[#allocation44_spill] sm:$0xff] %v4834_v48  ;;  %v4858_v41 = vld [vmem:[#allocation10] sm:$0xff]  ;;  %v4861_v60 = vld [vmem:[#allocation10 + $0x8] sm:$0xff] }
 0x781   :  { %5548 = vst [vmem:[#allocation29_spill] sm:$0xff] %v4837_v61 }
 0x782   :  { %1846 = vst [vmem:[#allocation12 + $0x50] sm:$0xff] %v1844_v1  ;;  %1868 = vmatmul.f32.vlgmr.msrb.gmra.mxu0 %v1844_v1  ;;  %1888 = vmatmul.f32.vlgmr.msrb.gmra.mxu1 %v1844_v1 }
 0x783   :  { %1908 = vmatmul.f32.vlgmr.msrb.gmra.mxu2 %v1844_v1  ;;  %1928 = vmatmul.f32.vlgmr.msrb.gmra.mxu3 %v1844_v1  ;;  %5549 = vst [vmem:[#allocation30_spill] sm:$0xff] %v4840_v54  ;;  %v4864_v1 = vld [vmem:[#allocation10 + $0x10] sm:$0xff] }
 0x784   :  { %2160 = vmatpush.msrb.mxu0 %v4678_v32  ;;  %2180 = vmatpush.msrb.mxu1 %v4681_v4  ;;  %5550 = vst [vmem:[#allocation31_spill] sm:$0xff] %v4843_v44 }
 0x785   :  { %2200 = vmatpush.msrb.mxu2 %v4684_v12  ;;  %2220 = vmatpush.msrb.mxu3 %v4687_v51  ;;  %5553 = vst [vmem:[#allocation33_spill] sm:$0xff] %v4852_v57 }
 0x786   :  { %2161 = vmatpush.msrb.mxu0 %v4690_v56  ;;  %2181 = vmatpush.msrb.mxu1 %v4693_v58  ;;  %5554 = vst [vmem:[#allocation34_spill] sm:$0xff] %v4855_v0 }
 0x787   :  { %2201 = vmatpush.msrb.mxu2 %v4696_v16  ;;  %2221 = vmatpush.msrb.mxu3 %v4699_v18  ;;  %5555 = vst [vmem:[#allocation46_spill] sm:$0xff] %v4858_v41 }
 0x788   :  { %2162 = vmatpush.msrb.mxu0 %v4702_v11  ;;  %2182 = vmatpush.msrb.mxu1 %v4705_v6  ;;  %5556 = vst [vmem:[#allocation35_spill] sm:$0xff] %v4861_v60 }
 0x789   :  { %2202 = vmatpush.msrb.mxu2 %v4708_v7  ;;  %2222 = vmatpush.msrb.mxu3 %v4711_v9  ;;  %5557 = vst [vmem:[#allocation37_spill] sm:$0xff] %v4864_v1 }
 0x78a   :  { %2163 = vmatpush.msrb.mxu0 %v4714_v19  ;;  %2183 = vmatpush.msrb.mxu1 %v4717_v3 }
 0x78b   :  { %2203 = vmatpush.msrb.mxu2 %v4720_v15  ;;  %2223 = vmatpush.msrb.mxu3 %v4723_v45 }
 0x78c   :  { %2164 = vmatpush.msrb.mxu0 %v4726_v20  ;;  %2184 = vmatpush.msrb.mxu1 %v4729_v10 }
 0x78d   :  { %2204 = vmatpush.msrb.mxu2 %v4732_v17  ;;  %2224 = vmatpush.msrb.mxu3 %v4735_v62 }
 0x78e   :  { %2165 = vmatpush.msrb.mxu0 %v4738_v23  ;;  %2185 = vmatpush.msrb.mxu1 %v4741_v31 }
 0x78f   :  { %2205 = vmatpush.msrb.mxu2 %v4744_v38  ;;  %2225 = vmatpush.msrb.mxu3 %v4747_v53 }
 0x790   :  { %2166 = vmatpush.msrb.mxu0 %v4750_v5  ;;  %2186 = vmatpush.msrb.mxu1 %v4753_v43 }
 0x791   :  { %2206 = vmatpush.msrb.mxu2 %v4756_v59  ;;  %2226 = vmatpush.msrb.mxu3 %v4759_v30 }
 0x792   :  { %2167 = vmatpush.msrb.mxu0 %v4762_v25  ;;  %2187 = vmatpush.msrb.mxu1 %v4765_v26 }
 0x793   :  { %2207 = vmatpush.msrb.mxu2 %v4768_v28  ;;  %2227 = vmatpush.msrb.mxu3 %v4771_v42 }
 0x794   :  { %2168 = vmatpush.msrb.mxu0 %v4774_v22  ;;  %2188 = vmatpush.msrb.mxu1 %v4777_v39 }
 0x795   :  { %2208 = vmatpush.msrb.mxu2 %v4780_v2  ;;  %2228 = vmatpush.msrb.mxu3 %v4783_v33 }
 0x796   :  { %2169 = vmatpush.msrb.mxu0 %v4786_v29  ;;  %2189 = vmatpush.msrb.mxu1 %v4789_v47 }
 0x797   :  { %2209 = vmatpush.msrb.mxu2 %v4792_v8  ;;  %2229 = vmatpush.msrb.mxu3 %v4795_v14 }
 0x798   :  { %2170 = vmatpush.msrb.mxu0 %v4798_v27  ;;  %2190 = vmatpush.msrb.mxu1 %v4801_v21 }
 0x799   :  { %2210 = vmatpush.msrb.mxu2 %v4804_v35  ;;  %2230 = vmatpush.msrb.mxu3 %v4807_v24 }
 0x79a   :  { %2171 = vmatpush.msrb.mxu0 %v4810_v13  ;;  %2191 = vmatpush.msrb.mxu1 %v4813_v34 }
 0x79b   :  { %2211 = vmatpush.msrb.mxu2 %v4816_v36  ;;  %2231 = vmatpush.msrb.mxu3 %v4819_v37 }
 0x79c   :  { %2172 = vmatpush.msrb.mxu0 %v4822_v40  ;;  %2192 = vmatpush.msrb.mxu1 %v4825_v49 }
 0x79d   :  { %2212 = vmatpush.msrb.mxu2 %v4828_v46  ;;  %2232 = vmatpush.msrb.mxu3 %v4831_v55  ;;  %v1851_v55 = vld [vmem:[#allocation4 + $0x178] sm:$0xff] }
 0x79e   :  { %2173 = vmatpush.msrb.mxu0 %v4834_v48  ;;  %2193 = vmatpush.msrb.mxu1 %v4837_v61 }
 0x79f   :  { %2213 = vmatpush.msrb.mxu2 %v4840_v54  ;;  %2233 = vmatpush.msrb.mxu3 %v4843_v44 }
 0x7a0   :  { %2174 = vmatpush.msrb.mxu0 %v4846_v52  ;;  %2194 = vmatpush.msrb.mxu1 %v4849_v63  ;;  %v4867_v63 = vld [vmem:[#allocation10 + $0x18] sm:$0xff] }
 0x7a1   :  { %2214 = vmatpush.msrb.mxu2 %v4852_v57  ;;  %2234 = vmatpush.msrb.mxu3 %v4855_v0  ;;  %5558 = vst [vmem:[#allocation38_spill] sm:$0xff] %v4867_v63  ;;  %v1848_v57 = vld [vmem:[#allocation4 + $0x160] sm:$0xff]  ;;  %v1849_v52 = vld [vmem:[#allocation4 + $0x168] sm:$0xff] }
 0x7a2   :  { %2175 = vmatpush.msrb.mxu0 %v4858_v41  ;;  %2195 = vmatpush.msrb.mxu1 %v4861_v60 }
 0x7a3   :  { %2215 = vmatpush.msrb.mxu2 %v4864_v1  ;;  %2235 = vmatpush.msrb.mxu3 %v4867_v63  ;;  %v1850_v63 = vld [vmem:[#allocation4 + $0x170] sm:$0xff] }
 0x7ff   :  { %v1869_v44 = vpop.f32.mrf.mxu0  ;;  %v1889_v0 = vpop.f32.mrf.mxu1 }
 0x800   :  { %v1932_v54 = vadd.f32 %v1869_v44, %v1848_v57  ;;  %v1933_v61 = vadd.f32 %v1889_v0, %v1849_v52 }
 0x802   :  { %v2709_v48 = vmul.f32 -1.442695, %v1932_v54  ;;  %v2710_v41 = vmul.f32 -1.442695, %v1933_v61 }
 0x804   :  { %2911 = vpow2.f32 %v2709_v48 }
 0x805   :  { %2913 = vpow2.f32 %v2710_v41 }
 0x806   :  { %v1929_v60 = vpop.f32.mrf.mxu3  ;;  %v1909_v34 = vpop.f32.mrf.mxu2 }
 0x807   :  { %v1935_v46 = vadd.f32 %v1929_v60, %v1851_v55  ;;  %v1934_v54 = vadd.f32 %v1909_v34, %v1850_v63 }
 0x809   :  { %v2711_v49 = vmul.f32 -1.442695, %v1935_v46 }
 0x80a   :  { %v2912_v40 = vpop.eup %2911 }
 0x80b   :  { %v2914_v1 = vpop.eup %2913  ;;  %v1939_v37 = vadd.f32 1.0, %v2912_v40  ;;  %2915 = vpow2.f32 %v2711_v49 }
 0x80c   :  { %v1958_v36 = vadd.f32 1.0, %v2914_v1 }
 0x80d   :  { %2917 = vrcp.f32 %v1939_v37  ;;  %v1951_v46 = vand.u32 2147483648, %v1939_v37  ;;  %v1949_v49 = vand.u32 2147483647, %v1939_v37  ;;  %vm1945_vm6 = vweird.f32 %v1939_v37 }
 0x80e   :  { %2919 = vrcp.f32 %v1958_v36  ;;  %v1970_v41 = vand.u32 2147483648, %v1958_v36  ;;  %v1968_v1 = vand.u32 2147483647, %v1958_v36  ;;  %vm1964_vm7 = vweird.f32 %v1958_v36 }
 0x80f   :  { %vm1950_vm10 = vcmp.eq.f32.partialorder %v1949_v49, 8.507059e+37 }
 0x810   :  { %vm1969_vm11 = vcmp.eq.f32.partialorder %v1968_v1, 8.507059e+37  ;;  %v5566_v1 = vld [vmem:[#allocation23_spill] sm:$0xff] }
 0x811   :  { %v2916_v13 = vpop.eup %2915 }
 0x812   :  { %v1978_v44 = vadd.f32 1.0, %v2916_v13  ;;  %v1952_v13 = vor.u32 1.1754944e-38, %v1951_v46 }
 0x813   :  { %v2918_v52 = vpop.eup %2917 }
 0x814   :  { %v2920_v61 = vpop.eup %2919  ;;  %v1941_v48 = vmul.f32 %v2918_v52, %v1939_v37  ;;  %2921 = vrcp.f32 %v1978_v44  ;;  %vm1946_vm4 = vweird.f32 %v2918_v52  ;;  %v1990_v46 = vand.u32 2147483648, %v1978_v44 }
 0x815   :  { %v1960_v57 = vmul.f32 %v2920_v61, %v1958_v36  ;;  %2923 = vtanh.f32 %v1934_v54  ;;  %vm1965_vm5 = vweird.f32 %v2920_v61  ;;  %vm1947_vm8 = vmor %vm1945_vm6, %vm1946_vm4  ;;  %vm1984_vm13 = vweird.f32 %v1978_v44 }
 0x816   :  { %v1942_v0 = vsub.f32 1.0, %v1941_v48  ;;  %vm1966_vm9 = vmor %vm1964_vm7, %vm1965_vm5  ;;  %v1971_v48 = vor.u32 1.1754944e-38, %v1970_v41  ;;  %v1991_v41 = vor.u32 1.1754944e-38, %v1990_v46  ;;  %v5577_v46 = vld [vmem:[#allocation45_spill] sm:$0xff] }
 0x817   :  { %v1961_v55 = vsub.f32 1.0, %v1960_v57 }
 0x818   :  { %v1943_v40 = vmul.f32 %v2918_v52, %v1942_v0 }
 0x819   :  { %v1962_v60 = vmul.f32 %v2920_v61, %v1961_v55 }
 0x81a   :  { %v2922_v24 = vpop.eup %2921  ;;  %v1944_v35 = vadd.f32 %v2918_v52, %v1943_v40 }
 0x81b   :  { %v1963_v34 = vadd.f32 %v2920_v61, %v1962_v60  ;;  %v1980_v63 = vmul.f32 %v2922_v24, %v1978_v44  ;;  %v2924_v54 = vpop.eup %2923  ;;  %vm1985_vm12 = vweird.f32 %v2922_v24 }
 0x81c   :  { %v1948_v57 = vsel %vm1947_vm8, %v2918_v52, %v1944_v35  ;;  %v1988_v35 = vand.u32 2147483647, %v1978_v44  ;;  %vm1986_vm14 = vmor %vm1984_vm13, %vm1985_vm12  ;;  %v5565_v44 = vld [vmem:[#allocation36_spill] sm:$0xff] }
 0x81d   :  { %v1953_v21 = vsel %vm1950_vm10, %v1952_v13, %v1948_v57  ;;  %v1967_v0 = vsel %vm1966_vm9, %v2920_v61, %v1963_v34  ;;  %v1981_v27 = vsub.f32 1.0, %v1980_v63  ;;  %v5567_v13 = vld [vmem:[#allocation24_spill] sm:$0xff]  ;;  %v5568_v34 = vld [vmem:[#allocation25_spill] sm:$0xff]  ;;  %v5571_v57 = vld [vmem:[#allocation27_spill] sm:$0xff] }
 0x81e   :  { %v1972_v55 = vsel %vm1969_vm11, %v1971_v48, %v1967_v0  ;;  %v1995_v14 = vmul.f32 %v2924_v54, %v1953_v21  ;;  %vm1989_vm15 = vcmp.eq.f32.partialorder %v1988_v35, 8.507059e+37  ;;  %v5563_v21 = vld [vmem:[#allocation21_spill] sm:$0xff]  ;;  %v5569_v63 = vld [vmem:[#allocation40_spill] sm:$0xff]  ;;  %v5570_v48 = vld [vmem:[#allocation26_spill] sm:$0xff] }
 0x81f   :  { %v1994_v8 = vmul.f32 %v1972_v55, %v4675_v50  ;;  %v1982_v40 = vmul.f32 %v2922_v24, %v1981_v27  ;;  %v5559_v50 = vld [vmem:[#allocation41_spill] sm:$0xff]  ;;  %v5562_v27 = vld [vmem:[#allocation43_spill] sm:$0xff]  ;;  %v5572_v54 = vld [vmem:[#allocation28_spill] sm:$0xff] }
 0x820   :  { %v5573_v0 = vld [vmem:[#allocation44_spill] sm:$0xff]  ;;  %v5574_v55 = vld [vmem:[#allocation29_spill] sm:$0xff] }
 0x821   :  { %v4871_v37 = vadd.f32 %v1995_v14, %v1994_v8  ;;  %v1983_v36 = vadd.f32 %v2922_v24, %v1982_v40  ;;  %v5560_v8 = vld [vmem:[#allocation42_spill] sm:$0xff]  ;;  %v5561_v14 = vld [vmem:[#allocation48_spill] sm:$0xff] }
 0x822   :  { %v5575_v40 = vld [vmem:[#allocation30_spill] sm:$0xff]  ;;  %v5578_v35 = vld [vmem:[#allocation32_spill] sm:$0xff] }
 0x823   :  { %2925 = vtanh.f32 %v4871_v37  ;;  %v1987_v52 = vsel %vm1986_vm14, %v2922_v24, %v1983_v36  ;;  %v5564_v24 = vld [vmem:[#allocation22_spill] sm:$0xff]  ;;  %v5576_v36 = vld [vmem:[#allocation31_spill] sm:$0xff] }
 0x824   :  { %v1992_v49 = vsel %vm1989_vm15, %v1991_v41, %v1987_v52  ;;  %v5579_v52 = vld [vmem:[#allocation33_spill] sm:$0xff]  ;;  %v5580_v41 = vld [vmem:[#allocation34_spill] sm:$0xff] }
 0x829   :  { %v2926_v61 = vpop.eup %2925 }
 0x82a   :  { %v1998_v60 = vmul.f32 %v2926_v61, %v1992_v49  ;;  %v5581_v61 = vld [vmem:[#allocation46_spill] sm:$0xff]  ;;  %v5582_v49 = vld [vmem:[#allocation35_spill] sm:$0xff] }
 0x82c   :  { %2000 = vst [vmem:[#allocation12 + $0x58] sm:$0xff] %v1998_v60  ;;  %2022 = vmatmul.f32.vlgmr.msra.gmra.mxu0 %v1998_v60  ;;  %2042 = vmatmul.f32.vlgmr.msra.gmra.mxu1 %v1998_v60 }
 0x82d   :  { %2062 = vmatmul.f32.vlgmr.msra.gmra.mxu2 %v1998_v60  ;;  %2082 = vmatmul.f32.vlgmr.msra.gmra.mxu3 %v1998_v60  ;;  %v5583_v60 = vld [vmem:[#allocation37_spill] sm:$0xff] }
 0x82e   :  { %2314 = vmatpush.msra.mxu0 %v4678_v32  ;;  %2334 = vmatpush.msra.mxu1 %v4681_v4 }
 0x82f   :  { %2354 = vmatpush.msra.mxu2 %v4684_v12  ;;  %2374 = vmatpush.msra.mxu3 %v4687_v51 }
 0x830   :  { %2315 = vmatpush.msra.mxu0 %v4690_v56  ;;  %2335 = vmatpush.msra.mxu1 %v4693_v58 }
 0x831   :  { %2355 = vmatpush.msra.mxu2 %v4696_v16  ;;  %2375 = vmatpush.msra.mxu3 %v4699_v18 }
 0x832   :  { %2316 = vmatpush.msra.mxu0 %v4702_v11  ;;  %2336 = vmatpush.msra.mxu1 %v4705_v6 }
 0x833   :  { %2356 = vmatpush.msra.mxu2 %v4708_v7  ;;  %2376 = vmatpush.msra.mxu3 %v4711_v9 }
 0x834   :  { %2317 = vmatpush.msra.mxu0 %v4714_v19  ;;  %2337 = vmatpush.msra.mxu1 %v4717_v3 }
 0x835   :  { %2357 = vmatpush.msra.mxu2 %v4720_v15  ;;  %2377 = vmatpush.msra.mxu3 %v4723_v45 }
 0x836   :  { %2318 = vmatpush.msra.mxu0 %v4726_v20  ;;  %2338 = vmatpush.msra.mxu1 %v4729_v10 }
 0x837   :  { %2358 = vmatpush.msra.mxu2 %v4732_v17  ;;  %2378 = vmatpush.msra.mxu3 %v4735_v62 }
 0x838   :  { %2319 = vmatpush.msra.mxu0 %v4738_v23  ;;  %2339 = vmatpush.msra.mxu1 %v4741_v31 }
 0x839   :  { %2359 = vmatpush.msra.mxu2 %v4744_v38  ;;  %2379 = vmatpush.msra.mxu3 %v4747_v53 }
 0x83a   :  { %2320 = vmatpush.msra.mxu0 %v4750_v5  ;;  %2340 = vmatpush.msra.mxu1 %v4753_v43 }
 0x83b   :  { %2360 = vmatpush.msra.mxu2 %v4756_v59  ;;  %2380 = vmatpush.msra.mxu3 %v4759_v30 }
 0x83c   :  { %2321 = vmatpush.msra.mxu0 %v4762_v25  ;;  %2341 = vmatpush.msra.mxu1 %v4765_v26 }
 0x83d   :  { %2361 = vmatpush.msra.mxu2 %v4768_v28  ;;  %2381 = vmatpush.msra.mxu3 %v4771_v42 }
 0x83e   :  { %2322 = vmatpush.msra.mxu0 %v4774_v22  ;;  %2342 = vmatpush.msra.mxu1 %v4777_v39 }
 0x83f   :  { %2362 = vmatpush.msra.mxu2 %v4780_v2  ;;  %2382 = vmatpush.msra.mxu3 %v4783_v33 }
 0x840   :  { %2323 = vmatpush.msra.mxu0 %v4786_v29  ;;  %2343 = vmatpush.msra.mxu1 %v4789_v47 }
 0x841   :  { %2363 = vmatpush.msra.mxu2 %v5559_v50  ;;  %2383 = vmatpush.msra.mxu3 %v5560_v8 }
 0x842   :  { %2324 = vmatpush.msra.mxu0 %v5561_v14  ;;  %2344 = vmatpush.msra.mxu1 %v5562_v27 }
 0x843   :  { %2364 = vmatpush.msra.mxu2 %v5563_v21  ;;  %2384 = vmatpush.msra.mxu3 %v5564_v24 }
 0x844   :  { %2325 = vmatpush.msra.mxu0 %v5565_v44  ;;  %2345 = vmatpush.msra.mxu1 %v5566_v1 }
 0x845   :  { %2365 = vmatpush.msra.mxu2 %v5567_v13  ;;  %2385 = vmatpush.msra.mxu3 %v5568_v34 }
 0x846   :  { %2326 = vmatpush.msra.mxu0 %v5569_v63  ;;  %2346 = vmatpush.msra.mxu1 %v5570_v48 }
 0x847   :  { %2366 = vmatpush.msra.mxu2 %v5571_v57  ;;  %2386 = vmatpush.msra.mxu3 %v5572_v54 }
 0x848   :  { %2327 = vmatpush.msra.mxu0 %v5573_v0  ;;  %2347 = vmatpush.msra.mxu1 %v5574_v55  ;;  %v5584_v0 = vld [vmem:[#allocation38_spill] sm:$0xff]  ;;  %v2002_v55 = vld [vmem:[#allocation4 + $0x180] sm:$0xff] }
 0x849   :  { %2367 = vmatpush.msra.mxu2 %v5575_v40  ;;  %2387 = vmatpush.msra.mxu3 %v5576_v36  ;;  %v2003_v40 = vld [vmem:[#allocation4 + $0x188] sm:$0xff] }
 0x84a   :  { %2328 = vmatpush.msra.mxu0 %v5577_v46  ;;  %2348 = vmatpush.msra.mxu1 %v5578_v35 }
 0x84b   :  { %2368 = vmatpush.msra.mxu2 %v5579_v52  ;;  %2388 = vmatpush.msra.mxu3 %v5580_v41  ;;  %v2005_v52 = vld [vmem:[#allocation4 + $0x198] sm:$0xff] }
 0x84c   :  { %2329 = vmatpush.msra.mxu0 %v5581_v61  ;;  %2349 = vmatpush.msra.mxu1 %v5582_v49 }
 0x84d   :  { %2369 = vmatpush.msra.mxu2 %v5583_v60  ;;  %2389 = vmatpush.msra.mxu3 %v5584_v0  ;;  %v2004_v0 = vld [vmem:[#allocation4 + $0x190] sm:$0xff] }
 0x8a9   :  { %v2023_v54 = vpop.f32.mrf.mxu0  ;;  %v2043_v36 = vpop.f32.mrf.mxu1 }
 0x8aa   :  { %v2086_v57 = vadd.f32 %v2023_v54, %v2002_v55  ;;  %v2087_v46 = vadd.f32 %v2043_v36, %v2003_v40 }
 0x8ac   :  { %v2712_v48 = vmul.f32 -1.442695, %v2086_v57  ;;  %v2713_v35 = vmul.f32 -1.442695, %v2087_v46 }
 0x8ae   :  { %2927 = vpow2.f32 %v2712_v48 }
 0x8af   :  { %2929 = vpow2.f32 %v2713_v35 }
 0x8b0   :  { %v2083_v41 = vpop.f32.mrf.mxu3  ;;  %v2063_v1 = vpop.f32.mrf.mxu2 }
 0x8b1   :  { %v2089_v63 = vadd.f32 %v2083_v41, %v2005_v52  ;;  %v2088_v57 = vadd.f32 %v2063_v1, %v2004_v0 }
 0x8b3   :  { %v2714_v61 = vmul.f32 -1.442695, %v2089_v63 }
 0x8b4   :  { %v2928_v34 = vpop.eup %2927 }
 0x8b5   :  { %v2930_v49 = vpop.eup %2929  ;;  %v2093_v13 = vadd.f32 1.0, %v2928_v34  ;;  %2931 = vpow2.f32 %v2714_v61 }
 0x8b6   :  { %v2112_v60 = vadd.f32 1.0, %v2930_v49 }
 0x8b7   :  { %2933 = vrcp.f32 %v2093_v13  ;;  %v2105_v63 = vand.u32 2147483648, %v2093_v13  ;;  %v2103_v41 = vand.u32 2147483647, %v2093_v13  ;;  %vm2099_vm2 = vweird.f32 %v2093_v13 }
 0x8b8   :  { %2935 = vrcp.f32 %v2112_v60  ;;  %v2124_v52 = vand.u32 2147483648, %v2112_v60  ;;  %v2122_v49 = vand.u32 2147483647, %v2112_v60  ;;  %vm2118_vm3 = vweird.f32 %v2112_v60 }
 0x8b9   :  { %vm2104_vm6 = vcmp.eq.f32.partialorder %v2103_v41, 8.507059e+37 }
 0x8ba   :  { %vm2123_vm7 = vcmp.eq.f32.partialorder %v2122_v49, 8.507059e+37 }
 0x8bb   :  { %v2932_v44 = vpop.eup %2931 }
 0x8bc   :  { %v2132_v54 = vadd.f32 1.0, %v2932_v44  ;;  %v2106_v44 = vor.u32 1.1754944e-38, %v2105_v63 }
 0x8bd   :  { %v2934_v55 = vpop.eup %2933 }
 0x8be   :  { %v2936_v40 = vpop.eup %2935  ;;  %v2095_v48 = vmul.f32 %v2934_v55, %v2093_v13  ;;  %2937 = vrcp.f32 %v2132_v54  ;;  %vm2100_vm0 = vweird.f32 %v2934_v55  ;;  %v2144_v63 = vand.u32 2147483648, %v2132_v54 }
 0x8bf   :  { %v2114_v36 = vmul.f32 %v2936_v40, %v2112_v60  ;;  %2939 = vtanh.f32 %v2088_v57  ;;  %vm2119_vm1 = vweird.f32 %v2936_v40  ;;  %vm2101_vm4 = vmor %vm2099_vm2, %vm2100_vm0  ;;  %vm2138_vm9 = vweird.f32 %v2132_v54 }
 0x8c0   :  { %v2096_v46 = vsub.f32 1.0, %v2095_v48  ;;  %vm2120_vm5 = vmor %vm2118_vm3, %vm2119_vm1  ;;  %v2125_v48 = vor.u32 1.1754944e-38, %v2124_v52  ;;  %v2145_v52 = vor.u32 1.1754944e-38, %v2144_v63 }
 0x8c1   :  { %v2115_v35 = vsub.f32 1.0, %v2114_v36 }
 0x8c2   :  { %v2097_v34 = vmul.f32 %v2934_v55, %v2096_v46 }
 0x8c3   :  { %v2116_v61 = vmul.f32 %v2936_v40, %v2115_v35 }
 0x8c4   :  { %v2938_v24 = vpop.eup %2937  ;;  %v2098_v21 = vadd.f32 %v2934_v55, %v2097_v34 }
 0x8c5   :  { %v2117_v1 = vadd.f32 %v2936_v40, %v2116_v61  ;;  %v2134_v0 = vmul.f32 %v2938_v24, %v2132_v54  ;;  %v2940_v57 = vpop.eup %2939  ;;  %vm2139_vm8 = vweird.f32 %v2938_v24 }
 0x8c6   :  { %v2102_v36 = vsel %vm2101_vm4, %v2934_v55, %v2098_v21  ;;  %v2142_v21 = vand.u32 2147483647, %v2132_v54  ;;  %vm2140_vm10 = vmor %vm2138_vm9, %vm2139_vm8 }
 0x8c7   :  { %v2107_v27 = vsel %vm2104_vm6, %v2106_v44, %v2102_v36  ;;  %v2121_v46 = vsel %vm2120_vm5, %v2936_v40, %v2117_v1  ;;  %v2135_v14 = vsub.f32 1.0, %v2134_v0 }
 0x8c8   :  { %v2126_v35 = vsel %vm2123_vm7, %v2125_v48, %v2121_v46  ;;  %v2149_v8 = vmul.f32 %v2940_v57, %v2107_v27  ;;  %vm2143_vm11 = vcmp.eq.f32.partialorder %v2142_v21, 8.507059e+37  ;;  %v2158_v27 = vld [vmem:[#allocation4 + $0x1b0] sm:$0xff] }
 0x8c9   :  { %v2148_v50 = vmul.f32 %v2126_v35, %v4871_v37  ;;  %v2136_v34 = vmul.f32 %v2938_v24, %v2135_v14 }
 0x8cb   :  { %v4939_v13 = vadd.f32 %v2149_v8, %v2148_v50  ;;  %v2137_v60 = vadd.f32 %v2938_v24, %v2136_v34 }
 0x8cd   :  { %2941 = vtanh.f32 %v4939_v13  ;;  %v2141_v55 = vsel %vm2140_vm10, %v2938_v24, %v2137_v60 }
 0x8ce   :  { %v2146_v41 = vsel %vm2143_vm11, %v2145_v52, %v2141_v55 }
 0x8d3   :  { %v2942_v40 = vpop.eup %2941 }
 0x8d4   :  { %v2152_v61 = vmul.f32 %v2942_v40, %v2146_v41 }
 0x8d6   :  { %2154 = vst [vmem:[#allocation12 + $0x60] sm:$0xff] %v2152_v61  ;;  %2176 = vmatmul.f32.vlgmr.msrb.gmra.mxu0 %v2152_v61  ;;  %2196 = vmatmul.f32.vlgmr.msrb.gmra.mxu1 %v2152_v61 }
 0x8d7   :  { %2216 = vmatmul.f32.vlgmr.msrb.gmra.mxu2 %v2152_v61  ;;  %2236 = vmatmul.f32.vlgmr.msrb.gmra.mxu3 %v2152_v61 }
 0x8d8   :  { %2468 = vmatpush.msrb.mxu0 %v4678_v32  ;;  %2488 = vmatpush.msrb.mxu1 %v4681_v4  ;;  %v5585_v32 = vld [vmem:[#allocation41_spill] sm:$0xff]  ;;  %v5586_v4 = vld [vmem:[#allocation42_spill] sm:$0xff] }
 0x8d9   :  { %2508 = vmatpush.msrb.mxu2 %v4684_v12  ;;  %2528 = vmatpush.msrb.mxu3 %v4687_v51  ;;  %v5587_v12 = vld [vmem:[#allocation48_spill] sm:$0xff]  ;;  %v5588_v51 = vld [vmem:[#allocation43_spill] sm:$0xff] }
 0x8da   :  { %2469 = vmatpush.msrb.mxu0 %v4690_v56  ;;  %2489 = vmatpush.msrb.mxu1 %v4693_v58  ;;  %v5589_v56 = vld [vmem:[#allocation21_spill] sm:$0xff]  ;;  %v5590_v58 = vld [vmem:[#allocation22_spill] sm:$0xff] }
 0x8db   :  { %2509 = vmatpush.msrb.mxu2 %v4696_v16  ;;  %2529 = vmatpush.msrb.mxu3 %v4699_v18  ;;  %v5591_v16 = vld [vmem:[#allocation36_spill] sm:$0xff]  ;;  %v5592_v18 = vld [vmem:[#allocation23_spill] sm:$0xff] }
 0x8dc   :  { %2470 = vmatpush.msrb.mxu0 %v4702_v11  ;;  %2490 = vmatpush.msrb.mxu1 %v4705_v6  ;;  %v5593_v11 = vld [vmem:[#allocation24_spill] sm:$0xff]  ;;  %v5594_v6 = vld [vmem:[#allocation25_spill] sm:$0xff] }
 0x8dd   :  { %2510 = vmatpush.msrb.mxu2 %v4708_v7  ;;  %2530 = vmatpush.msrb.mxu3 %v4711_v9  ;;  %v5595_v7 = vld [vmem:[#allocation40_spill] sm:$0xff]  ;;  %v5596_v9 = vld [vmem:[#allocation26_spill] sm:$0xff] }
 0x8de   :  { %2471 = vmatpush.msrb.mxu0 %v4714_v19  ;;  %2491 = vmatpush.msrb.mxu1 %v4717_v3  ;;  %v5597_v19 = vld [vmem:[#allocation27_spill] sm:$0xff]  ;;  %v5598_v3 = vld [vmem:[#allocation28_spill] sm:$0xff] }
 0x8df   :  { %2511 = vmatpush.msrb.mxu2 %v4720_v15  ;;  %2531 = vmatpush.msrb.mxu3 %v4723_v45  ;;  %v5599_v15 = vld [vmem:[#allocation44_spill] sm:$0xff]  ;;  %v5600_v45 = vld [vmem:[#allocation29_spill] sm:$0xff] }
 0x8e0   :  { %2472 = vmatpush.msrb.mxu0 %v4726_v20  ;;  %2492 = vmatpush.msrb.mxu1 %v4729_v10  ;;  %v5601_v20 = vld [vmem:[#allocation30_spill] sm:$0xff]  ;;  %v5602_v10 = vld [vmem:[#allocation31_spill] sm:$0xff] }
 0x8e1   :  { %2512 = vmatpush.msrb.mxu2 %v4732_v17  ;;  %2532 = vmatpush.msrb.mxu3 %v4735_v62  ;;  %v5603_v17 = vld [vmem:[#allocation45_spill] sm:$0xff]  ;;  %v5604_v62 = vld [vmem:[#allocation32_spill] sm:$0xff] }
 0x8e2   :  { %2473 = vmatpush.msrb.mxu0 %v4738_v23  ;;  %2493 = vmatpush.msrb.mxu1 %v4741_v31  ;;  %v5605_v23 = vld [vmem:[#allocation33_spill] sm:$0xff]  ;;  %v5606_v31 = vld [vmem:[#allocation34_spill] sm:$0xff] }
 0x8e3   :  { %2513 = vmatpush.msrb.mxu2 %v4744_v38  ;;  %2533 = vmatpush.msrb.mxu3 %v4747_v53  ;;  %v5607_v38 = vld [vmem:[#allocation46_spill] sm:$0xff]  ;;  %v5608_v53 = vld [vmem:[#allocation35_spill] sm:$0xff] }
 0x8e4   :  { %2474 = vmatpush.msrb.mxu0 %v4750_v5  ;;  %2494 = vmatpush.msrb.mxu1 %v4753_v43  ;;  %v5609_v5 = vld [vmem:[#allocation37_spill] sm:$0xff]  ;;  %v5610_v43 = vld [vmem:[#allocation38_spill] sm:$0xff] }
 0x8e5   :  { %2514 = vmatpush.msrb.mxu2 %v4756_v59  ;;  %2534 = vmatpush.msrb.mxu3 %v4759_v30  ;;  %v2156_v59 = vld [vmem:[#allocation4 + $0x1a0] sm:$0xff]  ;;  %v2157_v30 = vld [vmem:[#allocation4 + $0x1a8] sm:$0xff] }
 0x8e6   :  { %2475 = vmatpush.msrb.mxu0 %v4762_v25  ;;  %2495 = vmatpush.msrb.mxu1 %v4765_v26 }
 0x8e7   :  { %2515 = vmatpush.msrb.mxu2 %v4768_v28  ;;  %2535 = vmatpush.msrb.mxu3 %v4771_v42 }
 0x8e8   :  { %2476 = vmatpush.msrb.mxu0 %v4774_v22  ;;  %2496 = vmatpush.msrb.mxu1 %v4777_v39 }
 0x8e9   :  { %2516 = vmatpush.msrb.mxu2 %v4780_v2  ;;  %2536 = vmatpush.msrb.mxu3 %v4783_v33  ;;  %v2159_v2 = vld [vmem:[#allocation4 + $0x1b8] sm:$0xff] }
 0x8ea   :  { %2477 = vmatpush.msrb.mxu0 %v4786_v29  ;;  %2497 = vmatpush.msrb.mxu1 %v4789_v47 }
 0x8eb   :  { %2517 = vmatpush.msrb.mxu2 %v5585_v32  ;;  %2537 = vmatpush.msrb.mxu3 %v5586_v4 }
 0x8ec   :  { %2478 = vmatpush.msrb.mxu0 %v5587_v12  ;;  %2498 = vmatpush.msrb.mxu1 %v5588_v51 }
 0x8ed   :  { %2518 = vmatpush.msrb.mxu2 %v5589_v56  ;;  %2538 = vmatpush.msrb.mxu3 %v5590_v58 }
 0x8ee   :  { %2479 = vmatpush.msrb.mxu0 %v5591_v16  ;;  %2499 = vmatpush.msrb.mxu1 %v5592_v18 }
 0x8ef   :  { %2519 = vmatpush.msrb.mxu2 %v5593_v11  ;;  %2539 = vmatpush.msrb.mxu3 %v5594_v6 }
 0x8f0   :  { %2480 = vmatpush.msrb.mxu0 %v5595_v7  ;;  %2500 = vmatpush.msrb.mxu1 %v5596_v9 }
 0x8f1   :  { %2520 = vmatpush.msrb.mxu2 %v5597_v19  ;;  %2540 = vmatpush.msrb.mxu3 %v5598_v3 }
 0x8f2   :  { %2481 = vmatpush.msrb.mxu0 %v5599_v15  ;;  %2501 = vmatpush.msrb.mxu1 %v5600_v45 }
 0x8f3   :  { %2521 = vmatpush.msrb.mxu2 %v5601_v20  ;;  %2541 = vmatpush.msrb.mxu3 %v5602_v10 }
 0x8f4   :  { %2482 = vmatpush.msrb.mxu0 %v5603_v17  ;;  %2502 = vmatpush.msrb.mxu1 %v5604_v62 }
 0x8f5   :  { %2522 = vmatpush.msrb.mxu2 %v5605_v23  ;;  %2542 = vmatpush.msrb.mxu3 %v5606_v31  ;;  %v2311_v23 = vld [vmem:[#allocation4 + $0x1c8] sm:$0xff] }
 0x8f6   :  { %2483 = vmatpush.msrb.mxu0 %v5607_v38  ;;  %2503 = vmatpush.msrb.mxu1 %v5608_v53 }
 0x8f7   :  { %2523 = vmatpush.msrb.mxu2 %v5609_v5  ;;  %2543 = vmatpush.msrb.mxu3 %v5610_v43 }
 0x953   :  { %v2177_v25 = vpop.f32.mrf.mxu0  ;;  %v2197_v26 = vpop.f32.mrf.mxu1 }
 0x954   :  { %v2240_v28 = vadd.f32 %v2177_v25, %v2156_v59  ;;  %v2241_v42 = vadd.f32 %v2197_v26, %v2157_v30  ;;  %v2313_v30 = vld [vmem:[#allocation4 + $0x1d8] sm:$0xff] }
 0x956   :  { %v2715_v22 = vmul.f32 -1.442695, %v2240_v28  ;;  %v2716_v39 = vmul.f32 -1.442695, %v2241_v42 }
 0x958   :  { %2943 = vpow2.f32 %v2715_v22 }
 0x959   :  { %2945 = vpow2.f32 %v2716_v39 }
 0x95a   :  { %v2237_v33 = vpop.f32.mrf.mxu3  ;;  %v2217_v24 = vpop.f32.mrf.mxu2 }
 0x95b   :  { %v2243_v29 = vadd.f32 %v2237_v33, %v2159_v2  ;;  %v2242_v1 = vadd.f32 %v2217_v24, %v2158_v27  ;;  %v2312_v33 = vld [vmem:[#allocation4 + $0x1d0] sm:$0xff] }
 0x95d   :  { %v2717_v47 = vmul.f32 -1.442695, %v2243_v29 }
 0x95e   :  { %v2944_v37 = vpop.eup %2943 }
 0x95f   :  { %v2946_v50 = vpop.eup %2945  ;;  %v2247_v8 = vadd.f32 1.0, %v2944_v37  ;;  %2947 = vpow2.f32 %v2717_v47 }
 0x960   :  { %v2266_v14 = vadd.f32 1.0, %v2946_v50 }
 0x961   :  { %2949 = vrcp.f32 %v2247_v8  ;;  %v2259_v35 = vand.u32 2147483648, %v2247_v8  ;;  %v2257_v63 = vand.u32 2147483647, %v2247_v8  ;;  %vm2253_vm14 = vweird.f32 %v2247_v8 }
 0x962   :  { %2951 = vrcp.f32 %v2266_v14  ;;  %v2278_v34 = vand.u32 2147483648, %v2266_v14  ;;  %v2276_v55 = vand.u32 2147483647, %v2266_v14  ;;  %vm2272_vm15 = vweird.f32 %v2266_v14 }
 0x963   :  { %v2260_v41 = vor.u32 1.1754944e-38, %v2259_v35  ;;  %vm2258_vm2 = vcmp.eq.f32.partialorder %v2257_v63, 8.507059e+37 }
 0x964   :  { %v2279_v4 = vor.u32 1.1754944e-38, %v2278_v34  ;;  %vm2277_vm3 = vcmp.eq.f32.partialorder %v2276_v55, 8.507059e+37 }
 0x965   :  { %v2948_v54 = vpop.eup %2947 }
 0x966   :  { %v2286_v49 = vadd.f32 1.0, %v2948_v54 }
 0x967   :  { %v2950_v44 = vpop.eup %2949 }
 0x968   :  { %v2952_v0 = vpop.eup %2951  ;;  %v2249_v48 = vmul.f32 %v2950_v44, %v2247_v8  ;;  %2953 = vrcp.f32 %v2286_v49  ;;  %vm2254_vm12 = vweird.f32 %v2950_v44  ;;  %v2298_v3 = vand.u32 2147483648, %v2286_v49 }
 0x969   :  { %v2268_v36 = vmul.f32 %v2952_v0, %v2266_v14  ;;  %2955 = vtanh.f32 %v2242_v1  ;;  %vm2273_vm13 = vweird.f32 %v2952_v0  ;;  %vm2255_vm0 = vmor %vm2253_vm14, %vm2254_vm12  ;;  %vm2292_vm5 = vweird.f32 %v2286_v49 }
 0x96a   :  { %v2250_v57 = vsub.f32 1.0, %v2249_v48  ;;  %vm2274_vm1 = vmor %vm2272_vm15, %vm2273_vm13  ;;  %v2296_v15 = vand.u32 2147483647, %v2286_v49  ;;  %v2299_v20 = vor.u32 1.1754944e-38, %v2298_v3 }
 0x96b   :  { %v2269_v46 = vsub.f32 1.0, %v2268_v36 }
 0x96c   :  { %v2251_v60 = vmul.f32 %v2950_v44, %v2250_v57  ;;  %vm2297_vm7 = vcmp.eq.f32.partialorder %v2296_v15, 8.507059e+37  ;;  %v2465_v15 = vld [vmem:[#allocation4 + $0x1e8] sm:$0xff] }
 0x96d   :  { %v2270_v21 = vmul.f32 %v2952_v0, %v2269_v46 }
 0x96e   :  { %v2954_v52 = vpop.eup %2953  ;;  %v2252_v40 = vadd.f32 %v2950_v44, %v2251_v60 }
 0x96f   :  { %v2271_v61 = vadd.f32 %v2952_v0, %v2270_v21  ;;  %v2288_v32 = vmul.f32 %v2954_v52, %v2286_v49  ;;  %v2956_v51 = vpop.eup %2955  ;;  %vm2293_vm4 = vweird.f32 %v2954_v52 }
 0x970   :  { %v2256_v12 = vsel %vm2255_vm0, %v2950_v44, %v2252_v40  ;;  %vm2294_vm6 = vmor %vm2292_vm5, %vm2293_vm4 }
 0x971   :  { %v2261_v56 = vsel %vm2258_vm2, %v2260_v41, %v2256_v12  ;;  %v2275_v58 = vsel %vm2274_vm1, %v2952_v0, %v2271_v61  ;;  %v2289_v16 = vsub.f32 1.0, %v2288_v32 }
 0x972   :  { %v2280_v18 = vsel %vm2277_vm3, %v2279_v4, %v2275_v58  ;;  %v2303_v11 = vmul.f32 %v2956_v51, %v2261_v56 }
 0x973   :  { %v2302_v6 = vmul.f32 %v2280_v18, %v4939_v13  ;;  %v2290_v7 = vmul.f32 %v2954_v52, %v2289_v16  ;;  %v2310_v13 = vld [vmem:[#allocation4 + $0x1c0] sm:$0xff] }
 0x975   :  { %v5007_v9 = vadd.f32 %v2303_v11, %v2302_v6  ;;  %v2291_v19 = vadd.f32 %v2954_v52, %v2290_v7 }
 0x977   :  { %2957 = vtanh.f32 %v5007_v9  ;;  %v2295_v45 = vsel %vm2294_vm6, %v2954_v52, %v2291_v19 }
 0x978   :  { %v2300_v17 = vsel %vm2297_vm7, %v2299_v20, %v2295_v45 }
 0x97d   :  { %v2958_v10 = vpop.eup %2957 }
 0x97e   :  { %v2306_v62 = vmul.f32 %v2958_v10, %v2300_v17 }
 0x980   :  { %2308 = vst [vmem:[#allocation12 + $0x68] sm:$0xff] %v2306_v62  ;;  %2330 = vmatmul.f32.vlgmr.msra.gmra.mxu0 %v2306_v62  ;;  %2350 = vmatmul.f32.vlgmr.msra.gmra.mxu1 %v2306_v62 }
 0x981   :  { %2370 = vmatmul.f32.vlgmr.msra.gmra.mxu2 %v2306_v62  ;;  %2390 = vmatmul.f32.vlgmr.msra.gmra.mxu3 %v2306_v62 }
 0x9fd   :  { %v2331_v31 = vpop.f32.mrf.mxu0  ;;  %v2351_v38 = vpop.f32.mrf.mxu1 }
 0x9fe   :  { %v2394_v53 = vadd.f32 %v2331_v31, %v2310_v13  ;;  %v2395_v5 = vadd.f32 %v2351_v38, %v2311_v23  ;;  %v2467_v23 = vld [vmem:[#allocation4 + $0x1f8] sm:$0xff] }
 0xa00   :  { %v2718_v43 = vmul.f32 -1.442695, %v2394_v53  ;;  %v2719_v59 = vmul.f32 -1.442695, %v2395_v5 }
 0xa02   :  { %2959 = vpow2.f32 %v2718_v43 }
 0xa03   :  { %2961 = vpow2.f32 %v2719_v59 }
 0xa04   :  { %v2391_v25 = vpop.f32.mrf.mxu3  ;;  %v2371_v29 = vpop.f32.mrf.mxu2 }
 0xa05   :  { %v2397_v26 = vadd.f32 %v2391_v25, %v2313_v30  ;;  %v2396_v8 = vadd.f32 %v2371_v29, %v2312_v33  ;;  %v2466_v25 = vld [vmem:[#allocation4 + $0x1f0] sm:$0xff] }
 0xa07   :  { %v2720_v28 = vmul.f32 -1.442695, %v2397_v26 }
 0xa08   :  { %v2960_v42 = vpop.eup %2959 }
 0xa09   :  { %v2962_v22 = vpop.eup %2961  ;;  %v2401_v39 = vadd.f32 1.0, %v2960_v42  ;;  %2963 = vpow2.f32 %v2720_v28 }
 0xa0a   :  { %v2420_v2 = vadd.f32 1.0, %v2962_v22 }
 0xa0b   :  { %2965 = vrcp.f32 %v2401_v39  ;;  %v2413_v44 = vand.u32 2147483648, %v2401_v39  ;;  %v2411_v48 = vand.u32 2147483647, %v2401_v39  ;;  %vm2407_vm10 = vweird.f32 %v2401_v39 }
 0xa0c   :  { %2967 = vrcp.f32 %v2420_v2  ;;  %v2432_v1 = vand.u32 2147483648, %v2420_v2  ;;  %v2430_v57 = vand.u32 2147483647, %v2420_v2  ;;  %vm2426_vm11 = vweird.f32 %v2420_v2 }
 0xa0d   :  { %v2414_v34 = vor.u32 1.1754944e-38, %v2413_v44  ;;  %vm2412_vm14 = vcmp.eq.f32.partialorder %v2411_v48, 8.507059e+37 }
 0xa0e   :  { %v2433_v21 = vor.u32 1.1754944e-38, %v2432_v1  ;;  %vm2431_vm15 = vcmp.eq.f32.partialorder %v2430_v57, 8.507059e+37 }
 0xa0f   :  { %v2964_v47 = vpop.eup %2963 }
 0xa10   :  { %v2440_v37 = vadd.f32 1.0, %v2964_v47 }
 0xa11   :  { %v2966_v50 = vpop.eup %2965 }
 0xa12   :  { %v2968_v14 = vpop.eup %2967  ;;  %v2403_v27 = vmul.f32 %v2966_v50, %v2401_v39  ;;  %2969 = vrcp.f32 %v2440_v37  ;;  %vm2408_vm8 = vweird.f32 %v2966_v50  ;;  %v2452_v16 = vand.u32 2147483648, %v2440_v37 }
 0xa13   :  { %v2422_v24 = vmul.f32 %v2968_v14, %v2420_v2  ;;  %2971 = vtanh.f32 %v2396_v8  ;;  %vm2427_vm9 = vweird.f32 %v2968_v14  ;;  %vm2409_vm12 = vmor %vm2407_vm10, %vm2408_vm8  ;;  %vm2446_vm1 = vweird.f32 %v2440_v37 }
 0xa14   :  { %v2404_v54 = vsub.f32 1.0, %v2403_v27  ;;  %vm2428_vm13 = vmor %vm2426_vm11, %vm2427_vm9  ;;  %v2450_v18 = vand.u32 2147483647, %v2440_v37  ;;  %v2453_v6 = vor.u32 1.1754944e-38, %v2452_v16 }
 0xa15   :  { %v2423_v49 = vsub.f32 1.0, %v2422_v24 }
 0xa16   :  { %v2405_v0 = vmul.f32 %v2966_v50, %v2404_v54  ;;  %vm2451_vm3 = vcmp.eq.f32.partialorder %v2450_v18, 8.507059e+37 }
 0xa17   :  { %v2424_v36 = vmul.f32 %v2968_v14, %v2423_v49 }
 0xa18   :  { %v2970_v46 = vpop.eup %2969  ;;  %v2406_v35 = vadd.f32 %v2966_v50, %v2405_v0 }
 0xa19   :  { %v2425_v60 = vadd.f32 %v2968_v14, %v2424_v36  ;;  %v2442_v63 = vmul.f32 %v2970_v46, %v2440_v37  ;;  %v2972_v52 = vpop.eup %2971  ;;  %vm2447_vm0 = vweird.f32 %v2970_v46 }
 0xa1a   :  { %v2410_v55 = vsel %vm2409_vm12, %v2966_v50, %v2406_v35  ;;  %vm2448_vm2 = vmor %vm2446_vm1, %vm2447_vm0 }
 0xa1b   :  { %v2415_v40 = vsel %vm2412_vm14, %v2414_v34, %v2410_v55  ;;  %v2429_v41 = vsel %vm2428_vm13, %v2968_v14, %v2425_v60  ;;  %v2443_v61 = vsub.f32 1.0, %v2442_v63 }
 0xa1c   :  { %v2434_v32 = vsel %vm2431_vm15, %v2433_v21, %v2429_v41  ;;  %v2457_v4 = vmul.f32 %v2972_v52, %v2415_v40 }
 0xa1d   :  { %v2456_v12 = vmul.f32 %v2434_v32, %v5007_v9  ;;  %v2444_v51 = vmul.f32 %v2970_v46, %v2443_v61  ;;  %v2464_v9 = vld [vmem:[#allocation4 + $0x1e0] sm:$0xff] }
 0xa1f   :  { %v5011_v56 = vadd.f32 %v2457_v4, %v2456_v12  ;;  %v2445_v58 = vadd.f32 %v2970_v46, %v2444_v51 }
 0xa21   :  { %2973 = vtanh.f32 %v5011_v56  ;;  %v2449_v11 = vsel %vm2448_vm2, %v2970_v46, %v2445_v58 }
 0xa22   :  { %v2454_v19 = vsel %vm2451_vm3, %v2453_v6, %v2449_v11 }
 0xa27   :  { %v2974_v7 = vpop.eup %2973 }
 0xa28   :  { %v2460_v3 = vmul.f32 %v2974_v7, %v2454_v19 }
 0xa2a   :  { %2462 = vst [vmem:[#allocation12 + $0x70] sm:$0xff] %v2460_v3  ;;  %2484 = vmatmul.f32.vlgmr.msrb.gmra.mxu0 %v2460_v3  ;;  %2504 = vmatmul.f32.vlgmr.msrb.gmra.mxu1 %v2460_v3 }
 0xa2b   :  { %2524 = vmatmul.f32.vlgmr.msrb.gmra.mxu2 %v2460_v3  ;;  %2544 = vmatmul.f32.vlgmr.msrb.gmra.mxu3 %v2460_v3 }
 0xaa7   :  { %v2485_v45 = vpop.f32.mrf.mxu0  ;;  %v2505_v20 = vpop.f32.mrf.mxu1 }
 0xaa8   :  { %v2548_v10 = vadd.f32 %v2485_v45, %v2464_v9  ;;  %v2549_v17 = vadd.f32 %v2505_v20, %v2465_v15 }
 0xaaa   :  { %v2721_v62 = vmul.f32 -1.442695, %v2548_v10  ;;  %v2722_v13 = vmul.f32 -1.442695, %v2549_v17 }
 0xaac   :  { %2975 = vpow2.f32 %v2721_v62 }
 0xaad   :  { %2977 = vpow2.f32 %v2722_v13 }
 0xaae   :  { %v2545_v31 = vpop.f32.mrf.mxu3  ;;  %v2525_v26 = vpop.f32.mrf.mxu2 }
 0xaaf   :  { %v2551_v38 = vadd.f32 %v2545_v31, %v2467_v23  ;;  %v2550_v39 = vadd.f32 %v2525_v26, %v2466_v25 }
 0xab1   :  { %v2723_v53 = vmul.f32 -1.442695, %v2551_v38 }
 0xab2   :  { %v2976_v5 = vpop.eup %2975 }
 0xab3   :  { %v2978_v43 = vpop.eup %2977  ;;  %v2555_v59 = vadd.f32 1.0, %v2976_v5  ;;  %2979 = vpow2.f32 %v2723_v53 }
 0xab4   :  { %v2574_v30 = vadd.f32 1.0, %v2978_v43 }
 0xab5   :  { %2981 = vrcp.f32 %v2555_v59  ;;  %v2567_v50 = vand.u32 2147483648, %v2555_v59  ;;  %v2565_v27 = vand.u32 2147483647, %v2555_v59  ;;  %vm2561_vm6 = vweird.f32 %v2555_v59 }
 0xab6   :  { %2983 = vrcp.f32 %v2574_v30  ;;  %v2586_v8 = vand.u32 2147483648, %v2574_v30  ;;  %v2584_v54 = vand.u32 2147483647, %v2574_v30  ;;  %vm2580_vm7 = vweird.f32 %v2574_v30 }
 0xab7   :  { %v2568_v1 = vor.u32 1.1754944e-38, %v2567_v50  ;;  %vm2566_vm10 = vcmp.eq.f32.partialorder %v2565_v27, 8.507059e+37 }
 0xab8   :  { %v2587_v36 = vor.u32 1.1754944e-38, %v2586_v8  ;;  %vm2585_vm11 = vcmp.eq.f32.partialorder %v2584_v54, 8.507059e+37 }
 0xab9   :  { %v2980_v28 = vpop.eup %2979 }
 0xaba   :  { %v2594_v42 = vadd.f32 1.0, %v2980_v28 }
 0xabb   :  { %v2982_v22 = vpop.eup %2981 }
 0xabc   :  { %v2984_v2 = vpop.eup %2983  ;;  %v2557_v33 = vmul.f32 %v2982_v22, %v2555_v59  ;;  %2985 = vrcp.f32 %v2594_v42  ;;  %vm2562_vm4 = vweird.f32 %v2982_v22  ;;  %v2606_v61 = vand.u32 2147483648, %v2594_v42 }
 0xabd   :  { %v2576_v29 = vmul.f32 %v2984_v2, %v2574_v30  ;;  %2987 = vtanh.f32 %v2550_v39  ;;  %vm2581_vm5 = vweird.f32 %v2984_v2  ;;  %vm2563_vm8 = vmor %vm2561_vm6, %vm2562_vm4  ;;  %vm2600_vm13 = vweird.f32 %v2594_v42 }
 0xabe   :  { %v2558_v47 = vsub.f32 1.0, %v2557_v33  ;;  %vm2582_vm9 = vmor %vm2580_vm7, %vm2581_vm5  ;;  %v2604_v32 = vand.u32 2147483647, %v2594_v42  ;;  %v2607_v12 = vor.u32 1.1754944e-38, %v2606_v61 }
 0xabf   :  { %v2577_v37 = vsub.f32 1.0, %v2576_v29 }
 0xac0   :  { %v2559_v14 = vmul.f32 %v2982_v22, %v2558_v47  ;;  %vm2605_vm15 = vcmp.eq.f32.partialorder %v2604_v32, 8.507059e+37 }
 0xac1   :  { %v2578_v24 = vmul.f32 %v2984_v2, %v2577_v37 }
 0xac2   :  { %v2986_v49 = vpop.eup %2985  ;;  %v2560_v44 = vadd.f32 %v2982_v22, %v2559_v14 }
 0xac3   :  { %v2579_v0 = vadd.f32 %v2984_v2, %v2578_v24  ;;  %v2596_v48 = vmul.f32 %v2986_v49, %v2594_v42  ;;  %v2988_v46 = vpop.eup %2987  ;;  %vm2601_vm12 = vweird.f32 %v2986_v49 }
 0xac4   :  { %v2564_v57 = vsel %vm2563_vm8, %v2982_v22, %v2560_v44  ;;  %vm2602_vm14 = vmor %vm2600_vm13, %vm2601_vm12 }
 0xac5   :  { %v2569_v35 = vsel %vm2566_vm10, %v2568_v1, %v2564_v57  ;;  %v2583_v34 = vsel %vm2582_vm9, %v2984_v2, %v2579_v0  ;;  %v2597_v60 = vsub.f32 1.0, %v2596_v48 }
 0xac6   :  { %v2588_v63 = vsel %vm2585_vm11, %v2587_v36, %v2583_v34  ;;  %v2611_v21 = vmul.f32 %v2988_v46, %v2569_v35 }
 0xac7   :  { %v2610_v55 = vmul.f32 %v2588_v63, %v5011_v56  ;;  %v2598_v52 = vmul.f32 %v2986_v49, %v2597_v60 }
 0xac9   :  { %v2612_v40 = vadd.f32 %v2611_v21, %v2610_v55  ;;  %v2599_v41 = vadd.f32 %v2986_v49, %v2598_v52 }
 0xacb   :  { %2989 = vtanh.f32 %v2612_v40  ;;  %2623 = vst [vmem:[#allocation15] sm:$0xff] %v2612_v40  ;;  %v2603_v4 = vsel %vm2602_vm14, %v2986_v49, %v2599_v41 }
 0xacc   :  { %v2608_v56 = vsel %vm2605_vm15, %v2607_v12, %v2603_v4 }
 0xad1   :  { %v2990_v51 = vpop.eup %2989 }
 0xad2   :  { %v2614_v58 = vmul.f32 %v2990_v51, %v2608_v56 }
 0xad4   :  { %2616 = vst [vmem:[#allocation12 + $0x78] sm:$0xff] %v2614_v58 }
 0xad5   :  { %2622 = vst [vmem:[#allocation13] sm:$0xff] %v2614_v58  ;;  %2636 = dma.vmem_to_hbm [thread:$0]  %s2629_s3, 2048, %s2631_s19, [#allocation6], %s3370_s4, %s3370_s4, %s3371_s5  }
 0xad6   :  { %2647 = dma.vmem_to_hbm [thread:$0]  %s2643_s21, 128, %s2645_s24, [#allocation14]  }
 0xad7   :  { %2658 = dma.vmem_to_hbm [thread:$0]  %s2654_s26, 128, %s2656_s29, [#allocation14]  }
 0xad8   :  { %3357 = dma.done.wait [#allocation6], 2048  }
 0xad9   :  { %3358 = vsyncadd [#allocation6], 4294965248 }
 0xada   :  { %3359 = dma.done.wait [#allocation14], 256  }
 0xadb   :  { %3360 = vsyncadd [#allocation14], 4294967040 }
 0xadc   :  { %2671 = vsyncpa [#allocation5], 1 }
 0xadd   :  { %2672 = vsyncpa [#allocation8], 1 }
 0xade   :  { %2673 = vsyncpa [#allocation11], 1 }
 0xadf   :  { %2674 = vsyncpa [#allocation6], 1 }
 0xae0   :  { %2675 = vsyncpa [#allocation14], 1 }

</bundles_post_ra>
